<compile_context>
chip_gen: v7x
topology: tpu7x:2x2x1
jax: 0.10.0
libtpu: 0.0.40
codegen_flags: <defaults>
</compile_context>

<pallas_src>
import math

import jax
import jax.numpy as jnp
import numpy as np
from jax import lax
from jax.experimental import pallas as pl
from jax.experimental.pallas import tpu as pltpu


# ----------------------------------------- Pallas kernel -------------------------------------------
def _depth_down_kernel(x_ref, k1_ref, w1_ref, b1_ref, k2_ref, w2_ref, b2_ref, o_ref):
    # x_ref : (Cin, Hp, 2*W) f32      -- one image; rows 2i and 2i+1 concatenated on the lane axis
    # k*_ref: (9, C)       f32 SMEM   -- depthwise 3x3 taps, tap-major (t = 3*u + v)
    # w*_ref: (Cin, Cout) / (Cout, Cout) f32 SMEM -- pointwise weights with BN scale folded in
    # b*_ref: (Cout,)      f32 SMEM   -- pointwise + depthwise + BN bias, fully folded
    # o_ref : (Cout, Hp*Wp) f32       -- one image, NCHW order with trailing spatial dims collapsed
    f32 = jnp.float32
    cin, hp, twow = x_ref.shape
    w = twow // 2
    wp = w // 2
    cout = o_ref.shape[0]

    # --- fused MaxPool2d(2) -------------------------------------------------------------------
    xv = x_ref[...]                                                 # (Cin, Hp, 2W)
    rows = jnp.maximum(xv[:, :, :w], xv[:, :, w:])                  # max over the row pair
    rows2d = rows.reshape(cin * hp, w)
    # even/odd column selection via exact 0/1 f32 matmuls (MXU is otherwise idle here).
    r_idx = lax.broadcasted_iota(jnp.int32, (w, wp), 0)
    c_idx = lax.broadcasted_iota(jnp.int32, (w, wp), 1)
    sel_even = (r_idx == 2 * c_idx).astype(f32)                     # (W, Wp)
    sel_odd = (r_idx == 2 * c_idx + 1).astype(f32)
    pooled2d = jnp.maximum(
        jnp.dot(rows2d, sel_even, preferred_element_type=f32),
        jnp.dot(rows2d, sel_odd, preferred_element_type=f32))       # max over the column pair
    pooled = pooled2d.reshape(cin, hp, wp)                          # (Cin, Hp, Wp)

    def dw_pw_bn_relu(h, c_in, c_out, k_ref, w_ref, b_ref):
        """Depthwise 3x3 (pad 1) -> pointwise 1x1 (+ folded BN/bias) -> ReLU; small-C VPU path."""
        zrow = jnp.zeros((c_in, 1, wp), f32)
        zcol = jnp.zeros((c_in, hp, 1), f32)
        hpad = jnp.concatenate([zrow, h, zrow], axis=1)             # (C, Hp+2, Wp)
        dw = [jnp.zeros((hp, wp), f32) for _ in range(c_in)]
        for u in range(3):                                          # 9 shifted VPU FMAs / channel
            xh = hpad[:, u:u + hp, :]
            wpad = jnp.concatenate([zcol, xh, zcol], axis=2)        # (C, Hp, Wp+2)
            for v in range(3):
                s = wpad[:, :, v:v + wp]                            # in[c, i+u-1, j+v-1] (0 at edge)
                for ci in range(c_in):
                    dw[ci] = dw[ci] + s[ci] * k_ref[3 * u + v, ci]
        outs = []
        for co in range(c_out):                                     # pointwise: scalar-broadcast MACs
            acc = dw[0] * w_ref[0, co]
            for ci in range(1, c_in):
                acc = acc + dw[ci] * w_ref[ci, co]
            outs.append(jnp.maximum(acc + b_ref[co], 0.0))
        return jnp.stack(outs, axis=0)                              # (Cout, Hp, Wp)

    # --- DeepWise_PointWise_Conv #1 + BN (folded) + ReLU, then #2 -------------------------------
    h1 = dw_pw_bn_relu(pooled, cin, cout, k1_ref, w1_ref, b1_ref)
    h2 = dw_pw_bn_relu(h1, cout, cout, k2_ref, w2_ref, b2_ref)

    # --- lane-dense store: collapse (Hp, Wp) onto the lane axis, row by row ---------------------
    for i in range(hp):
        o_ref[:, i * wp:(i + 1) * wp] = h2[:, i, :].astype(o_ref.dtype)


# ------------------------------------------- wrapper -----------------------------------------------
def depth_down_forward(x, params, eps=1e-5):
    """x: (N, in_ch, H, W) NCHW f32. Returns (N, out_ch, H//2, W//2), matching depth_down.forward.

    BatchNorm is applied in eval mode (running stats), folded into the pointwise convolutions.
    """
    # TODO(synk): training-mode BatchNorm (batch statistics) is not implemented; eval-mode only.
    n, cin, h, w = x.shape
    # TODO(synk): MaxPool2d floor mode for odd H/W not implemented.
    assert h % 2 == 0 and w % 2 == 0, "MaxPool2d(2) floor-mode for odd spatial sizes not implemented"
    hp, wp = h // 2, w // 2
    cout = params["pw1"].shape[0]
    f32 = jnp.float32

    # Metadata-only reshape: rows 2i and 2i+1 of each channel become one lane row of width 2W.
    x_r = x.reshape(n, cin, hp, 2 * w)

    # Depthwise 3x3 weights (C,1,3,3) -> (9, C) tap-major.
    k1 = params["dw1"].reshape(cin, 9).T.astype(f32)
    k2 = params["dw2"].reshape(cout, 9).T.astype(f32)

    # Fold eval-mode BatchNorm into the 1x1 pointwise convs, and fold the depthwise biases into the
    # pointwise biases (no nonlinearity between depthwise and pointwise). All folds are elementwise
    # f32 (exact; no low-precision dots).
    s1 = params["g1"] / jnp.sqrt(params["v1"] + eps)
    t1 = params["be1"] - params["m1"] * s1
    s2 = params["g2"] / jnp.sqrt(params["v2"] + eps)
    t2 = params["be2"] - params["m2"] * s2

    pw1 = params["pw1"].reshape(cout, cin)
    pw2 = params["pw2"].reshape(cout, cout)
    w1f = (pw1.T * s1[None, :]).astype(f32)                                       # (Cin, Cout)
    b1f = ((params["bpw1"] + (pw1 * params["bdw1"][None, :]).sum(1)) * s1 + t1).astype(f32)
    w2f = (pw2.T * s2[None, :]).astype(f32)                                       # (Cout, Cout)
    b2f = ((params["bpw2"] + (pw2 * params["bdw2"][None, :]).sum(1)) * s2 + t2).astype(f32)

    smem = pl.BlockSpec(memory_space=pltpu.MemorySpace.SMEM)

    out = pl.pallas_call(
        _depth_down_kernel,
        out_shape=jax.ShapeDtypeStruct((n, cout, hp * wp), f32),
        grid_spec=pltpu.PrefetchScalarGridSpec(
            num_scalar_prefetch=0,
            grid=(n,),                                    # one image per step; parallel across TCs
            in_specs=[
                pl.BlockSpec((None, cin, hp, 2 * w), lambda i: (i, 0, 0, 0)),
                smem, smem, smem, smem, smem, smem,
            ],
            out_specs=pl.BlockSpec((None, cout, hp * wp), lambda i: (i, 0, 0)),
        ),
        compiler_params=pltpu.CompilerParams(dimension_semantics=("parallel",)),
    )(x_r, k1, w1f, b1f, k2, w2f, b2f)

    # Metadata-only split of the trailing dim back to NCHW.
    return out.reshape(n, cout, hp, wp)


# -------------------------------------- pure-JAX reference -----------------------------------------
def _reference(x_nchw, P, eps=1e-5):
    hi = lax.Precision.HIGHEST   # keep the reference convs in true f32 so the comparison is tight

    def dpconv(h, dw, bdw, pw, bpw):
        c = h.shape[1]
        o = lax.conv_general_dilated(h, dw, (1, 1), "SAME", feature_group_count=c,
                                     dimension_numbers=("NCHW", "OIHW", "NCHW"), precision=hi)
        o = o + bdw[None, :, None, None]
        o = lax.conv_general_dilated(o, pw, (1, 1), "VALID",
                                     dimension_numbers=("NCHW", "OIHW", "NCHW"), precision=hi)
        return o + bpw[None, :, None, None]

    def bn(h, g, b, m, v):
        return (h - m[None, :, None, None]) / jnp.sqrt(v[None, :, None, None] + eps) \
            * g[None, :, None, None] + b[None, :, None, None]

    n, c, hh, ww = x_nchw.shape
    xp = x_nchw.reshape(n, c, hh // 2, 2, ww // 2, 2).max(axis=(3, 5))
    h1 = jax.nn.relu(bn(dpconv(xp, P["dw1"], P["bdw1"], P["pw1"], P["bpw1"]),
                        P["g1"], P["be1"], P["m1"], P["v1"]))
    h2 = jax.nn.relu(bn(dpconv(h1, P["dw2"], P["bdw2"], P["pw2"], P["bpw2"]),
                        P["g2"], P["be2"], P["m2"], P["v2"]))
    return h2


# ---------------------------------------------- demo -----------------------------------------------
if __name__ == "__main__":
    in_ch, out_ch = 4, 8
    batch, H, W = 2, 16, 16
    eps = 1e-5

    key = jax.random.PRNGKey(0)
    ks = jax.random.split(key, 17)
    u = lambda k, shape, b: jax.random.uniform(k, shape, jnp.float32, minval=-b, maxval=b)

    bd = 1.0 / math.sqrt(9.0)          # depthwise fan_in = 1*3*3
    bp1 = 1.0 / math.sqrt(in_ch)       # pointwise fan_in = in_ch
    bp2 = 1.0 / math.sqrt(out_ch)      # pointwise fan_in = out_ch

    P = dict(
        dw1=u(ks[0], (in_ch, 1, 3, 3), bd),   bdw1=u(ks[1], (in_ch,), bd),
        pw1=u(ks[2], (out_ch, in_ch, 1, 1), bp1), bpw1=u(ks[3], (out_ch,), bp1),
        g1=jax.random.uniform(ks[4], (out_ch,), jnp.float32, 0.5, 1.5),
        be1=u(ks[5], (out_ch,), 0.5),
        m1=u(ks[6], (out_ch,), 0.5),
        v1=jax.random.uniform(ks[7], (out_ch,), jnp.float32, 0.5, 1.5),
        dw2=u(ks[8], (out_ch, 1, 3, 3), bd),  bdw2=u(ks[9], (out_ch,), bd),
        pw2=u(ks[10], (out_ch, out_ch, 1, 1), bp2), bpw2=u(ks[11], (out_ch,), bp2),
        g2=jax.random.uniform(ks[12], (out_ch,), jnp.float32, 0.5, 1.5),
        be2=u(ks[13], (out_ch,), 0.5),
        m2=u(ks[14], (out_ch,), 0.5),
        v2=jax.random.uniform(ks[15], (out_ch,), jnp.float32, 0.5, 1.5),
    )

    x = jax.random.normal(ks[16], (batch, in_ch, H, W), jnp.float32)

    y = depth_down_forward(x, P, eps=eps)
    jax.block_until_ready(y)

    ref = _reference(x, P, eps=eps)
    np.testing.assert_allclose(np.asarray(y), np.asarray(ref), rtol=1e-4, atol=1e-4)

    print("KERNEL_OK")
</pallas_src>

<mosaic_0001>
module attributes {stable_mosaic.version = 11 : i64} {
  func.func @_depth_down_kernel(%arg0: i32, %arg1: memref<1x4x8x32xf32, #tpu.memory_space<vmem>>, %arg2: memref<9x4xf32, #tpu.memory_space<smem>>, %arg3: memref<4x8xf32, #tpu.memory_space<smem>>, %arg4: memref<8xf32, #tpu.memory_space<smem>>, %arg5: memref<9x8xf32, #tpu.memory_space<smem>>, %arg6: memref<8x8xf32, #tpu.memory_space<smem>>, %arg7: memref<8xf32, #tpu.memory_space<smem>>, %arg8: memref<1x8x64xf32, #tpu.memory_space<vmem>>) attributes {dimension_semantics = [#tpu.dimension_semantics<parallel>], iteration_bounds = array<i64: 2>, scalar_prefetch = 0 : i64, scratch_operands = 0 : i64, tpu.core_type = #tpu.core_type<tc>, window_params = [{transform_indices = @transform_0, window_bounds = array<i64: 1, 4, 8, 32>}, {transform_indices = @transform_1, window_bounds = array<i64: 9, 4>}, {transform_indices = @transform_2, window_bounds = array<i64: 4, 8>}, {transform_indices = @transform_3, window_bounds = array<i64: 8>}, {transform_indices = @transform_4, window_bounds = array<i64: 9, 8>}, {transform_indices = @transform_5, window_bounds = array<i64: 8, 8>}, {transform_indices = @transform_6, window_bounds = array<i64: 8>}, {transform_indices = @transform_7, window_bounds = array<i64: 1, 8, 64>}]} {
    %c0 = arith.constant 0 : index
    %c0_0 = arith.constant 0 : index
    %c0_1 = arith.constant 0 : index
    %c0_2 = arith.constant 0 : index
    %0 = vector.load %arg1[%c0, %c0_0, %c0_1, %c0_2] : memref<1x4x8x32xf32, #tpu.memory_space<vmem>>, vector<1x4x8x32xf32>
    %1 = vector.shape_cast %0 : vector<1x4x8x32xf32> to vector<4x8x32xf32>
    %2 = vector.extract_strided_slice %1 {offsets = [0, 0, 0], sizes = [4, 8, 16], strides = [1, 1, 1]} : vector<4x8x32xf32> to vector<4x8x16xf32>
    %3 = vector.extract_strided_slice %1 {offsets = [0, 0, 16], sizes = [4, 8, 16], strides = [1, 1, 1]} : vector<4x8x32xf32> to vector<4x8x16xf32>
    %4 = arith.maximumf %2, %3 : vector<4x8x16xf32>
    %5 = vector.shape_cast %4 : vector<4x8x16xf32> to vector<32x16xf32>
    %6 = tpu.iota {dimensions = array<i32: 0>} : vector<16x8xi32>
    %7 = tpu.iota {dimensions = array<i32: 1>} : vector<16x8xi32>
    %c2_i32 = arith.constant 2 : i32
    %8 = vector.broadcast %c2_i32 : i32 to vector<16x8xi32>
    %9 = arith.muli %8, %7 : vector<16x8xi32>
    %10 = arith.cmpi eq, %6, %9 : vector<16x8xi32>
    %11 = arith.extui %10 : vector<16x8xi1> to vector<16x8xi32>
    %12 = arith.sitofp %11 : vector<16x8xi32> to vector<16x8xf32>
    %c2_i32_3 = arith.constant 2 : i32
    %13 = vector.broadcast %c2_i32_3 : i32 to vector<16x8xi32>
    %14 = arith.muli %13, %7 : vector<16x8xi32>
    %c1_i32 = arith.constant 1 : i32
    %15 = vector.broadcast %c1_i32 : i32 to vector<16x8xi32>
    %16 = arith.addi %14, %15 : vector<16x8xi32>
    %17 = arith.cmpi eq, %6, %16 : vector<16x8xi32>
    %18 = arith.extui %17 : vector<16x8xi1> to vector<16x8xi32>
    %19 = arith.sitofp %18 : vector<16x8xi32> to vector<16x8xf32>
    %cst = arith.constant dense<0.000000e+00> : vector<32x8xf32>
    %20 = tpu.matmul %5, %12, %cst {dimension_numbers = #tpu.dot_dimension_numbers<[1], [0], [0], [1], [0, 0, 1, 1], [], []>} : vector<32x16xf32>, vector<16x8xf32>, vector<32x8xf32> -> vector<32x8xf32>
    %cst_4 = arith.constant dense<0.000000e+00> : vector<32x8xf32>
    %21 = tpu.matmul %5, %19, %cst_4 {dimension_numbers = #tpu.dot_dimension_numbers<[1], [0], [0], [1], [0, 0, 1, 1], [], []>} : vector<32x16xf32>, vector<16x8xf32>, vector<32x8xf32> -> vector<32x8xf32>
    %22 = arith.maximumf %20, %21 : vector<32x8xf32>
    %23 = vector.shape_cast %22 : vector<32x8xf32> to vector<4x8x8xf32>
    %cst_5 = arith.constant 0.000000e+00 : f32
    %24 = vector.broadcast %cst_5 : f32 to vector<4x1x8xf32>
    %cst_6 = arith.constant 0.000000e+00 : f32
    %25 = vector.broadcast %cst_6 : f32 to vector<4x8x1xf32>
    %26 = tpu.concatenate %24, %23, %24 in 1 : vector<4x1x8xf32>, vector<4x8x8xf32>, vector<4x1x8xf32> -> vector<4x10x8xf32>
    %cst_7 = arith.constant 0.000000e+00 : f32
    %27 = vector.broadcast %cst_7 : f32 to vector<8x8xf32>
    %cst_8 = arith.constant 0.000000e+00 : f32
    %28 = vector.broadcast %cst_8 : f32 to vector<8x8xf32>
    %cst_9 = arith.constant 0.000000e+00 : f32
    %29 = vector.broadcast %cst_9 : f32 to vector<8x8xf32>
    %cst_10 = arith.constant 0.000000e+00 : f32
    %30 = vector.broadcast %cst_10 : f32 to vector<8x8xf32>
    %31 = vector.extract_strided_slice %26 {offsets = [0, 0, 0], sizes = [4, 8, 8], strides = [1, 1, 1]} : vector<4x10x8xf32> to vector<4x8x8xf32>
    %32 = tpu.concatenate %25, %31, %25 in 2 : vector<4x8x1xf32>, vector<4x8x8xf32>, vector<4x8x1xf32> -> vector<4x8x10xf32>
    %33 = vector.extract_strided_slice %32 {offsets = [0, 0, 0], sizes = [4, 8, 8], strides = [1, 1, 1]} : vector<4x8x10xf32> to vector<4x8x8xf32>
    %34 = vector.extract_strided_slice %33 {offsets = [0, 0, 0], sizes = [1, 8, 8], strides = [1, 1, 1]} : vector<4x8x8xf32> to vector<1x8x8xf32>
    %35 = vector.shape_cast %34 : vector<1x8x8xf32> to vector<8x8xf32>
    %c0_11 = arith.constant 0 : index
    %c0_12 = arith.constant 0 : index
    %36 = memref.load %arg2[%c0_11, %c0_12] : memref<9x4xf32, #tpu.memory_space<smem>>
    %37 = vector.broadcast %36 : f32 to vector<8x8xf32>
    %38 = arith.mulf %35, %37 : vector<8x8xf32>
    %39 = arith.addf %27, %38 : vector<8x8xf32>
    %40 = vector.extract_strided_slice %33 {offsets = [1, 0, 0], sizes = [1, 8, 8], strides = [1, 1, 1]} : vector<4x8x8xf32> to vector<1x8x8xf32>
    %41 = vector.shape_cast %40 : vector<1x8x8xf32> to vector<8x8xf32>
    %c0_13 = arith.constant 0 : index
    %c1 = arith.constant 1 : index
    %42 = memref.load %arg2[%c0_13, %c1] : memref<9x4xf32, #tpu.memory_space<smem>>
    %43 = vector.broadcast %42 : f32 to vector<8x8xf32>
    %44 = arith.mulf %41, %43 : vector<8x8xf32>
    %45 = arith.addf %28, %44 : vector<8x8xf32>
    %46 = vector.extract_strided_slice %33 {offsets = [2, 0, 0], sizes = [1, 8, 8], strides = [1, 1, 1]} : vector<4x8x8xf32> to vector<1x8x8xf32>
    %47 = vector.shape_cast %46 : vector<1x8x8xf32> to vector<8x8xf32>
    %c0_14 = arith.constant 0 : index
    %c2 = arith.constant 2 : index
    %48 = memref.load %arg2[%c0_14, %c2] : memref<9x4xf32, #tpu.memory_space<smem>>
    %49 = vector.broadcast %48 : f32 to vector<8x8xf32>
    %50 = arith.mulf %47, %49 : vector<8x8xf32>
    %51 = arith.addf %29, %50 : vector<8x8xf32>
    %52 = vector.extract_strided_slice %33 {offsets = [3, 0, 0], sizes = [1, 8, 8], strides = [1, 1, 1]} : vector<4x8x8xf32> to vector<1x8x8xf32>
    %53 = vector.shape_cast %52 : vector<1x8x8xf32> to vector<8x8xf32>
    %c0_15 = arith.constant 0 : index
    %c3 = arith.constant 3 : index
    %54 = memref.load %arg2[%c0_15, %c3] : memref<9x4xf32, #tpu.memory_space<smem>>
    %55 = vector.broadcast %54 : f32 to vector<8x8xf32>
    %56 = arith.mulf %53, %55 : vector<8x8xf32>
    %57 = arith.addf %30, %56 : vector<8x8xf32>
    %58 = vector.extract_strided_slice %32 {offsets = [0, 0, 1], sizes = [4, 8, 8], strides = [1, 1, 1]} : vector<4x8x10xf32> to vector<4x8x8xf32>
    %59 = vector.extract_strided_slice %58 {offsets = [0, 0, 0], sizes = [1, 8, 8], strides = [1, 1, 1]} : vector<4x8x8xf32> to vector<1x8x8xf32>
    %60 = vector.shape_cast %59 : vector<1x8x8xf32> to vector<8x8xf32>
    %c1_16 = arith.constant 1 : index
    %c0_17 = arith.constant 0 : index
    %61 = memref.load %arg2[%c1_16, %c0_17] : memref<9x4xf32, #tpu.memory_space<smem>>
    %62 = vector.broadcast %61 : f32 to vector<8x8xf32>
    %63 = arith.mulf %60, %62 : vector<8x8xf32>
    %64 = arith.addf %39, %63 : vector<8x8xf32>
    %65 = vector.extract_strided_slice %58 {offsets = [1, 0, 0], sizes = [1, 8, 8], strides = [1, 1, 1]} : vector<4x8x8xf32> to vector<1x8x8xf32>
    %66 = vector.shape_cast %65 : vector<1x8x8xf32> to vector<8x8xf32>
    %c1_18 = arith.constant 1 : index
    %c1_19 = arith.constant 1 : index
    %67 = memref.load %arg2[%c1_18, %c1_19] : memref<9x4xf32, #tpu.memory_space<smem>>
    %68 = vector.broadcast %67 : f32 to vector<8x8xf32>
    %69 = arith.mulf %66, %68 : vector<8x8xf32>
    %70 = arith.addf %45, %69 : vector<8x8xf32>
    %71 = vector.extract_strided_slice %58 {offsets = [2, 0, 0], sizes = [1, 8, 8], strides = [1, 1, 1]} : vector<4x8x8xf32> to vector<1x8x8xf32>
    %72 = vector.shape_cast %71 : vector<1x8x8xf32> to vector<8x8xf32>
    %c1_20 = arith.constant 1 : index
    %c2_21 = arith.constant 2 : index
    %73 = memref.load %arg2[%c1_20, %c2_21] : memref<9x4xf32, #tpu.memory_space<smem>>
    %74 = vector.broadcast %73 : f32 to vector<8x8xf32>
    %75 = arith.mulf %72, %74 : vector<8x8xf32>
    %76 = arith.addf %51, %75 : vector<8x8xf32>
    %77 = vector.extract_strided_slice %58 {offsets = [3, 0, 0], sizes = [1, 8, 8], strides = [1, 1, 1]} : vector<4x8x8xf32> to vector<1x8x8xf32>
    %78 = vector.shape_cast %77 : vector<1x8x8xf32> to vector<8x8xf32>
    %c1_22 = arith.constant 1 : index
    %c3_23 = arith.constant 3 : index
    %79 = memref.load %arg2[%c1_22, %c3_23] : memref<9x4xf32, #tpu.memory_space<smem>>
    %80 = vector.broadcast %79 : f32 to vector<8x8xf32>
    %81 = arith.mulf %78, %80 : vector<8x8xf32>
    %82 = arith.addf %57, %81 : vector<8x8xf32>
    %83 = vector.extract_strided_slice %32 {offsets = [0, 0, 2], sizes = [4, 8, 8], strides = [1, 1, 1]} : vector<4x8x10xf32> to vector<4x8x8xf32>
    %84 = vector.extract_strided_slice %83 {offsets = [0, 0, 0], sizes = [1, 8, 8], strides = [1, 1, 1]} : vector<4x8x8xf32> to vector<1x8x8xf32>
    %85 = vector.shape_cast %84 : vector<1x8x8xf32> to vector<8x8xf32>
    %c2_24 = arith.constant 2 : index
    %c0_25 = arith.constant 0 : index
    %86 = memref.load %arg2[%c2_24, %c0_25] : memref<9x4xf32, #tpu.memory_space<smem>>
    %87 = vector.broadcast %86 : f32 to vector<8x8xf32>
    %88 = arith.mulf %85, %87 : vector<8x8xf32>
    %89 = arith.addf %64, %88 : vector<8x8xf32>
    %90 = vector.extract_strided_slice %83 {offsets = [1, 0, 0], sizes = [1, 8, 8], strides = [1, 1, 1]} : vector<4x8x8xf32> to vector<1x8x8xf32>
    %91 = vector.shape_cast %90 : vector<1x8x8xf32> to vector<8x8xf32>
    %c2_26 = arith.constant 2 : index
    %c1_27 = arith.constant 1 : index
    %92 = memref.load %arg2[%c2_26, %c1_27] : memref<9x4xf32, #tpu.memory_space<smem>>
    %93 = vector.broadcast %92 : f32 to vector<8x8xf32>
    %94 = arith.mulf %91, %93 : vector<8x8xf32>
    %95 = arith.addf %70, %94 : vector<8x8xf32>
    %96 = vector.extract_strided_slice %83 {offsets = [2, 0, 0], sizes = [1, 8, 8], strides = [1, 1, 1]} : vector<4x8x8xf32> to vector<1x8x8xf32>
    %97 = vector.shape_cast %96 : vector<1x8x8xf32> to vector<8x8xf32>
    %c2_28 = arith.constant 2 : index
    %c2_29 = arith.constant 2 : index
    %98 = memref.load %arg2[%c2_28, %c2_29] : memref<9x4xf32, #tpu.memory_space<smem>>
    %99 = vector.broadcast %98 : f32 to vector<8x8xf32>
    %100 = arith.mulf %97, %99 : vector<8x8xf32>
    %101 = arith.addf %76, %100 : vector<8x8xf32>
    %102 = vector.extract_strided_slice %83 {offsets = [3, 0, 0], sizes = [1, 8, 8], strides = [1, 1, 1]} : vector<4x8x8xf32> to vector<1x8x8xf32>
    %103 = vector.shape_cast %102 : vector<1x8x8xf32> to vector<8x8xf32>
    %c2_30 = arith.constant 2 : index
    %c3_31 = arith.constant 3 : index
    %104 = memref.load %arg2[%c2_30, %c3_31] : memref<9x4xf32, #tpu.memory_space<smem>>
    %105 = vector.broadcast %104 : f32 to vector<8x8xf32>
    %106 = arith.mulf %103, %105 : vector<8x8xf32>
    %107 = arith.addf %82, %106 : vector<8x8xf32>
    %108 = vector.extract_strided_slice %26 {offsets = [0, 1, 0], sizes = [4, 8, 8], strides = [1, 1, 1]} : vector<4x10x8xf32> to vector<4x8x8xf32>
    %109 = tpu.concatenate %25, %108, %25 in 2 : vector<4x8x1xf32>, vector<4x8x8xf32>, vector<4x8x1xf32> -> vector<4x8x10xf32>
    %110 = vector.extract_strided_slice %109 {offsets = [0, 0, 0], sizes = [4, 8, 8], strides = [1, 1, 1]} : vector<4x8x10xf32> to vector<4x8x8xf32>
    %111 = vector.extract_strided_slice %110 {offsets = [0, 0, 0], sizes = [1, 8, 8], strides = [1, 1, 1]} : vector<4x8x8xf32> to vector<1x8x8xf32>
    %112 = vector.shape_cast %111 : vector<1x8x8xf32> to vector<8x8xf32>
    %c3_32 = arith.constant 3 : index
    %c0_33 = arith.constant 0 : index
    %113 = memref.load %arg2[%c3_32, %c0_33] : memref<9x4xf32, #tpu.memory_space<smem>>
    %114 = vector.broadcast %113 : f32 to vector<8x8xf32>
    %115 = arith.mulf %112, %114 : vector<8x8xf32>
    %116 = arith.addf %89, %115 : vector<8x8xf32>
    %117 = vector.extract_strided_slice %110 {offsets = [1, 0, 0], sizes = [1, 8, 8], strides = [1, 1, 1]} : vector<4x8x8xf32> to vector<1x8x8xf32>
    %118 = vector.shape_cast %117 : vector<1x8x8xf32> to vector<8x8xf32>
    %c3_34 = arith.constant 3 : index
    %c1_35 = arith.constant 1 : index
    %119 = memref.load %arg2[%c3_34, %c1_35] : memref<9x4xf32, #tpu.memory_space<smem>>
    %120 = vector.broadcast %119 : f32 to vector<8x8xf32>
    %121 = arith.mulf %118, %120 : vector<8x8xf32>
    %122 = arith.addf %95, %121 : vector<8x8xf32>
    %123 = vector.extract_strided_slice %110 {offsets = [2, 0, 0], sizes = [1, 8, 8], strides = [1, 1, 1]} : vector<4x8x8xf32> to vector<1x8x8xf32>
    %124 = vector.shape_cast %123 : vector<1x8x8xf32> to vector<8x8xf32>
    %c3_36 = arith.constant 3 : index
    %c2_37 = arith.constant 2 : index
    %125 = memref.load %arg2[%c3_36, %c2_37] : memref<9x4xf32, #tpu.memory_space<smem>>
    %126 = vector.broadcast %125 : f32 to vector<8x8xf32>
    %127 = arith.mulf %124, %126 : vector<8x8xf32>
    %128 = arith.addf %101, %127 : vector<8x8xf32>
    %129 = vector.extract_strided_slice %110 {offsets = [3, 0, 0], sizes = [1, 8, 8], strides = [1, 1, 1]} : vector<4x8x8xf32> to vector<1x8x8xf32>
    %130 = vector.shape_cast %129 : vector<1x8x8xf32> to vector<8x8xf32>
    %c3_38 = arith.constant 3 : index
    %c3_39 = arith.constant 3 : index
    %131 = memref.load %arg2[%c3_38, %c3_39] : memref<9x4xf32, #tpu.memory_space<smem>>
    %132 = vector.broadcast %131 : f32 to vector<8x8xf32>
    %133 = arith.mulf %130, %132 : vector<8x8xf32>
    %134 = arith.addf %107, %133 : vector<8x8xf32>
    %135 = vector.extract_strided_slice %109 {offsets = [0, 0, 1], sizes = [4, 8, 8], strides = [1, 1, 1]} : vector<4x8x10xf32> to vector<4x8x8xf32>
    %136 = vector.extract_strided_slice %135 {offsets = [0, 0, 0], sizes = [1, 8, 8], strides = [1, 1, 1]} : vector<4x8x8xf32> to vector<1x8x8xf32>
    %137 = vector.shape_cast %136 : vector<1x8x8xf32> to vector<8x8xf32>
    %c4 = arith.constant 4 : index
    %c0_40 = arith.constant 0 : index
    %138 = memref.load %arg2[%c4, %c0_40] : memref<9x4xf32, #tpu.memory_space<smem>>
    %139 = vector.broadcast %138 : f32 to vector<8x8xf32>
    %140 = arith.mulf %137, %139 : vector<8x8xf32>
    %141 = arith.addf %116, %140 : vector<8x8xf32>
    %142 = vector.extract_strided_slice %135 {offsets = [1, 0, 0], sizes = [1, 8, 8], strides = [1, 1, 1]} : vector<4x8x8xf32> to vector<1x8x8xf32>
    %143 = vector.shape_cast %142 : vector<1x8x8xf32> to vector<8x8xf32>
    %c4_41 = arith.constant 4 : index
    %c1_42 = arith.constant 1 : index
    %144 = memref.load %arg2[%c4_41, %c1_42] : memref<9x4xf32, #tpu.memory_space<smem>>
    %145 = vector.broadcast %144 : f32 to vector<8x8xf32>
    %146 = arith.mulf %143, %145 : vector<8x8xf32>
    %147 = arith.addf %122, %146 : vector<8x8xf32>
    %148 = vector.extract_strided_slice %135 {offsets = [2, 0, 0], sizes = [1, 8, 8], strides = [1, 1, 1]} : vector<4x8x8xf32> to vector<1x8x8xf32>
    %149 = vector.shape_cast %148 : vector<1x8x8xf32> to vector<8x8xf32>
    %c4_43 = arith.constant 4 : index
    %c2_44 = arith.constant 2 : index
    %150 = memref.load %arg2[%c4_43, %c2_44] : memref<9x4xf32, #tpu.memory_space<smem>>
    %151 = vector.broadcast %150 : f32 to vector<8x8xf32>
    %152 = arith.mulf %149, %151 : vector<8x8xf32>
    %153 = arith.addf %128, %152 : vector<8x8xf32>
    %154 = vector.extract_strided_slice %135 {offsets = [3, 0, 0], sizes = [1, 8, 8], strides = [1, 1, 1]} : vector<4x8x8xf32> to vector<1x8x8xf32>
    %155 = vector.shape_cast %154 : vector<1x8x8xf32> to vector<8x8xf32>
    %c4_45 = arith.constant 4 : index
    %c3_46 = arith.constant 3 : index
    %156 = memref.load %arg2[%c4_45, %c3_46] : memref<9x4xf32, #tpu.memory_space<smem>>
    %157 = vector.broadcast %156 : f32 to vector<8x8xf32>
    %158 = arith.mulf %155, %157 : vector<8x8xf32>
    %159 = arith.addf %134, %158 : vector<8x8xf32>
    %160 = vector.extract_strided_slice %109 {offsets = [0, 0, 2], sizes = [4, 8, 8], strides = [1, 1, 1]} : vector<4x8x10xf32> to vector<4x8x8xf32>
    %161 = vector.extract_strided_slice %160 {offsets = [0, 0, 0], sizes = [1, 8, 8], strides = [1, 1, 1]} : vector<4x8x8xf32> to vector<1x8x8xf32>
    %162 = vector.shape_cast %161 : vector<1x8x8xf32> to vector<8x8xf32>
    %c5 = arith.constant 5 : index
    %c0_47 = arith.constant 0 : index
    %163 = memref.load %arg2[%c5, %c0_47] : memref<9x4xf32, #tpu.memory_space<smem>>
    %164 = vector.broadcast %163 : f32 to vector<8x8xf32>
    %165 = arith.mulf %162, %164 : vector<8x8xf32>
    %166 = arith.addf %141, %165 : vector<8x8xf32>
    %167 = vector.extract_strided_slice %160 {offsets = [1, 0, 0], sizes = [1, 8, 8], strides = [1, 1, 1]} : vector<4x8x8xf32> to vector<1x8x8xf32>
    %168 = vector.shape_cast %167 : vector<1x8x8xf32> to vector<8x8xf32>
    %c5_48 = arith.constant 5 : index
    %c1_49 = arith.constant 1 : index
    %169 = memref.load %arg2[%c5_48, %c1_49] : memref<9x4xf32, #tpu.memory_space<smem>>
    %170 = vector.broadcast %169 : f32 to vector<8x8xf32>
    %171 = arith.mulf %168, %170 : vector<8x8xf32>
    %172 = arith.addf %147, %171 : vector<8x8xf32>
    %173 = vector.extract_strided_slice %160 {offsets = [2, 0, 0], sizes = [1, 8, 8], strides = [1, 1, 1]} : vector<4x8x8xf32> to vector<1x8x8xf32>
    %174 = vector.shape_cast %173 : vector<1x8x8xf32> to vector<8x8xf32>
    %c5_50 = arith.constant 5 : index
    %c2_51 = arith.constant 2 : index
    %175 = memref.load %arg2[%c5_50, %c2_51] : memref<9x4xf32, #tpu.memory_space<smem>>
    %176 = vector.broadcast %175 : f32 to vector<8x8xf32>
    %177 = arith.mulf %174, %176 : vector<8x8xf32>
    %178 = arith.addf %153, %177 : vector<8x8xf32>
    %179 = vector.extract_strided_slice %160 {offsets = [3, 0, 0], sizes = [1, 8, 8], strides = [1, 1, 1]} : vector<4x8x8xf32> to vector<1x8x8xf32>
    %180 = vector.shape_cast %179 : vector<1x8x8xf32> to vector<8x8xf32>
    %c5_52 = arith.constant 5 : index
    %c3_53 = arith.constant 3 : index
    %181 = memref.load %arg2[%c5_52, %c3_53] : memref<9x4xf32, #tpu.memory_space<smem>>
    %182 = vector.broadcast %181 : f32 to vector<8x8xf32>
    %183 = arith.mulf %180, %182 : vector<8x8xf32>
    %184 = arith.addf %159, %183 : vector<8x8xf32>
    %185 = vector.extract_strided_slice %26 {offsets = [0, 2, 0], sizes = [4, 8, 8], strides = [1, 1, 1]} : vector<4x10x8xf32> to vector<4x8x8xf32>
    %186 = tpu.concatenate %25, %185, %25 in 2 : vector<4x8x1xf32>, vector<4x8x8xf32>, vector<4x8x1xf32> -> vector<4x8x10xf32>
    %187 = vector.extract_strided_slice %186 {offsets = [0, 0, 0], sizes = [4, 8, 8], strides = [1, 1, 1]} : vector<4x8x10xf32> to vector<4x8x8xf32>
    %188 = vector.extract_strided_slice %187 {offsets = [0, 0, 0], sizes = [1, 8, 8], strides = [1, 1, 1]} : vector<4x8x8xf32> to vector<1x8x8xf32>
    %189 = vector.shape_cast %188 : vector<1x8x8xf32> to vector<8x8xf32>
    %c6 = arith.constant 6 : index
    %c0_54 = arith.constant 0 : index
    %190 = memref.load %arg2[%c6, %c0_54] : memref<9x4xf32, #tpu.memory_space<smem>>
    %191 = vector.broadcast %190 : f32 to vector<8x8xf32>
    %192 = arith.mulf %189, %191 : vector<8x8xf32>
    %193 = arith.addf %166, %192 : vector<8x8xf32>
    %194 = vector.extract_strided_slice %187 {offsets = [1, 0, 0], sizes = [1, 8, 8], strides = [1, 1, 1]} : vector<4x8x8xf32> to vector<1x8x8xf32>
    %195 = vector.shape_cast %194 : vector<1x8x8xf32> to vector<8x8xf32>
    %c6_55 = arith.constant 6 : index
    %c1_56 = arith.constant 1 : index
    %196 = memref.load %arg2[%c6_55, %c1_56] : memref<9x4xf32, #tpu.memory_space<smem>>
    %197 = vector.broadcast %196 : f32 to vector<8x8xf32>
    %198 = arith.mulf %195, %197 : vector<8x8xf32>
    %199 = arith.addf %172, %198 : vector<8x8xf32>
    %200 = vector.extract_strided_slice %187 {offsets = [2, 0, 0], sizes = [1, 8, 8], strides = [1, 1, 1]} : vector<4x8x8xf32> to vector<1x8x8xf32>
    %201 = vector.shape_cast %200 : vector<1x8x8xf32> to vector<8x8xf32>
    %c6_57 = arith.constant 6 : index
    %c2_58 = arith.constant 2 : index
    %202 = memref.load %arg2[%c6_57, %c2_58] : memref<9x4xf32, #tpu.memory_space<smem>>
    %203 = vector.broadcast %202 : f32 to vector<8x8xf32>
    %204 = arith.mulf %201, %203 : vector<8x8xf32>
    %205 = arith.addf %178, %204 : vector<8x8xf32>
    %206 = vector.extract_strided_slice %187 {offsets = [3, 0, 0], sizes = [1, 8, 8], strides = [1, 1, 1]} : vector<4x8x8xf32> to vector<1x8x8xf32>
    %207 = vector.shape_cast %206 : vector<1x8x8xf32> to vector<8x8xf32>
    %c6_59 = arith.constant 6 : index
    %c3_60 = arith.constant 3 : index
    %208 = memref.load %arg2[%c6_59, %c3_60] : memref<9x4xf32, #tpu.memory_space<smem>>
    %209 = vector.broadcast %208 : f32 to vector<8x8xf32>
    %210 = arith.mulf %207, %209 : vector<8x8xf32>
    %211 = arith.addf %184, %210 : vector<8x8xf32>
    %212 = vector.extract_strided_slice %186 {offsets = [0, 0, 1], sizes = [4, 8, 8], strides = [1, 1, 1]} : vector<4x8x10xf32> to vector<4x8x8xf32>
    %213 = vector.extract_strided_slice %212 {offsets = [0, 0, 0], sizes = [1, 8, 8], strides = [1, 1, 1]} : vector<4x8x8xf32> to vector<1x8x8xf32>
    %214 = vector.shape_cast %213 : vector<1x8x8xf32> to vector<8x8xf32>
    %c7 = arith.constant 7 : index
    %c0_61 = arith.constant 0 : index
    %215 = memref.load %arg2[%c7, %c0_61] : memref<9x4xf32, #tpu.memory_space<smem>>
    %216 = vector.broadcast %215 : f32 to vector<8x8xf32>
    %217 = arith.mulf %214, %216 : vector<8x8xf32>
    %218 = arith.addf %193, %217 : vector<8x8xf32>
    %219 = vector.extract_strided_slice %212 {offsets = [1, 0, 0], sizes = [1, 8, 8], strides = [1, 1, 1]} : vector<4x8x8xf32> to vector<1x8x8xf32>
    %220 = vector.shape_cast %219 : vector<1x8x8xf32> to vector<8x8xf32>
    %c7_62 = arith.constant 7 : index
    %c1_63 = arith.constant 1 : index
    %221 = memref.load %arg2[%c7_62, %c1_63] : memref<9x4xf32, #tpu.memory_space<smem>>
    %222 = vector.broadcast %221 : f32 to vector<8x8xf32>
    %223 = arith.mulf %220, %222 : vector<8x8xf32>
    %224 = arith.addf %199, %223 : vector<8x8xf32>
    %225 = vector.extract_strided_slice %212 {offsets = [2, 0, 0], sizes = [1, 8, 8], strides = [1, 1, 1]} : vector<4x8x8xf32> to vector<1x8x8xf32>
    %226 = vector.shape_cast %225 : vector<1x8x8xf32> to vector<8x8xf32>
    %c7_64 = arith.constant 7 : index
    %c2_65 = arith.constant 2 : index
    %227 = memref.load %arg2[%c7_64, %c2_65] : memref<9x4xf32, #tpu.memory_space<smem>>
    %228 = vector.broadcast %227 : f32 to vector<8x8xf32>
    %229 = arith.mulf %226, %228 : vector<8x8xf32>
    %230 = arith.addf %205, %229 : vector<8x8xf32>
    %231 = vector.extract_strided_slice %212 {offsets = [3, 0, 0], sizes = [1, 8, 8], strides = [1, 1, 1]} : vector<4x8x8xf32> to vector<1x8x8xf32>
    %232 = vector.shape_cast %231 : vector<1x8x8xf32> to vector<8x8xf32>
    %c7_66 = arith.constant 7 : index
    %c3_67 = arith.constant 3 : index
    %233 = memref.load %arg2[%c7_66, %c3_67] : memref<9x4xf32, #tpu.memory_space<smem>>
    %234 = vector.broadcast %233 : f32 to vector<8x8xf32>
    %235 = arith.mulf %232, %234 : vector<8x8xf32>
    %236 = arith.addf %211, %235 : vector<8x8xf32>
    %237 = vector.extract_strided_slice %186 {offsets = [0, 0, 2], sizes = [4, 8, 8], strides = [1, 1, 1]} : vector<4x8x10xf32> to vector<4x8x8xf32>
    %238 = vector.extract_strided_slice %237 {offsets = [0, 0, 0], sizes = [1, 8, 8], strides = [1, 1, 1]} : vector<4x8x8xf32> to vector<1x8x8xf32>
    %239 = vector.shape_cast %238 : vector<1x8x8xf32> to vector<8x8xf32>
    %c8 = arith.constant 8 : index
    %c0_68 = arith.constant 0 : index
    %240 = memref.load %arg2[%c8, %c0_68] : memref<9x4xf32, #tpu.memory_space<smem>>
    %241 = vector.broadcast %240 : f32 to vector<8x8xf32>
    %242 = arith.mulf %239, %241 : vector<8x8xf32>
    %243 = arith.addf %218, %242 : vector<8x8xf32>
    %244 = vector.extract_strided_slice %237 {offsets = [1, 0, 0], sizes = [1, 8, 8], strides = [1, 1, 1]} : vector<4x8x8xf32> to vector<1x8x8xf32>
    %245 = vector.shape_cast %244 : vector<1x8x8xf32> to vector<8x8xf32>
    %c8_69 = arith.constant 8 : index
    %c1_70 = arith.constant 1 : index
    %246 = memref.load %arg2[%c8_69, %c1_70] : memref<9x4xf32, #tpu.memory_space<smem>>
    %247 = vector.broadcast %246 : f32 to vector<8x8xf32>
    %248 = arith.mulf %245, %247 : vector<8x8xf32>
    %249 = arith.addf %224, %248 : vector<8x8xf32>
    %250 = vector.extract_strided_slice %237 {offsets = [2, 0, 0], sizes = [1, 8, 8], strides = [1, 1, 1]} : vector<4x8x8xf32> to vector<1x8x8xf32>
    %251 = vector.shape_cast %250 : vector<1x8x8xf32> to vector<8x8xf32>
    %c8_71 = arith.constant 8 : index
    %c2_72 = arith.constant 2 : index
    %252 = memref.load %arg2[%c8_71, %c2_72] : memref<9x4xf32, #tpu.memory_space<smem>>
    %253 = vector.broadcast %252 : f32 to vector<8x8xf32>
    %254 = arith.mulf %251, %253 : vector<8x8xf32>
    %255 = arith.addf %230, %254 : vector<8x8xf32>
    %256 = vector.extract_strided_slice %237 {offsets = [3, 0, 0], sizes = [1, 8, 8], strides = [1, 1, 1]} : vector<4x8x8xf32> to vector<1x8x8xf32>
    %257 = vector.shape_cast %256 : vector<1x8x8xf32> to vector<8x8xf32>
    %c8_73 = arith.constant 8 : index
    %c3_74 = arith.constant 3 : index
    %258 = memref.load %arg2[%c8_73, %c3_74] : memref<9x4xf32, #tpu.memory_space<smem>>
    %259 = vector.broadcast %258 : f32 to vector<8x8xf32>
    %260 = arith.mulf %257, %259 : vector<8x8xf32>
    %261 = arith.addf %236, %260 : vector<8x8xf32>
    %c0_75 = arith.constant 0 : index
    %c0_76 = arith.constant 0 : index
    %262 = memref.load %arg3[%c0_75, %c0_76] : memref<4x8xf32, #tpu.memory_space<smem>>
    %263 = vector.broadcast %262 : f32 to vector<8x8xf32>
    %264 = arith.mulf %243, %263 : vector<8x8xf32>
    %c1_77 = arith.constant 1 : index
    %c0_78 = arith.constant 0 : index
    %265 = memref.load %arg3[%c1_77, %c0_78] : memref<4x8xf32, #tpu.memory_space<smem>>
    %266 = vector.broadcast %265 : f32 to vector<8x8xf32>
    %267 = arith.mulf %249, %266 : vector<8x8xf32>
    %268 = arith.addf %264, %267 : vector<8x8xf32>
    %c2_79 = arith.constant 2 : index
    %c0_80 = arith.constant 0 : index
    %269 = memref.load %arg3[%c2_79, %c0_80] : memref<4x8xf32, #tpu.memory_space<smem>>
    %270 = vector.broadcast %269 : f32 to vector<8x8xf32>
    %271 = arith.mulf %255, %270 : vector<8x8xf32>
    %272 = arith.addf %268, %271 : vector<8x8xf32>
    %c3_81 = arith.constant 3 : index
    %c0_82 = arith.constant 0 : index
    %273 = memref.load %arg3[%c3_81, %c0_82] : memref<4x8xf32, #tpu.memory_space<smem>>
    %274 = vector.broadcast %273 : f32 to vector<8x8xf32>
    %275 = arith.mulf %261, %274 : vector<8x8xf32>
    %276 = arith.addf %272, %275 : vector<8x8xf32>
    %c0_83 = arith.constant 0 : index
    %277 = memref.load %arg4[%c0_83] : memref<8xf32, #tpu.memory_space<smem>>
    %278 = vector.broadcast %277 : f32 to vector<8x8xf32>
    %279 = arith.addf %276, %278 : vector<8x8xf32>
    %cst_84 = arith.constant 0.000000e+00 : f32
    %280 = vector.broadcast %cst_84 : f32 to vector<8x8xf32>
    %281 = arith.maximumf %279, %280 : vector<8x8xf32>
    %c0_85 = arith.constant 0 : index
    %c1_86 = arith.constant 1 : index
    %282 = memref.load %arg3[%c0_85, %c1_86] : memref<4x8xf32, #tpu.memory_space<smem>>
    %283 = vector.broadcast %282 : f32 to vector<8x8xf32>
    %284 = arith.mulf %243, %283 : vector<8x8xf32>
    %c1_87 = arith.constant 1 : index
    %c1_88 = arith.constant 1 : index
    %285 = memref.load %arg3[%c1_87, %c1_88] : memref<4x8xf32, #tpu.memory_space<smem>>
    %286 = vector.broadcast %285 : f32 to vector<8x8xf32>
    %287 = arith.mulf %249, %286 : vector<8x8xf32>
    %288 = arith.addf %284, %287 : vector<8x8xf32>
    %c2_89 = arith.constant 2 : index
    %c1_90 = arith.constant 1 : index
    %289 = memref.load %arg3[%c2_89, %c1_90] : memref<4x8xf32, #tpu.memory_space<smem>>
    %290 = vector.broadcast %289 : f32 to vector<8x8xf32>
    %291 = arith.mulf %255, %290 : vector<8x8xf32>
    %292 = arith.addf %288, %291 : vector<8x8xf32>
    %c3_91 = arith.constant 3 : index
    %c1_92 = arith.constant 1 : index
    %293 = memref.load %arg3[%c3_91, %c1_92] : memref<4x8xf32, #tpu.memory_space<smem>>
    %294 = vector.broadcast %293 : f32 to vector<8x8xf32>
    %295 = arith.mulf %261, %294 : vector<8x8xf32>
    %296 = arith.addf %292, %295 : vector<8x8xf32>
    %c1_93 = arith.constant 1 : index
    %297 = memref.load %arg4[%c1_93] : memref<8xf32, #tpu.memory_space<smem>>
    %298 = vector.broadcast %297 : f32 to vector<8x8xf32>
    %299 = arith.addf %296, %298 : vector<8x8xf32>
    %cst_94 = arith.constant 0.000000e+00 : f32
    %300 = vector.broadcast %cst_94 : f32 to vector<8x8xf32>
    %301 = arith.maximumf %299, %300 : vector<8x8xf32>
    %c0_95 = arith.constant 0 : index
    %c2_96 = arith.constant 2 : index
    %302 = memref.load %arg3[%c0_95, %c2_96] : memref<4x8xf32, #tpu.memory_space<smem>>
    %303 = vector.broadcast %302 : f32 to vector<8x8xf32>
    %304 = arith.mulf %243, %303 : vector<8x8xf32>
    %c1_97 = arith.constant 1 : index
    %c2_98 = arith.constant 2 : index
    %305 = memref.load %arg3[%c1_97, %c2_98] : memref<4x8xf32, #tpu.memory_space<smem>>
    %306 = vector.broadcast %305 : f32 to vector<8x8xf32>
    %307 = arith.mulf %249, %306 : vector<8x8xf32>
    %308 = arith.addf %304, %307 : vector<8x8xf32>
    %c2_99 = arith.constant 2 : index
    %c2_100 = arith.constant 2 : index
    %309 = memref.load %arg3[%c2_99, %c2_100] : memref<4x8xf32, #tpu.memory_space<smem>>
    %310 = vector.broadcast %309 : f32 to vector<8x8xf32>
    %311 = arith.mulf %255, %310 : vector<8x8xf32>
    %312 = arith.addf %308, %311 : vector<8x8xf32>
    %c3_101 = arith.constant 3 : index
    %c2_102 = arith.constant 2 : index
    %313 = memref.load %arg3[%c3_101, %c2_102] : memref<4x8xf32, #tpu.memory_space<smem>>
    %314 = vector.broadcast %313 : f32 to vector<8x8xf32>
    %315 = arith.mulf %261, %314 : vector<8x8xf32>
    %316 = arith.addf %312, %315 : vector<8x8xf32>
    %c2_103 = arith.constant 2 : index
    %317 = memref.load %arg4[%c2_103] : memref<8xf32, #tpu.memory_space<smem>>
    %318 = vector.broadcast %317 : f32 to vector<8x8xf32>
    %319 = arith.addf %316, %318 : vector<8x8xf32>
    %cst_104 = arith.constant 0.000000e+00 : f32
    %320 = vector.broadcast %cst_104 : f32 to vector<8x8xf32>
    %321 = arith.maximumf %319, %320 : vector<8x8xf32>
    %c0_105 = arith.constant 0 : index
    %c3_106 = arith.constant 3 : index
    %322 = memref.load %arg3[%c0_105, %c3_106] : memref<4x8xf32, #tpu.memory_space<smem>>
    %323 = vector.broadcast %322 : f32 to vector<8x8xf32>
    %324 = arith.mulf %243, %323 : vector<8x8xf32>
    %c1_107 = arith.constant 1 : index
    %c3_108 = arith.constant 3 : index
    %325 = memref.load %arg3[%c1_107, %c3_108] : memref<4x8xf32, #tpu.memory_space<smem>>
    %326 = vector.broadcast %325 : f32 to vector<8x8xf32>
    %327 = arith.mulf %249, %326 : vector<8x8xf32>
    %328 = arith.addf %324, %327 : vector<8x8xf32>
    %c2_109 = arith.constant 2 : index
    %c3_110 = arith.constant 3 : index
    %329 = memref.load %arg3[%c2_109, %c3_110] : memref<4x8xf32, #tpu.memory_space<smem>>
    %330 = vector.broadcast %329 : f32 to vector<8x8xf32>
    %331 = arith.mulf %255, %330 : vector<8x8xf32>
    %332 = arith.addf %328, %331 : vector<8x8xf32>
    %c3_111 = arith.constant 3 : index
    %c3_112 = arith.constant 3 : index
    %333 = memref.load %arg3[%c3_111, %c3_112] : memref<4x8xf32, #tpu.memory_space<smem>>
    %334 = vector.broadcast %333 : f32 to vector<8x8xf32>
    %335 = arith.mulf %261, %334 : vector<8x8xf32>
    %336 = arith.addf %332, %335 : vector<8x8xf32>
    %c3_113 = arith.constant 3 : index
    %337 = memref.load %arg4[%c3_113] : memref<8xf32, #tpu.memory_space<smem>>
    %338 = vector.broadcast %337 : f32 to vector<8x8xf32>
    %339 = arith.addf %336, %338 : vector<8x8xf32>
    %cst_114 = arith.constant 0.000000e+00 : f32
    %340 = vector.broadcast %cst_114 : f32 to vector<8x8xf32>
    %341 = arith.maximumf %339, %340 : vector<8x8xf32>
    %c0_115 = arith.constant 0 : index
    %c4_116 = arith.constant 4 : index
    %342 = memref.load %arg3[%c0_115, %c4_116] : memref<4x8xf32, #tpu.memory_space<smem>>
    %343 = vector.broadcast %342 : f32 to vector<8x8xf32>
    %344 = arith.mulf %243, %343 : vector<8x8xf32>
    %c1_117 = arith.constant 1 : index
    %c4_118 = arith.constant 4 : index
    %345 = memref.load %arg3[%c1_117, %c4_118] : memref<4x8xf32, #tpu.memory_space<smem>>
    %346 = vector.broadcast %345 : f32 to vector<8x8xf32>
    %347 = arith.mulf %249, %346 : vector<8x8xf32>
    %348 = arith.addf %344, %347 : vector<8x8xf32>
    %c2_119 = arith.constant 2 : index
    %c4_120 = arith.constant 4 : index
    %349 = memref.load %arg3[%c2_119, %c4_120] : memref<4x8xf32, #tpu.memory_space<smem>>
    %350 = vector.broadcast %349 : f32 to vector<8x8xf32>
    %351 = arith.mulf %255, %350 : vector<8x8xf32>
    %352 = arith.addf %348, %351 : vector<8x8xf32>
    %c3_121 = arith.constant 3 : index
    %c4_122 = arith.constant 4 : index
    %353 = memref.load %arg3[%c3_121, %c4_122] : memref<4x8xf32, #tpu.memory_space<smem>>
    %354 = vector.broadcast %353 : f32 to vector<8x8xf32>
    %355 = arith.mulf %261, %354 : vector<8x8xf32>
    %356 = arith.addf %352, %355 : vector<8x8xf32>
    %c4_123 = arith.constant 4 : index
    %357 = memref.load %arg4[%c4_123] : memref<8xf32, #tpu.memory_space<smem>>
    %358 = vector.broadcast %357 : f32 to vector<8x8xf32>
    %359 = arith.addf %356, %358 : vector<8x8xf32>
    %cst_124 = arith.constant 0.000000e+00 : f32
    %360 = vector.broadcast %cst_124 : f32 to vector<8x8xf32>
    %361 = arith.maximumf %359, %360 : vector<8x8xf32>
    %c0_125 = arith.constant 0 : index
    %c5_126 = arith.constant 5 : index
    %362 = memref.load %arg3[%c0_125, %c5_126] : memref<4x8xf32, #tpu.memory_space<smem>>
    %363 = vector.broadcast %362 : f32 to vector<8x8xf32>
    %364 = arith.mulf %243, %363 : vector<8x8xf32>
    %c1_127 = arith.constant 1 : index
    %c5_128 = arith.constant 5 : index
    %365 = memref.load %arg3[%c1_127, %c5_128] : memref<4x8xf32, #tpu.memory_space<smem>>
    %366 = vector.broadcast %365 : f32 to vector<8x8xf32>
    %367 = arith.mulf %249, %366 : vector<8x8xf32>
    %368 = arith.addf %364, %367 : vector<8x8xf32>
    %c2_129 = arith.constant 2 : index
    %c5_130 = arith.constant 5 : index
    %369 = memref.load %arg3[%c2_129, %c5_130] : memref<4x8xf32, #tpu.memory_space<smem>>
    %370 = vector.broadcast %369 : f32 to vector<8x8xf32>
    %371 = arith.mulf %255, %370 : vector<8x8xf32>
    %372 = arith.addf %368, %371 : vector<8x8xf32>
    %c3_131 = arith.constant 3 : index
    %c5_132 = arith.constant 5 : index
    %373 = memref.load %arg3[%c3_131, %c5_132] : memref<4x8xf32, #tpu.memory_space<smem>>
    %374 = vector.broadcast %373 : f32 to vector<8x8xf32>
    %375 = arith.mulf %261, %374 : vector<8x8xf32>
    %376 = arith.addf %372, %375 : vector<8x8xf32>
    %c5_133 = arith.constant 5 : index
    %377 = memref.load %arg4[%c5_133] : memref<8xf32, #tpu.memory_space<smem>>
    %378 = vector.broadcast %377 : f32 to vector<8x8xf32>
    %379 = arith.addf %376, %378 : vector<8x8xf32>
    %cst_134 = arith.constant 0.000000e+00 : f32
    %380 = vector.broadcast %cst_134 : f32 to vector<8x8xf32>
    %381 = arith.maximumf %379, %380 : vector<8x8xf32>
    %c0_135 = arith.constant 0 : index
    %c6_136 = arith.constant 6 : index
    %382 = memref.load %arg3[%c0_135, %c6_136] : memref<4x8xf32, #tpu.memory_space<smem>>
    %383 = vector.broadcast %382 : f32 to vector<8x8xf32>
    %384 = arith.mulf %243, %383 : vector<8x8xf32>
    %c1_137 = arith.constant 1 : index
    %c6_138 = arith.constant 6 : index
    %385 = memref.load %arg3[%c1_137, %c6_138] : memref<4x8xf32, #tpu.memory_space<smem>>
    %386 = vector.broadcast %385 : f32 to vector<8x8xf32>
    %387 = arith.mulf %249, %386 : vector<8x8xf32>
    %388 = arith.addf %384, %387 : vector<8x8xf32>
    %c2_139 = arith.constant 2 : index
    %c6_140 = arith.constant 6 : index
    %389 = memref.load %arg3[%c2_139, %c6_140] : memref<4x8xf32, #tpu.memory_space<smem>>
    %390 = vector.broadcast %389 : f32 to vector<8x8xf32>
    %391 = arith.mulf %255, %390 : vector<8x8xf32>
    %392 = arith.addf %388, %391 : vector<8x8xf32>
    %c3_141 = arith.constant 3 : index
    %c6_142 = arith.constant 6 : index
    %393 = memref.load %arg3[%c3_141, %c6_142] : memref<4x8xf32, #tpu.memory_space<smem>>
    %394 = vector.broadcast %393 : f32 to vector<8x8xf32>
    %395 = arith.mulf %261, %394 : vector<8x8xf32>
    %396 = arith.addf %392, %395 : vector<8x8xf32>
    %c6_143 = arith.constant 6 : index
    %397 = memref.load %arg4[%c6_143] : memref<8xf32, #tpu.memory_space<smem>>
    %398 = vector.broadcast %397 : f32 to vector<8x8xf32>
    %399 = arith.addf %396, %398 : vector<8x8xf32>
    %cst_144 = arith.constant 0.000000e+00 : f32
    %400 = vector.broadcast %cst_144 : f32 to vector<8x8xf32>
    %401 = arith.maximumf %399, %400 : vector<8x8xf32>
    %c0_145 = arith.constant 0 : index
    %c7_146 = arith.constant 7 : index
    %402 = memref.load %arg3[%c0_145, %c7_146] : memref<4x8xf32, #tpu.memory_space<smem>>
    %403 = vector.broadcast %402 : f32 to vector<8x8xf32>
    %404 = arith.mulf %243, %403 : vector<8x8xf32>
    %c1_147 = arith.constant 1 : index
    %c7_148 = arith.constant 7 : index
    %405 = memref.load %arg3[%c1_147, %c7_148] : memref<4x8xf32, #tpu.memory_space<smem>>
    %406 = vector.broadcast %405 : f32 to vector<8x8xf32>
    %407 = arith.mulf %249, %406 : vector<8x8xf32>
    %408 = arith.addf %404, %407 : vector<8x8xf32>
    %c2_149 = arith.constant 2 : index
    %c7_150 = arith.constant 7 : index
    %409 = memref.load %arg3[%c2_149, %c7_150] : memref<4x8xf32, #tpu.memory_space<smem>>
    %410 = vector.broadcast %409 : f32 to vector<8x8xf32>
    %411 = arith.mulf %255, %410 : vector<8x8xf32>
    %412 = arith.addf %408, %411 : vector<8x8xf32>
    %c3_151 = arith.constant 3 : index
    %c7_152 = arith.constant 7 : index
    %413 = memref.load %arg3[%c3_151, %c7_152] : memref<4x8xf32, #tpu.memory_space<smem>>
    %414 = vector.broadcast %413 : f32 to vector<8x8xf32>
    %415 = arith.mulf %261, %414 : vector<8x8xf32>
    %416 = arith.addf %412, %415 : vector<8x8xf32>
    %c7_153 = arith.constant 7 : index
    %417 = memref.load %arg4[%c7_153] : memref<8xf32, #tpu.memory_space<smem>>
    %418 = vector.broadcast %417 : f32 to vector<8x8xf32>
    %419 = arith.addf %416, %418 : vector<8x8xf32>
    %cst_154 = arith.constant 0.000000e+00 : f32
    %420 = vector.broadcast %cst_154 : f32 to vector<8x8xf32>
    %421 = arith.maximumf %419, %420 : vector<8x8xf32>
    %422 = vector.shape_cast %281 : vector<8x8xf32> to vector<1x8x8xf32>
    %423 = vector.shape_cast %301 : vector<8x8xf32> to vector<1x8x8xf32>
    %424 = vector.shape_cast %321 : vector<8x8xf32> to vector<1x8x8xf32>
    %425 = vector.shape_cast %341 : vector<8x8xf32> to vector<1x8x8xf32>
    %426 = vector.shape_cast %361 : vector<8x8xf32> to vector<1x8x8xf32>
    %427 = vector.shape_cast %381 : vector<8x8xf32> to vector<1x8x8xf32>
    %428 = vector.shape_cast %401 : vector<8x8xf32> to vector<1x8x8xf32>
    %429 = vector.shape_cast %421 : vector<8x8xf32> to vector<1x8x8xf32>
    %430 = tpu.concatenate %422, %423, %424, %425, %426, %427, %428, %429 in 0 : vector<1x8x8xf32>, vector<1x8x8xf32>, vector<1x8x8xf32>, vector<1x8x8xf32>, vector<1x8x8xf32>, vector<1x8x8xf32>, vector<1x8x8xf32>, vector<1x8x8xf32> -> vector<8x8x8xf32>
    %cst_155 = arith.constant 0.000000e+00 : f32
    %431 = vector.broadcast %cst_155 : f32 to vector<8x1x8xf32>
    %cst_156 = arith.constant 0.000000e+00 : f32
    %432 = vector.broadcast %cst_156 : f32 to vector<8x8x1xf32>
    %433 = tpu.concatenate %431, %430, %431 in 1 : vector<8x1x8xf32>, vector<8x8x8xf32>, vector<8x1x8xf32> -> vector<8x10x8xf32>
    %cst_157 = arith.constant 0.000000e+00 : f32
    %434 = vector.broadcast %cst_157 : f32 to vector<8x8xf32>
    %cst_158 = arith.constant 0.000000e+00 : f32
    %435 = vector.broadcast %cst_158 : f32 to vector<8x8xf32>
    %cst_159 = arith.constant 0.000000e+00 : f32
    %436 = vector.broadcast %cst_159 : f32 to vector<8x8xf32>
    %cst_160 = arith.constant 0.000000e+00 : f32
    %437 = vector.broadcast %cst_160 : f32 to vector<8x8xf32>
    %cst_161 = arith.constant 0.000000e+00 : f32
    %438 = vector.broadcast %cst_161 : f32 to vector<8x8xf32>
    %cst_162 = arith.constant 0.000000e+00 : f32
    %439 = vector.broadcast %cst_162 : f32 to vector<8x8xf32>
    %cst_163 = arith.constant 0.000000e+00 : f32
    %440 = vector.broadcast %cst_163 : f32 to vector<8x8xf32>
    %cst_164 = arith.constant 0.000000e+00 : f32
    %441 = vector.broadcast %cst_164 : f32 to vector<8x8xf32>
    %442 = vector.extract_strided_slice %433 {offsets = [0, 0, 0], sizes = [8, 8, 8], strides = [1, 1, 1]} : vector<8x10x8xf32> to vector<8x8x8xf32>
    %443 = tpu.concatenate %432, %442, %432 in 2 : vector<8x8x1xf32>, vector<8x8x8xf32>, vector<8x8x1xf32> -> vector<8x8x10xf32>
    %444 = vector.extract_strided_slice %443 {offsets = [0, 0, 0], sizes = [8, 8, 8], strides = [1, 1, 1]} : vector<8x8x10xf32> to vector<8x8x8xf32>
    %445 = vector.extract_strided_slice %444 {offsets = [0, 0, 0], sizes = [1, 8, 8], strides = [1, 1, 1]} : vector<8x8x8xf32> to vector<1x8x8xf32>
    %446 = vector.shape_cast %445 : vector<1x8x8xf32> to vector<8x8xf32>
    %c0_165 = arith.constant 0 : index
    %c0_166 = arith.constant 0 : index
    %447 = memref.load %arg5[%c0_165, %c0_166] : memref<9x8xf32, #tpu.memory_space<smem>>
    %448 = vector.broadcast %447 : f32 to vector<8x8xf32>
    %449 = arith.mulf %446, %448 : vector<8x8xf32>
    %450 = arith.addf %434, %449 : vector<8x8xf32>
    %451 = vector.extract_strided_slice %444 {offsets = [1, 0, 0], sizes = [1, 8, 8], strides = [1, 1, 1]} : vector<8x8x8xf32> to vector<1x8x8xf32>
    %452 = vector.shape_cast %451 : vector<1x8x8xf32> to vector<8x8xf32>
    %c0_167 = arith.constant 0 : index
    %c1_168 = arith.constant 1 : index
    %453 = memref.load %arg5[%c0_167, %c1_168] : memref<9x8xf32, #tpu.memory_space<smem>>
    %454 = vector.broadcast %453 : f32 to vector<8x8xf32>
    %455 = arith.mulf %452, %454 : vector<8x8xf32>
    %456 = arith.addf %435, %455 : vector<8x8xf32>
    %457 = vector.extract_strided_slice %444 {offsets = [2, 0, 0], sizes = [1, 8, 8], strides = [1, 1, 1]} : vector<8x8x8xf32> to vector<1x8x8xf32>
    %458 = vector.shape_cast %457 : vector<1x8x8xf32> to vector<8x8xf32>
    %c0_169 = arith.constant 0 : index
    %c2_170 = arith.constant 2 : index
    %459 = memref.load %arg5[%c0_169, %c2_170] : memref<9x8xf32, #tpu.memory_space<smem>>
    %460 = vector.broadcast %459 : f32 to vector<8x8xf32>
    %461 = arith.mulf %458, %460 : vector<8x8xf32>
    %462 = arith.addf %436, %461 : vector<8x8xf32>
    %463 = vector.extract_strided_slice %444 {offsets = [3, 0, 0], sizes = [1, 8, 8], strides = [1, 1, 1]} : vector<8x8x8xf32> to vector<1x8x8xf32>
    %464 = vector.shape_cast %463 : vector<1x8x8xf32> to vector<8x8xf32>
    %c0_171 = arith.constant 0 : index
    %c3_172 = arith.constant 3 : index
    %465 = memref.load %arg5[%c0_171, %c3_172] : memref<9x8xf32, #tpu.memory_space<smem>>
    %466 = vector.broadcast %465 : f32 to vector<8x8xf32>
    %467 = arith.mulf %464, %466 : vector<8x8xf32>
    %468 = arith.addf %437, %467 : vector<8x8xf32>
    %469 = vector.extract_strided_slice %444 {offsets = [4, 0, 0], sizes = [1, 8, 8], strides = [1, 1, 1]} : vector<8x8x8xf32> to vector<1x8x8xf32>
    %470 = vector.shape_cast %469 : vector<1x8x8xf32> to vector<8x8xf32>
    %c0_173 = arith.constant 0 : index
    %c4_174 = arith.constant 4 : index
    %471 = memref.load %arg5[%c0_173, %c4_174] : memref<9x8xf32, #tpu.memory_space<smem>>
    %472 = vector.broadcast %471 : f32 to vector<8x8xf32>
    %473 = arith.mulf %470, %472 : vector<8x8xf32>
    %474 = arith.addf %438, %473 : vector<8x8xf32>
    %475 = vector.extract_strided_slice %444 {offsets = [5, 0, 0], sizes = [1, 8, 8], strides = [1, 1, 1]} : vector<8x8x8xf32> to vector<1x8x8xf32>
    %476 = vector.shape_cast %475 : vector<1x8x8xf32> to vector<8x8xf32>
    %c0_175 = arith.constant 0 : index
    %c5_176 = arith.constant 5 : index
    %477 = memref.load %arg5[%c0_175, %c5_176] : memref<9x8xf32, #tpu.memory_space<smem>>
    %478 = vector.broadcast %477 : f32 to vector<8x8xf32>
    %479 = arith.mulf %476, %478 : vector<8x8xf32>
    %480 = arith.addf %439, %479 : vector<8x8xf32>
    %481 = vector.extract_strided_slice %444 {offsets = [6, 0, 0], sizes = [1, 8, 8], strides = [1, 1, 1]} : vector<8x8x8xf32> to vector<1x8x8xf32>
    %482 = vector.shape_cast %481 : vector<1x8x8xf32> to vector<8x8xf32>
    %c0_177 = arith.constant 0 : index
    %c6_178 = arith.constant 6 : index
    %483 = memref.load %arg5[%c0_177, %c6_178] : memref<9x8xf32, #tpu.memory_space<smem>>
    %484 = vector.broadcast %483 : f32 to vector<8x8xf32>
    %485 = arith.mulf %482, %484 : vector<8x8xf32>
    %486 = arith.addf %440, %485 : vector<8x8xf32>
    %487 = vector.extract_strided_slice %444 {offsets = [7, 0, 0], sizes = [1, 8, 8], strides = [1, 1, 1]} : vector<8x8x8xf32> to vector<1x8x8xf32>
    %488 = vector.shape_cast %487 : vector<1x8x8xf32> to vector<8x8xf32>
    %c0_179 = arith.constant 0 : index
    %c7_180 = arith.constant 7 : index
    %489 = memref.load %arg5[%c0_179, %c7_180] : memref<9x8xf32, #tpu.memory_space<smem>>
    %490 = vector.broadcast %489 : f32 to vector<8x8xf32>
    %491 = arith.mulf %488, %490 : vector<8x8xf32>
    %492 = arith.addf %441, %491 : vector<8x8xf32>
    %493 = vector.extract_strided_slice %443 {offsets = [0, 0, 1], sizes = [8, 8, 8], strides = [1, 1, 1]} : vector<8x8x10xf32> to vector<8x8x8xf32>
    %494 = vector.extract_strided_slice %493 {offsets = [0, 0, 0], sizes = [1, 8, 8], strides = [1, 1, 1]} : vector<8x8x8xf32> to vector<1x8x8xf32>
    %495 = vector.shape_cast %494 : vector<1x8x8xf32> to vector<8x8xf32>
    %c1_181 = arith.constant 1 : index
    %c0_182 = arith.constant 0 : index
    %496 = memref.load %arg5[%c1_181, %c0_182] : memref<9x8xf32, #tpu.memory_space<smem>>
    %497 = vector.broadcast %496 : f32 to vector<8x8xf32>
    %498 = arith.mulf %495, %497 : vector<8x8xf32>
    %499 = arith.addf %450, %498 : vector<8x8xf32>
    %500 = vector.extract_strided_slice %493 {offsets = [1, 0, 0], sizes = [1, 8, 8], strides = [1, 1, 1]} : vector<8x8x8xf32> to vector<1x8x8xf32>
    %501 = vector.shape_cast %500 : vector<1x8x8xf32> to vector<8x8xf32>
    %c1_183 = arith.constant 1 : index
    %c1_184 = arith.constant 1 : index
    %502 = memref.load %arg5[%c1_183, %c1_184] : memref<9x8xf32, #tpu.memory_space<smem>>
    %503 = vector.broadcast %502 : f32 to vector<8x8xf32>
    %504 = arith.mulf %501, %503 : vector<8x8xf32>
    %505 = arith.addf %456, %504 : vector<8x8xf32>
    %506 = vector.extract_strided_slice %493 {offsets = [2, 0, 0], sizes = [1, 8, 8], strides = [1, 1, 1]} : vector<8x8x8xf32> to vector<1x8x8xf32>
    %507 = vector.shape_cast %506 : vector<1x8x8xf32> to vector<8x8xf32>
    %c1_185 = arith.constant 1 : index
    %c2_186 = arith.constant 2 : index
    %508 = memref.load %arg5[%c1_185, %c2_186] : memref<9x8xf32, #tpu.memory_space<smem>>
    %509 = vector.broadcast %508 : f32 to vector<8x8xf32>
    %510 = arith.mulf %507, %509 : vector<8x8xf32>
    %511 = arith.addf %462, %510 : vector<8x8xf32>
    %512 = vector.extract_strided_slice %493 {offsets = [3, 0, 0], sizes = [1, 8, 8], strides = [1, 1, 1]} : vector<8x8x8xf32> to vector<1x8x8xf32>
    %513 = vector.shape_cast %512 : vector<1x8x8xf32> to vector<8x8xf32>
    %c1_187 = arith.constant 1 : index
    %c3_188 = arith.constant 3 : index
    %514 = memref.load %arg5[%c1_187, %c3_188] : memref<9x8xf32, #tpu.memory_space<smem>>
    %515 = vector.broadcast %514 : f32 to vector<8x8xf32>
    %516 = arith.mulf %513, %515 : vector<8x8xf32>
    %517 = arith.addf %468, %516 : vector<8x8xf32>
    %518 = vector.extract_strided_slice %493 {offsets = [4, 0, 0], sizes = [1, 8, 8], strides = [1, 1, 1]} : vector<8x8x8xf32> to vector<1x8x8xf32>
    %519 = vector.shape_cast %518 : vector<1x8x8xf32> to vector<8x8xf32>
    %c1_189 = arith.constant 1 : index
    %c4_190 = arith.constant 4 : index
    %520 = memref.load %arg5[%c1_189, %c4_190] : memref<9x8xf32, #tpu.memory_space<smem>>
    %521 = vector.broadcast %520 : f32 to vector<8x8xf32>
    %522 = arith.mulf %519, %521 : vector<8x8xf32>
    %523 = arith.addf %474, %522 : vector<8x8xf32>
    %524 = vector.extract_strided_slice %493 {offsets = [5, 0, 0], sizes = [1, 8, 8], strides = [1, 1, 1]} : vector<8x8x8xf32> to vector<1x8x8xf32>
    %525 = vector.shape_cast %524 : vector<1x8x8xf32> to vector<8x8xf32>
    %c1_191 = arith.constant 1 : index
    %c5_192 = arith.constant 5 : index
    %526 = memref.load %arg5[%c1_191, %c5_192] : memref<9x8xf32, #tpu.memory_space<smem>>
    %527 = vector.broadcast %526 : f32 to vector<8x8xf32>
    %528 = arith.mulf %525, %527 : vector<8x8xf32>
    %529 = arith.addf %480, %528 : vector<8x8xf32>
    %530 = vector.extract_strided_slice %493 {offsets = [6, 0, 0], sizes = [1, 8, 8], strides = [1, 1, 1]} : vector<8x8x8xf32> to vector<1x8x8xf32>
    %531 = vector.shape_cast %530 : vector<1x8x8xf32> to vector<8x8xf32>
    %c1_193 = arith.constant 1 : index
    %c6_194 = arith.constant 6 : index
    %532 = memref.load %arg5[%c1_193, %c6_194] : memref<9x8xf32, #tpu.memory_space<smem>>
    %533 = vector.broadcast %532 : f32 to vector<8x8xf32>
    %534 = arith.mulf %531, %533 : vector<8x8xf32>
    %535 = arith.addf %486, %534 : vector<8x8xf32>
    %536 = vector.extract_strided_slice %493 {offsets = [7, 0, 0], sizes = [1, 8, 8], strides = [1, 1, 1]} : vector<8x8x8xf32> to vector<1x8x8xf32>
    %537 = vector.shape_cast %536 : vector<1x8x8xf32> to vector<8x8xf32>
    %c1_195 = arith.constant 1 : index
    %c7_196 = arith.constant 7 : index
    %538 = memref.load %arg5[%c1_195, %c7_196] : memref<9x8xf32, #tpu.memory_space<smem>>
    %539 = vector.broadcast %538 : f32 to vector<8x8xf32>
    %540 = arith.mulf %537, %539 : vector<8x8xf32>
    %541 = arith.addf %492, %540 : vector<8x8xf32>
    %542 = vector.extract_strided_slice %443 {offsets = [0, 0, 2], sizes = [8, 8, 8], strides = [1, 1, 1]} : vector<8x8x10xf32> to vector<8x8x8xf32>
    %543 = vector.extract_strided_slice %542 {offsets = [0, 0, 0], sizes = [1, 8, 8], strides = [1, 1, 1]} : vector<8x8x8xf32> to vector<1x8x8xf32>
    %544 = vector.shape_cast %543 : vector<1x8x8xf32> to vector<8x8xf32>
    %c2_197 = arith.constant 2 : index
    %c0_198 = arith.constant 0 : index
    %545 = memref.load %arg5[%c2_197, %c0_198] : memref<9x8xf32, #tpu.memory_space<smem>>
    %546 = vector.broadcast %545 : f32 to vector<8x8xf32>
    %547 = arith.mulf %544, %546 : vector<8x8xf32>
    %548 = arith.addf %499, %547 : vector<8x8xf32>
    %549 = vector.extract_strided_slice %542 {offsets = [1, 0, 0], sizes = [1, 8, 8], strides = [1, 1, 1]} : vector<8x8x8xf32> to vector<1x8x8xf32>
    %550 = vector.shape_cast %549 : vector<1x8x8xf32> to vector<8x8xf32>
    %c2_199 = arith.constant 2 : index
    %c1_200 = arith.constant 1 : index
    %551 = memref.load %arg5[%c2_199, %c1_200] : memref<9x8xf32, #tpu.memory_space<smem>>
    %552 = vector.broadcast %551 : f32 to vector<8x8xf32>
    %553 = arith.mulf %550, %552 : vector<8x8xf32>
    %554 = arith.addf %505, %553 : vector<8x8xf32>
    %555 = vector.extract_strided_slice %542 {offsets = [2, 0, 0], sizes = [1, 8, 8], strides = [1, 1, 1]} : vector<8x8x8xf32> to vector<1x8x8xf32>
    %556 = vector.shape_cast %555 : vector<1x8x8xf32> to vector<8x8xf32>
    %c2_201 = arith.constant 2 : index
    %c2_202 = arith.constant 2 : index
    %557 = memref.load %arg5[%c2_201, %c2_202] : memref<9x8xf32, #tpu.memory_space<smem>>
    %558 = vector.broadcast %557 : f32 to vector<8x8xf32>
    %559 = arith.mulf %556, %558 : vector<8x8xf32>
    %560 = arith.addf %511, %559 : vector<8x8xf32>
    %561 = vector.extract_strided_slice %542 {offsets = [3, 0, 0], sizes = [1, 8, 8], strides = [1, 1, 1]} : vector<8x8x8xf32> to vector<1x8x8xf32>
    %562 = vector.shape_cast %561 : vector<1x8x8xf32> to vector<8x8xf32>
    %c2_203 = arith.constant 2 : index
    %c3_204 = arith.constant 3 : index
    %563 = memref.load %arg5[%c2_203, %c3_204] : memref<9x8xf32, #tpu.memory_space<smem>>
    %564 = vector.broadcast %563 : f32 to vector<8x8xf32>
    %565 = arith.mulf %562, %564 : vector<8x8xf32>
    %566 = arith.addf %517, %565 : vector<8x8xf32>
    %567 = vector.extract_strided_slice %542 {offsets = [4, 0, 0], sizes = [1, 8, 8], strides = [1, 1, 1]} : vector<8x8x8xf32> to vector<1x8x8xf32>
    %568 = vector.shape_cast %567 : vector<1x8x8xf32> to vector<8x8xf32>
    %c2_205 = arith.constant 2 : index
    %c4_206 = arith.constant 4 : index
    %569 = memref.load %arg5[%c2_205, %c4_206] : memref<9x8xf32, #tpu.memory_space<smem>>
    %570 = vector.broadcast %569 : f32 to vector<8x8xf32>
    %571 = arith.mulf %568, %570 : vector<8x8xf32>
    %572 = arith.addf %523, %571 : vector<8x8xf32>
    %573 = vector.extract_strided_slice %542 {offsets = [5, 0, 0], sizes = [1, 8, 8], strides = [1, 1, 1]} : vector<8x8x8xf32> to vector<1x8x8xf32>
    %574 = vector.shape_cast %573 : vector<1x8x8xf32> to vector<8x8xf32>
    %c2_207 = arith.constant 2 : index
    %c5_208 = arith.constant 5 : index
    %575 = memref.load %arg5[%c2_207, %c5_208] : memref<9x8xf32, #tpu.memory_space<smem>>
    %576 = vector.broadcast %575 : f32 to vector<8x8xf32>
    %577 = arith.mulf %574, %576 : vector<8x8xf32>
    %578 = arith.addf %529, %577 : vector<8x8xf32>
    %579 = vector.extract_strided_slice %542 {offsets = [6, 0, 0], sizes = [1, 8, 8], strides = [1, 1, 1]} : vector<8x8x8xf32> to vector<1x8x8xf32>
    %580 = vector.shape_cast %579 : vector<1x8x8xf32> to vector<8x8xf32>
    %c2_209 = arith.constant 2 : index
    %c6_210 = arith.constant 6 : index
    %581 = memref.load %arg5[%c2_209, %c6_210] : memref<9x8xf32, #tpu.memory_space<smem>>
    %582 = vector.broadcast %581 : f32 to vector<8x8xf32>
    %583 = arith.mulf %580, %582 : vector<8x8xf32>
    %584 = arith.addf %535, %583 : vector<8x8xf32>
    %585 = vector.extract_strided_slice %542 {offsets = [7, 0, 0], sizes = [1, 8, 8], strides = [1, 1, 1]} : vector<8x8x8xf32> to vector<1x8x8xf32>
    %586 = vector.shape_cast %585 : vector<1x8x8xf32> to vector<8x8xf32>
    %c2_211 = arith.constant 2 : index
    %c7_212 = arith.constant 7 : index
    %587 = memref.load %arg5[%c2_211, %c7_212] : memref<9x8xf32, #tpu.memory_space<smem>>
    %588 = vector.broadcast %587 : f32 to vector<8x8xf32>
    %589 = arith.mulf %586, %588 : vector<8x8xf32>
    %590 = arith.addf %541, %589 : vector<8x8xf32>
    %591 = vector.extract_strided_slice %433 {offsets = [0, 1, 0], sizes = [8, 8, 8], strides = [1, 1, 1]} : vector<8x10x8xf32> to vector<8x8x8xf32>
    %592 = tpu.concatenate %432, %591, %432 in 2 : vector<8x8x1xf32>, vector<8x8x8xf32>, vector<8x8x1xf32> -> vector<8x8x10xf32>
    %593 = vector.extract_strided_slice %592 {offsets = [0, 0, 0], sizes = [8, 8, 8], strides = [1, 1, 1]} : vector<8x8x10xf32> to vector<8x8x8xf32>
    %594 = vector.extract_strided_slice %593 {offsets = [0, 0, 0], sizes = [1, 8, 8], strides = [1, 1, 1]} : vector<8x8x8xf32> to vector<1x8x8xf32>
    %595 = vector.shape_cast %594 : vector<1x8x8xf32> to vector<8x8xf32>
    %c3_213 = arith.constant 3 : index
    %c0_214 = arith.constant 0 : index
    %596 = memref.load %arg5[%c3_213, %c0_214] : memref<9x8xf32, #tpu.memory_space<smem>>
    %597 = vector.broadcast %596 : f32 to vector<8x8xf32>
    %598 = arith.mulf %595, %597 : vector<8x8xf32>
    %599 = arith.addf %548, %598 : vector<8x8xf32>
    %600 = vector.extract_strided_slice %593 {offsets = [1, 0, 0], sizes = [1, 8, 8], strides = [1, 1, 1]} : vector<8x8x8xf32> to vector<1x8x8xf32>
    %601 = vector.shape_cast %600 : vector<1x8x8xf32> to vector<8x8xf32>
    %c3_215 = arith.constant 3 : index
    %c1_216 = arith.constant 1 : index
    %602 = memref.load %arg5[%c3_215, %c1_216] : memref<9x8xf32, #tpu.memory_space<smem>>
    %603 = vector.broadcast %602 : f32 to vector<8x8xf32>
    %604 = arith.mulf %601, %603 : vector<8x8xf32>
    %605 = arith.addf %554, %604 : vector<8x8xf32>
    %606 = vector.extract_strided_slice %593 {offsets = [2, 0, 0], sizes = [1, 8, 8], strides = [1, 1, 1]} : vector<8x8x8xf32> to vector<1x8x8xf32>
    %607 = vector.shape_cast %606 : vector<1x8x8xf32> to vector<8x8xf32>
    %c3_217 = arith.constant 3 : index
    %c2_218 = arith.constant 2 : index
    %608 = memref.load %arg5[%c3_217, %c2_218] : memref<9x8xf32, #tpu.memory_space<smem>>
    %609 = vector.broadcast %608 : f32 to vector<8x8xf32>
    %610 = arith.mulf %607, %609 : vector<8x8xf32>
    %611 = arith.addf %560, %610 : vector<8x8xf32>
    %612 = vector.extract_strided_slice %593 {offsets = [3, 0, 0], sizes = [1, 8, 8], strides = [1, 1, 1]} : vector<8x8x8xf32> to vector<1x8x8xf32>
    %613 = vector.shape_cast %612 : vector<1x8x8xf32> to vector<8x8xf32>
    %c3_219 = arith.constant 3 : index
    %c3_220 = arith.constant 3 : index
    %614 = memref.load %arg5[%c3_219, %c3_220] : memref<9x8xf32, #tpu.memory_space<smem>>
    %615 = vector.broadcast %614 : f32 to vector<8x8xf32>
    %616 = arith.mulf %613, %615 : vector<8x8xf32>
    %617 = arith.addf %566, %616 : vector<8x8xf32>
    %618 = vector.extract_strided_slice %593 {offsets = [4, 0, 0], sizes = [1, 8, 8], strides = [1, 1, 1]} : vector<8x8x8xf32> to vector<1x8x8xf32>
    %619 = vector.shape_cast %618 : vector<1x8x8xf32> to vector<8x8xf32>
    %c3_221 = arith.constant 3 : index
    %c4_222 = arith.constant 4 : index
    %620 = memref.load %arg5[%c3_221, %c4_222] : memref<9x8xf32, #tpu.memory_space<smem>>
    %621 = vector.broadcast %620 : f32 to vector<8x8xf32>
    %622 = arith.mulf %619, %621 : vector<8x8xf32>
    %623 = arith.addf %572, %622 : vector<8x8xf32>
    %624 = vector.extract_strided_slice %593 {offsets = [5, 0, 0], sizes = [1, 8, 8], strides = [1, 1, 1]} : vector<8x8x8xf32> to vector<1x8x8xf32>
    %625 = vector.shape_cast %624 : vector<1x8x8xf32> to vector<8x8xf32>
    %c3_223 = arith.constant 3 : index
    %c5_224 = arith.constant 5 : index
    %626 = memref.load %arg5[%c3_223, %c5_224] : memref<9x8xf32, #tpu.memory_space<smem>>
    %627 = vector.broadcast %626 : f32 to vector<8x8xf32>
    %628 = arith.mulf %625, %627 : vector<8x8xf32>
    %629 = arith.addf %578, %628 : vector<8x8xf32>
    %630 = vector.extract_strided_slice %593 {offsets = [6, 0, 0], sizes = [1, 8, 8], strides = [1, 1, 1]} : vector<8x8x8xf32> to vector<1x8x8xf32>
    %631 = vector.shape_cast %630 : vector<1x8x8xf32> to vector<8x8xf32>
    %c3_225 = arith.constant 3 : index
    %c6_226 = arith.constant 6 : index
    %632 = memref.load %arg5[%c3_225, %c6_226] : memref<9x8xf32, #tpu.memory_space<smem>>
    %633 = vector.broadcast %632 : f32 to vector<8x8xf32>
    %634 = arith.mulf %631, %633 : vector<8x8xf32>
    %635 = arith.addf %584, %634 : vector<8x8xf32>
    %636 = vector.extract_strided_slice %593 {offsets = [7, 0, 0], sizes = [1, 8, 8], strides = [1, 1, 1]} : vector<8x8x8xf32> to vector<1x8x8xf32>
    %637 = vector.shape_cast %636 : vector<1x8x8xf32> to vector<8x8xf32>
    %c3_227 = arith.constant 3 : index
    %c7_228 = arith.constant 7 : index
    %638 = memref.load %arg5[%c3_227, %c7_228] : memref<9x8xf32, #tpu.memory_space<smem>>
    %639 = vector.broadcast %638 : f32 to vector<8x8xf32>
    %640 = arith.mulf %637, %639 : vector<8x8xf32>
    %641 = arith.addf %590, %640 : vector<8x8xf32>
    %642 = vector.extract_strided_slice %592 {offsets = [0, 0, 1], sizes = [8, 8, 8], strides = [1, 1, 1]} : vector<8x8x10xf32> to vector<8x8x8xf32>
    %643 = vector.extract_strided_slice %642 {offsets = [0, 0, 0], sizes = [1, 8, 8], strides = [1, 1, 1]} : vector<8x8x8xf32> to vector<1x8x8xf32>
    %644 = vector.shape_cast %643 : vector<1x8x8xf32> to vector<8x8xf32>
    %c4_229 = arith.constant 4 : index
    %c0_230 = arith.constant 0 : index
    %645 = memref.load %arg5[%c4_229, %c0_230] : memref<9x8xf32, #tpu.memory_space<smem>>
    %646 = vector.broadcast %645 : f32 to vector<8x8xf32>
    %647 = arith.mulf %644, %646 : vector<8x8xf32>
    %648 = arith.addf %599, %647 : vector<8x8xf32>
    %649 = vector.extract_strided_slice %642 {offsets = [1, 0, 0], sizes = [1, 8, 8], strides = [1, 1, 1]} : vector<8x8x8xf32> to vector<1x8x8xf32>
    %650 = vector.shape_cast %649 : vector<1x8x8xf32> to vector<8x8xf32>
    %c4_231 = arith.constant 4 : index
    %c1_232 = arith.constant 1 : index
    %651 = memref.load %arg5[%c4_231, %c1_232] : memref<9x8xf32, #tpu.memory_space<smem>>
    %652 = vector.broadcast %651 : f32 to vector<8x8xf32>
    %653 = arith.mulf %650, %652 : vector<8x8xf32>
    %654 = arith.addf %605, %653 : vector<8x8xf32>
    %655 = vector.extract_strided_slice %642 {offsets = [2, 0, 0], sizes = [1, 8, 8], strides = [1, 1, 1]} : vector<8x8x8xf32> to vector<1x8x8xf32>
    %656 = vector.shape_cast %655 : vector<1x8x8xf32> to vector<8x8xf32>
    %c4_233 = arith.constant 4 : index
    %c2_234 = arith.constant 2 : index
    %657 = memref.load %arg5[%c4_233, %c2_234] : memref<9x8xf32, #tpu.memory_space<smem>>
    %658 = vector.broadcast %657 : f32 to vector<8x8xf32>
    %659 = arith.mulf %656, %658 : vector<8x8xf32>
    %660 = arith.addf %611, %659 : vector<8x8xf32>
    %661 = vector.extract_strided_slice %642 {offsets = [3, 0, 0], sizes = [1, 8, 8], strides = [1, 1, 1]} : vector<8x8x8xf32> to vector<1x8x8xf32>
    %662 = vector.shape_cast %661 : vector<1x8x8xf32> to vector<8x8xf32>
    %c4_235 = arith.constant 4 : index
    %c3_236 = arith.constant 3 : index
    %663 = memref.load %arg5[%c4_235, %c3_236] : memref<9x8xf32, #tpu.memory_space<smem>>
    %664 = vector.broadcast %663 : f32 to vector<8x8xf32>
    %665 = arith.mulf %662, %664 : vector<8x8xf32>
    %666 = arith.addf %617, %665 : vector<8x8xf32>
    %667 = vector.extract_strided_slice %642 {offsets = [4, 0, 0], sizes = [1, 8, 8], strides = [1, 1, 1]} : vector<8x8x8xf32> to vector<1x8x8xf32>
    %668 = vector.shape_cast %667 : vector<1x8x8xf32> to vector<8x8xf32>
    %c4_237 = arith.constant 4 : index
    %c4_238 = arith.constant 4 : index
    %669 = memref.load %arg5[%c4_237, %c4_238] : memref<9x8xf32, #tpu.memory_space<smem>>
    %670 = vector.broadcast %669 : f32 to vector<8x8xf32>
    %671 = arith.mulf %668, %670 : vector<8x8xf32>
    %672 = arith.addf %623, %671 : vector<8x8xf32>
    %673 = vector.extract_strided_slice %642 {offsets = [5, 0, 0], sizes = [1, 8, 8], strides = [1, 1, 1]} : vector<8x8x8xf32> to vector<1x8x8xf32>
    %674 = vector.shape_cast %673 : vector<1x8x8xf32> to vector<8x8xf32>
    %c4_239 = arith.constant 4 : index
    %c5_240 = arith.constant 5 : index
    %675 = memref.load %arg5[%c4_239, %c5_240] : memref<9x8xf32, #tpu.memory_space<smem>>
    %676 = vector.broadcast %675 : f32 to vector<8x8xf32>
    %677 = arith.mulf %674, %676 : vector<8x8xf32>
    %678 = arith.addf %629, %677 : vector<8x8xf32>
    %679 = vector.extract_strided_slice %642 {offsets = [6, 0, 0], sizes = [1, 8, 8], strides = [1, 1, 1]} : vector<8x8x8xf32> to vector<1x8x8xf32>
    %680 = vector.shape_cast %679 : vector<1x8x8xf32> to vector<8x8xf32>
    %c4_241 = arith.constant 4 : index
    %c6_242 = arith.constant 6 : index
    %681 = memref.load %arg5[%c4_241, %c6_242] : memref<9x8xf32, #tpu.memory_space<smem>>
    %682 = vector.broadcast %681 : f32 to vector<8x8xf32>
    %683 = arith.mulf %680, %682 : vector<8x8xf32>
    %684 = arith.addf %635, %683 : vector<8x8xf32>
    %685 = vector.extract_strided_slice %642 {offsets = [7, 0, 0], sizes = [1, 8, 8], strides = [1, 1, 1]} : vector<8x8x8xf32> to vector<1x8x8xf32>
    %686 = vector.shape_cast %685 : vector<1x8x8xf32> to vector<8x8xf32>
    %c4_243 = arith.constant 4 : index
    %c7_244 = arith.constant 7 : index
    %687 = memref.load %arg5[%c4_243, %c7_244] : memref<9x8xf32, #tpu.memory_space<smem>>
    %688 = vector.broadcast %687 : f32 to vector<8x8xf32>
    %689 = arith.mulf %686, %688 : vector<8x8xf32>
    %690 = arith.addf %641, %689 : vector<8x8xf32>
    %691 = vector.extract_strided_slice %592 {offsets = [0, 0, 2], sizes = [8, 8, 8], strides = [1, 1, 1]} : vector<8x8x10xf32> to vector<8x8x8xf32>
    %692 = vector.extract_strided_slice %691 {offsets = [0, 0, 0], sizes = [1, 8, 8], strides = [1, 1, 1]} : vector<8x8x8xf32> to vector<1x8x8xf32>
    %693 = vector.shape_cast %692 : vector<1x8x8xf32> to vector<8x8xf32>
    %c5_245 = arith.constant 5 : index
    %c0_246 = arith.constant 0 : index
    %694 = memref.load %arg5[%c5_245, %c0_246] : memref<9x8xf32, #tpu.memory_space<smem>>
    %695 = vector.broadcast %694 : f32 to vector<8x8xf32>
    %696 = arith.mulf %693, %695 : vector<8x8xf32>
    %697 = arith.addf %648, %696 : vector<8x8xf32>
    %698 = vector.extract_strided_slice %691 {offsets = [1, 0, 0], sizes = [1, 8, 8], strides = [1, 1, 1]} : vector<8x8x8xf32> to vector<1x8x8xf32>
    %699 = vector.shape_cast %698 : vector<1x8x8xf32> to vector<8x8xf32>
    %c5_247 = arith.constant 5 : index
    %c1_248 = arith.constant 1 : index
    %700 = memref.load %arg5[%c5_247, %c1_248] : memref<9x8xf32, #tpu.memory_space<smem>>
    %701 = vector.broadcast %700 : f32 to vector<8x8xf32>
    %702 = arith.mulf %699, %701 : vector<8x8xf32>
    %703 = arith.addf %654, %702 : vector<8x8xf32>
    %704 = vector.extract_strided_slice %691 {offsets = [2, 0, 0], sizes = [1, 8, 8], strides = [1, 1, 1]} : vector<8x8x8xf32> to vector<1x8x8xf32>
    %705 = vector.shape_cast %704 : vector<1x8x8xf32> to vector<8x8xf32>
    %c5_249 = arith.constant 5 : index
    %c2_250 = arith.constant 2 : index
    %706 = memref.load %arg5[%c5_249, %c2_250] : memref<9x8xf32, #tpu.memory_space<smem>>
    %707 = vector.broadcast %706 : f32 to vector<8x8xf32>
    %708 = arith.mulf %705, %707 : vector<8x8xf32>
    %709 = arith.addf %660, %708 : vector<8x8xf32>
    %710 = vector.extract_strided_slice %691 {offsets = [3, 0, 0], sizes = [1, 8, 8], strides = [1, 1, 1]} : vector<8x8x8xf32> to vector<1x8x8xf32>
    %711 = vector.shape_cast %710 : vector<1x8x8xf32> to vector<8x8xf32>
    %c5_251 = arith.constant 5 : index
    %c3_252 = arith.constant 3 : index
    %712 = memref.load %arg5[%c5_251, %c3_252] : memref<9x8xf32, #tpu.memory_space<smem>>
    %713 = vector.broadcast %712 : f32 to vector<8x8xf32>
    %714 = arith.mulf %711, %713 : vector<8x8xf32>
    %715 = arith.addf %666, %714 : vector<8x8xf32>
    %716 = vector.extract_strided_slice %691 {offsets = [4, 0, 0], sizes = [1, 8, 8], strides = [1, 1, 1]} : vector<8x8x8xf32> to vector<1x8x8xf32>
    %717 = vector.shape_cast %716 : vector<1x8x8xf32> to vector<8x8xf32>
    %c5_253 = arith.constant 5 : index
    %c4_254 = arith.constant 4 : index
    %718 = memref.load %arg5[%c5_253, %c4_254] : memref<9x8xf32, #tpu.memory_space<smem>>
    %719 = vector.broadcast %718 : f32 to vector<8x8xf32>
    %720 = arith.mulf %717, %719 : vector<8x8xf32>
    %721 = arith.addf %672, %720 : vector<8x8xf32>
    %722 = vector.extract_strided_slice %691 {offsets = [5, 0, 0], sizes = [1, 8, 8], strides = [1, 1, 1]} : vector<8x8x8xf32> to vector<1x8x8xf32>
    %723 = vector.shape_cast %722 : vector<1x8x8xf32> to vector<8x8xf32>
    %c5_255 = arith.constant 5 : index
    %c5_256 = arith.constant 5 : index
    %724 = memref.load %arg5[%c5_255, %c5_256] : memref<9x8xf32, #tpu.memory_space<smem>>
    %725 = vector.broadcast %724 : f32 to vector<8x8xf32>
    %726 = arith.mulf %723, %725 : vector<8x8xf32>
    %727 = arith.addf %678, %726 : vector<8x8xf32>
    %728 = vector.extract_strided_slice %691 {offsets = [6, 0, 0], sizes = [1, 8, 8], strides = [1, 1, 1]} : vector<8x8x8xf32> to vector<1x8x8xf32>
    %729 = vector.shape_cast %728 : vector<1x8x8xf32> to vector<8x8xf32>
    %c5_257 = arith.constant 5 : index
    %c6_258 = arith.constant 6 : index
    %730 = memref.load %arg5[%c5_257, %c6_258] : memref<9x8xf32, #tpu.memory_space<smem>>
    %731 = vector.broadcast %730 : f32 to vector<8x8xf32>
    %732 = arith.mulf %729, %731 : vector<8x8xf32>
    %733 = arith.addf %684, %732 : vector<8x8xf32>
    %734 = vector.extract_strided_slice %691 {offsets = [7, 0, 0], sizes = [1, 8, 8], strides = [1, 1, 1]} : vector<8x8x8xf32> to vector<1x8x8xf32>
    %735 = vector.shape_cast %734 : vector<1x8x8xf32> to vector<8x8xf32>
    %c5_259 = arith.constant 5 : index
    %c7_260 = arith.constant 7 : index
    %736 = memref.load %arg5[%c5_259, %c7_260] : memref<9x8xf32, #tpu.memory_space<smem>>
    %737 = vector.broadcast %736 : f32 to vector<8x8xf32>
    %738 = arith.mulf %735, %737 : vector<8x8xf32>
    %739 = arith.addf %690, %738 : vector<8x8xf32>
    %740 = vector.extract_strided_slice %433 {offsets = [0, 2, 0], sizes = [8, 8, 8], strides = [1, 1, 1]} : vector<8x10x8xf32> to vector<8x8x8xf32>
    %741 = tpu.concatenate %432, %740, %432 in 2 : vector<8x8x1xf32>, vector<8x8x8xf32>, vector<8x8x1xf32> -> vector<8x8x10xf32>
    %742 = vector.extract_strided_slice %741 {offsets = [0, 0, 0], sizes = [8, 8, 8], strides = [1, 1, 1]} : vector<8x8x10xf32> to vector<8x8x8xf32>
    %743 = vector.extract_strided_slice %742 {offsets = [0, 0, 0], sizes = [1, 8, 8], strides = [1, 1, 1]} : vector<8x8x8xf32> to vector<1x8x8xf32>
    %744 = vector.shape_cast %743 : vector<1x8x8xf32> to vector<8x8xf32>
    %c6_261 = arith.constant 6 : index
    %c0_262 = arith.constant 0 : index
    %745 = memref.load %arg5[%c6_261, %c0_262] : memref<9x8xf32, #tpu.memory_space<smem>>
    %746 = vector.broadcast %745 : f32 to vector<8x8xf32>
    %747 = arith.mulf %744, %746 : vector<8x8xf32>
    %748 = arith.addf %697, %747 : vector<8x8xf32>
    %749 = vector.extract_strided_slice %742 {offsets = [1, 0, 0], sizes = [1, 8, 8], strides = [1, 1, 1]} : vector<8x8x8xf32> to vector<1x8x8xf32>
    %750 = vector.shape_cast %749 : vector<1x8x8xf32> to vector<8x8xf32>
    %c6_263 = arith.constant 6 : index
    %c1_264 = arith.constant 1 : index
    %751 = memref.load %arg5[%c6_263, %c1_264] : memref<9x8xf32, #tpu.memory_space<smem>>
    %752 = vector.broadcast %751 : f32 to vector<8x8xf32>
    %753 = arith.mulf %750, %752 : vector<8x8xf32>
    %754 = arith.addf %703, %753 : vector<8x8xf32>
    %755 = vector.extract_strided_slice %742 {offsets = [2, 0, 0], sizes = [1, 8, 8], strides = [1, 1, 1]} : vector<8x8x8xf32> to vector<1x8x8xf32>
    %756 = vector.shape_cast %755 : vector<1x8x8xf32> to vector<8x8xf32>
    %c6_265 = arith.constant 6 : index
    %c2_266 = arith.constant 2 : index
    %757 = memref.load %arg5[%c6_265, %c2_266] : memref<9x8xf32, #tpu.memory_space<smem>>
    %758 = vector.broadcast %757 : f32 to vector<8x8xf32>
    %759 = arith.mulf %756, %758 : vector<8x8xf32>
    %760 = arith.addf %709, %759 : vector<8x8xf32>
    %761 = vector.extract_strided_slice %742 {offsets = [3, 0, 0], sizes = [1, 8, 8], strides = [1, 1, 1]} : vector<8x8x8xf32> to vector<1x8x8xf32>
    %762 = vector.shape_cast %761 : vector<1x8x8xf32> to vector<8x8xf32>
    %c6_267 = arith.constant 6 : index
    %c3_268 = arith.constant 3 : index
    %763 = memref.load %arg5[%c6_267, %c3_268] : memref<9x8xf32, #tpu.memory_space<smem>>
    %764 = vector.broadcast %763 : f32 to vector<8x8xf32>
    %765 = arith.mulf %762, %764 : vector<8x8xf32>
    %766 = arith.addf %715, %765 : vector<8x8xf32>
    %767 = vector.extract_strided_slice %742 {offsets = [4, 0, 0], sizes = [1, 8, 8], strides = [1, 1, 1]} : vector<8x8x8xf32> to vector<1x8x8xf32>
    %768 = vector.shape_cast %767 : vector<1x8x8xf32> to vector<8x8xf32>
    %c6_269 = arith.constant 6 : index
    %c4_270 = arith.constant 4 : index
    %769 = memref.load %arg5[%c6_269, %c4_270] : memref<9x8xf32, #tpu.memory_space<smem>>
    %770 = vector.broadcast %769 : f32 to vector<8x8xf32>
    %771 = arith.mulf %768, %770 : vector<8x8xf32>
    %772 = arith.addf %721, %771 : vector<8x8xf32>
    %773 = vector.extract_strided_slice %742 {offsets = [5, 0, 0], sizes = [1, 8, 8], strides = [1, 1, 1]} : vector<8x8x8xf32> to vector<1x8x8xf32>
    %774 = vector.shape_cast %773 : vector<1x8x8xf32> to vector<8x8xf32>
    %c6_271 = arith.constant 6 : index
    %c5_272 = arith.constant 5 : index
    %775 = memref.load %arg5[%c6_271, %c5_272] : memref<9x8xf32, #tpu.memory_space<smem>>
    %776 = vector.broadcast %775 : f32 to vector<8x8xf32>
    %777 = arith.mulf %774, %776 : vector<8x8xf32>
    %778 = arith.addf %727, %777 : vector<8x8xf32>
    %779 = vector.extract_strided_slice %742 {offsets = [6, 0, 0], sizes = [1, 8, 8], strides = [1, 1, 1]} : vector<8x8x8xf32> to vector<1x8x8xf32>
    %780 = vector.shape_cast %779 : vector<1x8x8xf32> to vector<8x8xf32>
    %c6_273 = arith.constant 6 : index
    %c6_274 = arith.constant 6 : index
    %781 = memref.load %arg5[%c6_273, %c6_274] : memref<9x8xf32, #tpu.memory_space<smem>>
    %782 = vector.broadcast %781 : f32 to vector<8x8xf32>
    %783 = arith.mulf %780, %782 : vector<8x8xf32>
    %784 = arith.addf %733, %783 : vector<8x8xf32>
    %785 = vector.extract_strided_slice %742 {offsets = [7, 0, 0], sizes = [1, 8, 8], strides = [1, 1, 1]} : vector<8x8x8xf32> to vector<1x8x8xf32>
    %786 = vector.shape_cast %785 : vector<1x8x8xf32> to vector<8x8xf32>
    %c6_275 = arith.constant 6 : index
    %c7_276 = arith.constant 7 : index
    %787 = memref.load %arg5[%c6_275, %c7_276] : memref<9x8xf32, #tpu.memory_space<smem>>
    %788 = vector.broadcast %787 : f32 to vector<8x8xf32>
    %789 = arith.mulf %786, %788 : vector<8x8xf32>
    %790 = arith.addf %739, %789 : vector<8x8xf32>
    %791 = vector.extract_strided_slice %741 {offsets = [0, 0, 1], sizes = [8, 8, 8], strides = [1, 1, 1]} : vector<8x8x10xf32> to vector<8x8x8xf32>
    %792 = vector.extract_strided_slice %791 {offsets = [0, 0, 0], sizes = [1, 8, 8], strides = [1, 1, 1]} : vector<8x8x8xf32> to vector<1x8x8xf32>
    %793 = vector.shape_cast %792 : vector<1x8x8xf32> to vector<8x8xf32>
    %c7_277 = arith.constant 7 : index
    %c0_278 = arith.constant 0 : index
    %794 = memref.load %arg5[%c7_277, %c0_278] : memref<9x8xf32, #tpu.memory_space<smem>>
    %795 = vector.broadcast %794 : f32 to vector<8x8xf32>
    %796 = arith.mulf %793, %795 : vector<8x8xf32>
    %797 = arith.addf %748, %796 : vector<8x8xf32>
    %798 = vector.extract_strided_slice %791 {offsets = [1, 0, 0], sizes = [1, 8, 8], strides = [1, 1, 1]} : vector<8x8x8xf32> to vector<1x8x8xf32>
    %799 = vector.shape_cast %798 : vector<1x8x8xf32> to vector<8x8xf32>
    %c7_279 = arith.constant 7 : index
    %c1_280 = arith.constant 1 : index
    %800 = memref.load %arg5[%c7_279, %c1_280] : memref<9x8xf32, #tpu.memory_space<smem>>
    %801 = vector.broadcast %800 : f32 to vector<8x8xf32>
    %802 = arith.mulf %799, %801 : vector<8x8xf32>
    %803 = arith.addf %754, %802 : vector<8x8xf32>
    %804 = vector.extract_strided_slice %791 {offsets = [2, 0, 0], sizes = [1, 8, 8], strides = [1, 1, 1]} : vector<8x8x8xf32> to vector<1x8x8xf32>
    %805 = vector.shape_cast %804 : vector<1x8x8xf32> to vector<8x8xf32>
    %c7_281 = arith.constant 7 : index
    %c2_282 = arith.constant 2 : index
    %806 = memref.load %arg5[%c7_281, %c2_282] : memref<9x8xf32, #tpu.memory_space<smem>>
    %807 = vector.broadcast %806 : f32 to vector<8x8xf32>
    %808 = arith.mulf %805, %807 : vector<8x8xf32>
    %809 = arith.addf %760, %808 : vector<8x8xf32>
    %810 = vector.extract_strided_slice %791 {offsets = [3, 0, 0], sizes = [1, 8, 8], strides = [1, 1, 1]} : vector<8x8x8xf32> to vector<1x8x8xf32>
    %811 = vector.shape_cast %810 : vector<1x8x8xf32> to vector<8x8xf32>
    %c7_283 = arith.constant 7 : index
    %c3_284 = arith.constant 3 : index
    %812 = memref.load %arg5[%c7_283, %c3_284] : memref<9x8xf32, #tpu.memory_space<smem>>
    %813 = vector.broadcast %812 : f32 to vector<8x8xf32>
    %814 = arith.mulf %811, %813 : vector<8x8xf32>
    %815 = arith.addf %766, %814 : vector<8x8xf32>
    %816 = vector.extract_strided_slice %791 {offsets = [4, 0, 0], sizes = [1, 8, 8], strides = [1, 1, 1]} : vector<8x8x8xf32> to vector<1x8x8xf32>
    %817 = vector.shape_cast %816 : vector<1x8x8xf32> to vector<8x8xf32>
    %c7_285 = arith.constant 7 : index
    %c4_286 = arith.constant 4 : index
    %818 = memref.load %arg5[%c7_285, %c4_286] : memref<9x8xf32, #tpu.memory_space<smem>>
    %819 = vector.broadcast %818 : f32 to vector<8x8xf32>
    %820 = arith.mulf %817, %819 : vector<8x8xf32>
    %821 = arith.addf %772, %820 : vector<8x8xf32>
    %822 = vector.extract_strided_slice %791 {offsets = [5, 0, 0], sizes = [1, 8, 8], strides = [1, 1, 1]} : vector<8x8x8xf32> to vector<1x8x8xf32>
    %823 = vector.shape_cast %822 : vector<1x8x8xf32> to vector<8x8xf32>
    %c7_287 = arith.constant 7 : index
    %c5_288 = arith.constant 5 : index
    %824 = memref.load %arg5[%c7_287, %c5_288] : memref<9x8xf32, #tpu.memory_space<smem>>
    %825 = vector.broadcast %824 : f32 to vector<8x8xf32>
    %826 = arith.mulf %823, %825 : vector<8x8xf32>
    %827 = arith.addf %778, %826 : vector<8x8xf32>
    %828 = vector.extract_strided_slice %791 {offsets = [6, 0, 0], sizes = [1, 8, 8], strides = [1, 1, 1]} : vector<8x8x8xf32> to vector<1x8x8xf32>
    %829 = vector.shape_cast %828 : vector<1x8x8xf32> to vector<8x8xf32>
    %c7_289 = arith.constant 7 : index
    %c6_290 = arith.constant 6 : index
    %830 = memref.load %arg5[%c7_289, %c6_290] : memref<9x8xf32, #tpu.memory_space<smem>>
    %831 = vector.broadcast %830 : f32 to vector<8x8xf32>
    %832 = arith.mulf %829, %831 : vector<8x8xf32>
    %833 = arith.addf %784, %832 : vector<8x8xf32>
    %834 = vector.extract_strided_slice %791 {offsets = [7, 0, 0], sizes = [1, 8, 8], strides = [1, 1, 1]} : vector<8x8x8xf32> to vector<1x8x8xf32>
    %835 = vector.shape_cast %834 : vector<1x8x8xf32> to vector<8x8xf32>
    %c7_291 = arith.constant 7 : index
    %c7_292 = arith.constant 7 : index
    %836 = memref.load %arg5[%c7_291, %c7_292] : memref<9x8xf32, #tpu.memory_space<smem>>
    %837 = vector.broadcast %836 : f32 to vector<8x8xf32>
    %838 = arith.mulf %835, %837 : vector<8x8xf32>
    %839 = arith.addf %790, %838 : vector<8x8xf32>
    %840 = vector.extract_strided_slice %741 {offsets = [0, 0, 2], sizes = [8, 8, 8], strides = [1, 1, 1]} : vector<8x8x10xf32> to vector<8x8x8xf32>
    %841 = vector.extract_strided_slice %840 {offsets = [0, 0, 0], sizes = [1, 8, 8], strides = [1, 1, 1]} : vector<8x8x8xf32> to vector<1x8x8xf32>
    %842 = vector.shape_cast %841 : vector<1x8x8xf32> to vector<8x8xf32>
    %c8_293 = arith.constant 8 : index
    %c0_294 = arith.constant 0 : index
    %843 = memref.load %arg5[%c8_293, %c0_294] : memref<9x8xf32, #tpu.memory_space<smem>>
    %844 = vector.broadcast %843 : f32 to vector<8x8xf32>
    %845 = arith.mulf %842, %844 : vector<8x8xf32>
    %846 = arith.addf %797, %845 : vector<8x8xf32>
    %847 = vector.extract_strided_slice %840 {offsets = [1, 0, 0], sizes = [1, 8, 8], strides = [1, 1, 1]} : vector<8x8x8xf32> to vector<1x8x8xf32>
    %848 = vector.shape_cast %847 : vector<1x8x8xf32> to vector<8x8xf32>
    %c8_295 = arith.constant 8 : index
    %c1_296 = arith.constant 1 : index
    %849 = memref.load %arg5[%c8_295, %c1_296] : memref<9x8xf32, #tpu.memory_space<smem>>
    %850 = vector.broadcast %849 : f32 to vector<8x8xf32>
    %851 = arith.mulf %848, %850 : vector<8x8xf32>
    %852 = arith.addf %803, %851 : vector<8x8xf32>
    %853 = vector.extract_strided_slice %840 {offsets = [2, 0, 0], sizes = [1, 8, 8], strides = [1, 1, 1]} : vector<8x8x8xf32> to vector<1x8x8xf32>
    %854 = vector.shape_cast %853 : vector<1x8x8xf32> to vector<8x8xf32>
    %c8_297 = arith.constant 8 : index
    %c2_298 = arith.constant 2 : index
    %855 = memref.load %arg5[%c8_297, %c2_298] : memref<9x8xf32, #tpu.memory_space<smem>>
    %856 = vector.broadcast %855 : f32 to vector<8x8xf32>
    %857 = arith.mulf %854, %856 : vector<8x8xf32>
    %858 = arith.addf %809, %857 : vector<8x8xf32>
    %859 = vector.extract_strided_slice %840 {offsets = [3, 0, 0], sizes = [1, 8, 8], strides = [1, 1, 1]} : vector<8x8x8xf32> to vector<1x8x8xf32>
    %860 = vector.shape_cast %859 : vector<1x8x8xf32> to vector<8x8xf32>
    %c8_299 = arith.constant 8 : index
    %c3_300 = arith.constant 3 : index
    %861 = memref.load %arg5[%c8_299, %c3_300] : memref<9x8xf32, #tpu.memory_space<smem>>
    %862 = vector.broadcast %861 : f32 to vector<8x8xf32>
    %863 = arith.mulf %860, %862 : vector<8x8xf32>
    %864 = arith.addf %815, %863 : vector<8x8xf32>
    %865 = vector.extract_strided_slice %840 {offsets = [4, 0, 0], sizes = [1, 8, 8], strides = [1, 1, 1]} : vector<8x8x8xf32> to vector<1x8x8xf32>
    %866 = vector.shape_cast %865 : vector<1x8x8xf32> to vector<8x8xf32>
    %c8_301 = arith.constant 8 : index
    %c4_302 = arith.constant 4 : index
    %867 = memref.load %arg5[%c8_301, %c4_302] : memref<9x8xf32, #tpu.memory_space<smem>>
    %868 = vector.broadcast %867 : f32 to vector<8x8xf32>
    %869 = arith.mulf %866, %868 : vector<8x8xf32>
    %870 = arith.addf %821, %869 : vector<8x8xf32>
    %871 = vector.extract_strided_slice %840 {offsets = [5, 0, 0], sizes = [1, 8, 8], strides = [1, 1, 1]} : vector<8x8x8xf32> to vector<1x8x8xf32>
    %872 = vector.shape_cast %871 : vector<1x8x8xf32> to vector<8x8xf32>
    %c8_303 = arith.constant 8 : index
    %c5_304 = arith.constant 5 : index
    %873 = memref.load %arg5[%c8_303, %c5_304] : memref<9x8xf32, #tpu.memory_space<smem>>
    %874 = vector.broadcast %873 : f32 to vector<8x8xf32>
    %875 = arith.mulf %872, %874 : vector<8x8xf32>
    %876 = arith.addf %827, %875 : vector<8x8xf32>
    %877 = vector.extract_strided_slice %840 {offsets = [6, 0, 0], sizes = [1, 8, 8], strides = [1, 1, 1]} : vector<8x8x8xf32> to vector<1x8x8xf32>
    %878 = vector.shape_cast %877 : vector<1x8x8xf32> to vector<8x8xf32>
    %c8_305 = arith.constant 8 : index
    %c6_306 = arith.constant 6 : index
    %879 = memref.load %arg5[%c8_305, %c6_306] : memref<9x8xf32, #tpu.memory_space<smem>>
    %880 = vector.broadcast %879 : f32 to vector<8x8xf32>
    %881 = arith.mulf %878, %880 : vector<8x8xf32>
    %882 = arith.addf %833, %881 : vector<8x8xf32>
    %883 = vector.extract_strided_slice %840 {offsets = [7, 0, 0], sizes = [1, 8, 8], strides = [1, 1, 1]} : vector<8x8x8xf32> to vector<1x8x8xf32>
    %884 = vector.shape_cast %883 : vector<1x8x8xf32> to vector<8x8xf32>
    %c8_307 = arith.constant 8 : index
    %c7_308 = arith.constant 7 : index
    %885 = memref.load %arg5[%c8_307, %c7_308] : memref<9x8xf32, #tpu.memory_space<smem>>
    %886 = vector.broadcast %885 : f32 to vector<8x8xf32>
    %887 = arith.mulf %884, %886 : vector<8x8xf32>
    %888 = arith.addf %839, %887 : vector<8x8xf32>
    %c0_309 = arith.constant 0 : index
    %c0_310 = arith.constant 0 : index
    %889 = memref.load %arg6[%c0_309, %c0_310] : memref<8x8xf32, #tpu.memory_space<smem>>
    %890 = vector.broadcast %889 : f32 to vector<8x8xf32>
    %891 = arith.mulf %846, %890 : vector<8x8xf32>
    %c1_311 = arith.constant 1 : index
    %c0_312 = arith.constant 0 : index
    %892 = memref.load %arg6[%c1_311, %c0_312] : memref<8x8xf32, #tpu.memory_space<smem>>
    %893 = vector.broadcast %892 : f32 to vector<8x8xf32>
    %894 = arith.mulf %852, %893 : vector<8x8xf32>
    %895 = arith.addf %891, %894 : vector<8x8xf32>
    %c2_313 = arith.constant 2 : index
    %c0_314 = arith.constant 0 : index
    %896 = memref.load %arg6[%c2_313, %c0_314] : memref<8x8xf32, #tpu.memory_space<smem>>
    %897 = vector.broadcast %896 : f32 to vector<8x8xf32>
    %898 = arith.mulf %858, %897 : vector<8x8xf32>
    %899 = arith.addf %895, %898 : vector<8x8xf32>
    %c3_315 = arith.constant 3 : index
    %c0_316 = arith.constant 0 : index
    %900 = memref.load %arg6[%c3_315, %c0_316] : memref<8x8xf32, #tpu.memory_space<smem>>
    %901 = vector.broadcast %900 : f32 to vector<8x8xf32>
    %902 = arith.mulf %864, %901 : vector<8x8xf32>
    %903 = arith.addf %899, %902 : vector<8x8xf32>
    %c4_317 = arith.constant 4 : index
    %c0_318 = arith.constant 0 : index
    %904 = memref.load %arg6[%c4_317, %c0_318] : memref<8x8xf32, #tpu.memory_space<smem>>
    %905 = vector.broadcast %904 : f32 to vector<8x8xf32>
    %906 = arith.mulf %870, %905 : vector<8x8xf32>
    %907 = arith.addf %903, %906 : vector<8x8xf32>
    %c5_319 = arith.constant 5 : index
    %c0_320 = arith.constant 0 : index
    %908 = memref.load %arg6[%c5_319, %c0_320] : memref<8x8xf32, #tpu.memory_space<smem>>
    %909 = vector.broadcast %908 : f32 to vector<8x8xf32>
    %910 = arith.mulf %876, %909 : vector<8x8xf32>
    %911 = arith.addf %907, %910 : vector<8x8xf32>
    %c6_321 = arith.constant 6 : index
    %c0_322 = arith.constant 0 : index
    %912 = memref.load %arg6[%c6_321, %c0_322] : memref<8x8xf32, #tpu.memory_space<smem>>
    %913 = vector.broadcast %912 : f32 to vector<8x8xf32>
    %914 = arith.mulf %882, %913 : vector<8x8xf32>
    %915 = arith.addf %911, %914 : vector<8x8xf32>
    %c7_323 = arith.constant 7 : index
    %c0_324 = arith.constant 0 : index
    %916 = memref.load %arg6[%c7_323, %c0_324] : memref<8x8xf32, #tpu.memory_space<smem>>
    %917 = vector.broadcast %916 : f32 to vector<8x8xf32>
    %918 = arith.mulf %888, %917 : vector<8x8xf32>
    %919 = arith.addf %915, %918 : vector<8x8xf32>
    %c0_325 = arith.constant 0 : index
    %920 = memref.load %arg7[%c0_325] : memref<8xf32, #tpu.memory_space<smem>>
    %921 = vector.broadcast %920 : f32 to vector<8x8xf32>
    %922 = arith.addf %919, %921 : vector<8x8xf32>
    %cst_326 = arith.constant 0.000000e+00 : f32
    %923 = vector.broadcast %cst_326 : f32 to vector<8x8xf32>
    %924 = arith.maximumf %922, %923 : vector<8x8xf32>
    %c0_327 = arith.constant 0 : index
    %c1_328 = arith.constant 1 : index
    %925 = memref.load %arg6[%c0_327, %c1_328] : memref<8x8xf32, #tpu.memory_space<smem>>
    %926 = vector.broadcast %925 : f32 to vector<8x8xf32>
    %927 = arith.mulf %846, %926 : vector<8x8xf32>
    %c1_329 = arith.constant 1 : index
    %c1_330 = arith.constant 1 : index
    %928 = memref.load %arg6[%c1_329, %c1_330] : memref<8x8xf32, #tpu.memory_space<smem>>
    %929 = vector.broadcast %928 : f32 to vector<8x8xf32>
    %930 = arith.mulf %852, %929 : vector<8x8xf32>
    %931 = arith.addf %927, %930 : vector<8x8xf32>
    %c2_331 = arith.constant 2 : index
    %c1_332 = arith.constant 1 : index
    %932 = memref.load %arg6[%c2_331, %c1_332] : memref<8x8xf32, #tpu.memory_space<smem>>
    %933 = vector.broadcast %932 : f32 to vector<8x8xf32>
    %934 = arith.mulf %858, %933 : vector<8x8xf32>
    %935 = arith.addf %931, %934 : vector<8x8xf32>
    %c3_333 = arith.constant 3 : index
    %c1_334 = arith.constant 1 : index
    %936 = memref.load %arg6[%c3_333, %c1_334] : memref<8x8xf32, #tpu.memory_space<smem>>
    %937 = vector.broadcast %936 : f32 to vector<8x8xf32>
    %938 = arith.mulf %864, %937 : vector<8x8xf32>
    %939 = arith.addf %935, %938 : vector<8x8xf32>
    %c4_335 = arith.constant 4 : index
    %c1_336 = arith.constant 1 : index
    %940 = memref.load %arg6[%c4_335, %c1_336] : memref<8x8xf32, #tpu.memory_space<smem>>
    %941 = vector.broadcast %940 : f32 to vector<8x8xf32>
    %942 = arith.mulf %870, %941 : vector<8x8xf32>
    %943 = arith.addf %939, %942 : vector<8x8xf32>
    %c5_337 = arith.constant 5 : index
    %c1_338 = arith.constant 1 : index
    %944 = memref.load %arg6[%c5_337, %c1_338] : memref<8x8xf32, #tpu.memory_space<smem>>
    %945 = vector.broadcast %944 : f32 to vector<8x8xf32>
    %946 = arith.mulf %876, %945 : vector<8x8xf32>
    %947 = arith.addf %943, %946 : vector<8x8xf32>
    %c6_339 = arith.constant 6 : index
    %c1_340 = arith.constant 1 : index
    %948 = memref.load %arg6[%c6_339, %c1_340] : memref<8x8xf32, #tpu.memory_space<smem>>
    %949 = vector.broadcast %948 : f32 to vector<8x8xf32>
    %950 = arith.mulf %882, %949 : vector<8x8xf32>
    %951 = arith.addf %947, %950 : vector<8x8xf32>
    %c7_341 = arith.constant 7 : index
    %c1_342 = arith.constant 1 : index
    %952 = memref.load %arg6[%c7_341, %c1_342] : memref<8x8xf32, #tpu.memory_space<smem>>
    %953 = vector.broadcast %952 : f32 to vector<8x8xf32>
    %954 = arith.mulf %888, %953 : vector<8x8xf32>
    %955 = arith.addf %951, %954 : vector<8x8xf32>
    %c1_343 = arith.constant 1 : index
    %956 = memref.load %arg7[%c1_343] : memref<8xf32, #tpu.memory_space<smem>>
    %957 = vector.broadcast %956 : f32 to vector<8x8xf32>
    %958 = arith.addf %955, %957 : vector<8x8xf32>
    %cst_344 = arith.constant 0.000000e+00 : f32
    %959 = vector.broadcast %cst_344 : f32 to vector<8x8xf32>
    %960 = arith.maximumf %958, %959 : vector<8x8xf32>
    %c0_345 = arith.constant 0 : index
    %c2_346 = arith.constant 2 : index
    %961 = memref.load %arg6[%c0_345, %c2_346] : memref<8x8xf32, #tpu.memory_space<smem>>
    %962 = vector.broadcast %961 : f32 to vector<8x8xf32>
    %963 = arith.mulf %846, %962 : vector<8x8xf32>
    %c1_347 = arith.constant 1 : index
    %c2_348 = arith.constant 2 : index
    %964 = memref.load %arg6[%c1_347, %c2_348] : memref<8x8xf32, #tpu.memory_space<smem>>
    %965 = vector.broadcast %964 : f32 to vector<8x8xf32>
    %966 = arith.mulf %852, %965 : vector<8x8xf32>
    %967 = arith.addf %963, %966 : vector<8x8xf32>
    %c2_349 = arith.constant 2 : index
    %c2_350 = arith.constant 2 : index
    %968 = memref.load %arg6[%c2_349, %c2_350] : memref<8x8xf32, #tpu.memory_space<smem>>
    %969 = vector.broadcast %968 : f32 to vector<8x8xf32>
    %970 = arith.mulf %858, %969 : vector<8x8xf32>
    %971 = arith.addf %967, %970 : vector<8x8xf32>
    %c3_351 = arith.constant 3 : index
    %c2_352 = arith.constant 2 : index
    %972 = memref.load %arg6[%c3_351, %c2_352] : memref<8x8xf32, #tpu.memory_space<smem>>
    %973 = vector.broadcast %972 : f32 to vector<8x8xf32>
    %974 = arith.mulf %864, %973 : vector<8x8xf32>
    %975 = arith.addf %971, %974 : vector<8x8xf32>
    %c4_353 = arith.constant 4 : index
    %c2_354 = arith.constant 2 : index
    %976 = memref.load %arg6[%c4_353, %c2_354] : memref<8x8xf32, #tpu.memory_space<smem>>
    %977 = vector.broadcast %976 : f32 to vector<8x8xf32>
    %978 = arith.mulf %870, %977 : vector<8x8xf32>
    %979 = arith.addf %975, %978 : vector<8x8xf32>
    %c5_355 = arith.constant 5 : index
    %c2_356 = arith.constant 2 : index
    %980 = memref.load %arg6[%c5_355, %c2_356] : memref<8x8xf32, #tpu.memory_space<smem>>
    %981 = vector.broadcast %980 : f32 to vector<8x8xf32>
    %982 = arith.mulf %876, %981 : vector<8x8xf32>
    %983 = arith.addf %979, %982 : vector<8x8xf32>
    %c6_357 = arith.constant 6 : index
    %c2_358 = arith.constant 2 : index
    %984 = memref.load %arg6[%c6_357, %c2_358] : memref<8x8xf32, #tpu.memory_space<smem>>
    %985 = vector.broadcast %984 : f32 to vector<8x8xf32>
    %986 = arith.mulf %882, %985 : vector<8x8xf32>
    %987 = arith.addf %983, %986 : vector<8x8xf32>
    %c7_359 = arith.constant 7 : index
    %c2_360 = arith.constant 2 : index
    %988 = memref.load %arg6[%c7_359, %c2_360] : memref<8x8xf32, #tpu.memory_space<smem>>
    %989 = vector.broadcast %988 : f32 to vector<8x8xf32>
    %990 = arith.mulf %888, %989 : vector<8x8xf32>
    %991 = arith.addf %987, %990 : vector<8x8xf32>
    %c2_361 = arith.constant 2 : index
    %992 = memref.load %arg7[%c2_361] : memref<8xf32, #tpu.memory_space<smem>>
    %993 = vector.broadcast %992 : f32 to vector<8x8xf32>
    %994 = arith.addf %991, %993 : vector<8x8xf32>
    %cst_362 = arith.constant 0.000000e+00 : f32
    %995 = vector.broadcast %cst_362 : f32 to vector<8x8xf32>
    %996 = arith.maximumf %994, %995 : vector<8x8xf32>
    %c0_363 = arith.constant 0 : index
    %c3_364 = arith.constant 3 : index
    %997 = memref.load %arg6[%c0_363, %c3_364] : memref<8x8xf32, #tpu.memory_space<smem>>
    %998 = vector.broadcast %997 : f32 to vector<8x8xf32>
    %999 = arith.mulf %846, %998 : vector<8x8xf32>
    %c1_365 = arith.constant 1 : index
    %c3_366 = arith.constant 3 : index
    %1000 = memref.load %arg6[%c1_365, %c3_366] : memref<8x8xf32, #tpu.memory_space<smem>>
    %1001 = vector.broadcast %1000 : f32 to vector<8x8xf32>
    %1002 = arith.mulf %852, %1001 : vector<8x8xf32>
    %1003 = arith.addf %999, %1002 : vector<8x8xf32>
    %c2_367 = arith.constant 2 : index
    %c3_368 = arith.constant 3 : index
    %1004 = memref.load %arg6[%c2_367, %c3_368] : memref<8x8xf32, #tpu.memory_space<smem>>
    %1005 = vector.broadcast %1004 : f32 to vector<8x8xf32>
    %1006 = arith.mulf %858, %1005 : vector<8x8xf32>
    %1007 = arith.addf %1003, %1006 : vector<8x8xf32>
    %c3_369 = arith.constant 3 : index
    %c3_370 = arith.constant 3 : index
    %1008 = memref.load %arg6[%c3_369, %c3_370] : memref<8x8xf32, #tpu.memory_space<smem>>
    %1009 = vector.broadcast %1008 : f32 to vector<8x8xf32>
    %1010 = arith.mulf %864, %1009 : vector<8x8xf32>
    %1011 = arith.addf %1007, %1010 : vector<8x8xf32>
    %c4_371 = arith.constant 4 : index
    %c3_372 = arith.constant 3 : index
    %1012 = memref.load %arg6[%c4_371, %c3_372] : memref<8x8xf32, #tpu.memory_space<smem>>
    %1013 = vector.broadcast %1012 : f32 to vector<8x8xf32>
    %1014 = arith.mulf %870, %1013 : vector<8x8xf32>
    %1015 = arith.addf %1011, %1014 : vector<8x8xf32>
    %c5_373 = arith.constant 5 : index
    %c3_374 = arith.constant 3 : index
    %1016 = memref.load %arg6[%c5_373, %c3_374] : memref<8x8xf32, #tpu.memory_space<smem>>
    %1017 = vector.broadcast %1016 : f32 to vector<8x8xf32>
    %1018 = arith.mulf %876, %1017 : vector<8x8xf32>
    %1019 = arith.addf %1015, %1018 : vector<8x8xf32>
    %c6_375 = arith.constant 6 : index
    %c3_376 = arith.constant 3 : index
    %1020 = memref.load %arg6[%c6_375, %c3_376] : memref<8x8xf32, #tpu.memory_space<smem>>
    %1021 = vector.broadcast %1020 : f32 to vector<8x8xf32>
    %1022 = arith.mulf %882, %1021 : vector<8x8xf32>
    %1023 = arith.addf %1019, %1022 : vector<8x8xf32>
    %c7_377 = arith.constant 7 : index
    %c3_378 = arith.constant 3 : index
    %1024 = memref.load %arg6[%c7_377, %c3_378] : memref<8x8xf32, #tpu.memory_space<smem>>
    %1025 = vector.broadcast %1024 : f32 to vector<8x8xf32>
    %1026 = arith.mulf %888, %1025 : vector<8x8xf32>
    %1027 = arith.addf %1023, %1026 : vector<8x8xf32>
    %c3_379 = arith.constant 3 : index
    %1028 = memref.load %arg7[%c3_379] : memref<8xf32, #tpu.memory_space<smem>>
    %1029 = vector.broadcast %1028 : f32 to vector<8x8xf32>
    %1030 = arith.addf %1027, %1029 : vector<8x8xf32>
    %cst_380 = arith.constant 0.000000e+00 : f32
    %1031 = vector.broadcast %cst_380 : f32 to vector<8x8xf32>
    %1032 = arith.maximumf %1030, %1031 : vector<8x8xf32>
    %c0_381 = arith.constant 0 : index
    %c4_382 = arith.constant 4 : index
    %1033 = memref.load %arg6[%c0_381, %c4_382] : memref<8x8xf32, #tpu.memory_space<smem>>
    %1034 = vector.broadcast %1033 : f32 to vector<8x8xf32>
    %1035 = arith.mulf %846, %1034 : vector<8x8xf32>
    %c1_383 = arith.constant 1 : index
    %c4_384 = arith.constant 4 : index
    %1036 = memref.load %arg6[%c1_383, %c4_384] : memref<8x8xf32, #tpu.memory_space<smem>>
    %1037 = vector.broadcast %1036 : f32 to vector<8x8xf32>
    %1038 = arith.mulf %852, %1037 : vector<8x8xf32>
    %1039 = arith.addf %1035, %1038 : vector<8x8xf32>
    %c2_385 = arith.constant 2 : index
    %c4_386 = arith.constant 4 : index
    %1040 = memref.load %arg6[%c2_385, %c4_386] : memref<8x8xf32, #tpu.memory_space<smem>>
    %1041 = vector.broadcast %1040 : f32 to vector<8x8xf32>
    %1042 = arith.mulf %858, %1041 : vector<8x8xf32>
    %1043 = arith.addf %1039, %1042 : vector<8x8xf32>
    %c3_387 = arith.constant 3 : index
    %c4_388 = arith.constant 4 : index
    %1044 = memref.load %arg6[%c3_387, %c4_388] : memref<8x8xf32, #tpu.memory_space<smem>>
    %1045 = vector.broadcast %1044 : f32 to vector<8x8xf32>
    %1046 = arith.mulf %864, %1045 : vector<8x8xf32>
    %1047 = arith.addf %1043, %1046 : vector<8x8xf32>
    %c4_389 = arith.constant 4 : index
    %c4_390 = arith.constant 4 : index
    %1048 = memref.load %arg6[%c4_389, %c4_390] : memref<8x8xf32, #tpu.memory_space<smem>>
    %1049 = vector.broadcast %1048 : f32 to vector<8x8xf32>
    %1050 = arith.mulf %870, %1049 : vector<8x8xf32>
    %1051 = arith.addf %1047, %1050 : vector<8x8xf32>
    %c5_391 = arith.constant 5 : index
    %c4_392 = arith.constant 4 : index
    %1052 = memref.load %arg6[%c5_391, %c4_392] : memref<8x8xf32, #tpu.memory_space<smem>>
    %1053 = vector.broadcast %1052 : f32 to vector<8x8xf32>
    %1054 = arith.mulf %876, %1053 : vector<8x8xf32>
    %1055 = arith.addf %1051, %1054 : vector<8x8xf32>
    %c6_393 = arith.constant 6 : index
    %c4_394 = arith.constant 4 : index
    %1056 = memref.load %arg6[%c6_393, %c4_394] : memref<8x8xf32, #tpu.memory_space<smem>>
    %1057 = vector.broadcast %1056 : f32 to vector<8x8xf32>
    %1058 = arith.mulf %882, %1057 : vector<8x8xf32>
    %1059 = arith.addf %1055, %1058 : vector<8x8xf32>
    %c7_395 = arith.constant 7 : index
    %c4_396 = arith.constant 4 : index
    %1060 = memref.load %arg6[%c7_395, %c4_396] : memref<8x8xf32, #tpu.memory_space<smem>>
    %1061 = vector.broadcast %1060 : f32 to vector<8x8xf32>
    %1062 = arith.mulf %888, %1061 : vector<8x8xf32>
    %1063 = arith.addf %1059, %1062 : vector<8x8xf32>
    %c4_397 = arith.constant 4 : index
    %1064 = memref.load %arg7[%c4_397] : memref<8xf32, #tpu.memory_space<smem>>
    %1065 = vector.broadcast %1064 : f32 to vector<8x8xf32>
    %1066 = arith.addf %1063, %1065 : vector<8x8xf32>
    %cst_398 = arith.constant 0.000000e+00 : f32
    %1067 = vector.broadcast %cst_398 : f32 to vector<8x8xf32>
    %1068 = arith.maximumf %1066, %1067 : vector<8x8xf32>
    %c0_399 = arith.constant 0 : index
    %c5_400 = arith.constant 5 : index
    %1069 = memref.load %arg6[%c0_399, %c5_400] : memref<8x8xf32, #tpu.memory_space<smem>>
    %1070 = vector.broadcast %1069 : f32 to vector<8x8xf32>
    %1071 = arith.mulf %846, %1070 : vector<8x8xf32>
    %c1_401 = arith.constant 1 : index
    %c5_402 = arith.constant 5 : index
    %1072 = memref.load %arg6[%c1_401, %c5_402] : memref<8x8xf32, #tpu.memory_space<smem>>
    %1073 = vector.broadcast %1072 : f32 to vector<8x8xf32>
    %1074 = arith.mulf %852, %1073 : vector<8x8xf32>
    %1075 = arith.addf %1071, %1074 : vector<8x8xf32>
    %c2_403 = arith.constant 2 : index
    %c5_404 = arith.constant 5 : index
    %1076 = memref.load %arg6[%c2_403, %c5_404] : memref<8x8xf32, #tpu.memory_space<smem>>
    %1077 = vector.broadcast %1076 : f32 to vector<8x8xf32>
    %1078 = arith.mulf %858, %1077 : vector<8x8xf32>
    %1079 = arith.addf %1075, %1078 : vector<8x8xf32>
    %c3_405 = arith.constant 3 : index
    %c5_406 = arith.constant 5 : index
    %1080 = memref.load %arg6[%c3_405, %c5_406] : memref<8x8xf32, #tpu.memory_space<smem>>
    %1081 = vector.broadcast %1080 : f32 to vector<8x8xf32>
    %1082 = arith.mulf %864, %1081 : vector<8x8xf32>
    %1083 = arith.addf %1079, %1082 : vector<8x8xf32>
    %c4_407 = arith.constant 4 : index
    %c5_408 = arith.constant 5 : index
    %1084 = memref.load %arg6[%c4_407, %c5_408] : memref<8x8xf32, #tpu.memory_space<smem>>
    %1085 = vector.broadcast %1084 : f32 to vector<8x8xf32>
    %1086 = arith.mulf %870, %1085 : vector<8x8xf32>
    %1087 = arith.addf %1083, %1086 : vector<8x8xf32>
    %c5_409 = arith.constant 5 : index
    %c5_410 = arith.constant 5 : index
    %1088 = memref.load %arg6[%c5_409, %c5_410] : memref<8x8xf32, #tpu.memory_space<smem>>
    %1089 = vector.broadcast %1088 : f32 to vector<8x8xf32>
    %1090 = arith.mulf %876, %1089 : vector<8x8xf32>
    %1091 = arith.addf %1087, %1090 : vector<8x8xf32>
    %c6_411 = arith.constant 6 : index
    %c5_412 = arith.constant 5 : index
    %1092 = memref.load %arg6[%c6_411, %c5_412] : memref<8x8xf32, #tpu.memory_space<smem>>
    %1093 = vector.broadcast %1092 : f32 to vector<8x8xf32>
    %1094 = arith.mulf %882, %1093 : vector<8x8xf32>
    %1095 = arith.addf %1091, %1094 : vector<8x8xf32>
    %c7_413 = arith.constant 7 : index
    %c5_414 = arith.constant 5 : index
    %1096 = memref.load %arg6[%c7_413, %c5_414] : memref<8x8xf32, #tpu.memory_space<smem>>
    %1097 = vector.broadcast %1096 : f32 to vector<8x8xf32>
    %1098 = arith.mulf %888, %1097 : vector<8x8xf32>
    %1099 = arith.addf %1095, %1098 : vector<8x8xf32>
    %c5_415 = arith.constant 5 : index
    %1100 = memref.load %arg7[%c5_415] : memref<8xf32, #tpu.memory_space<smem>>
    %1101 = vector.broadcast %1100 : f32 to vector<8x8xf32>
    %1102 = arith.addf %1099, %1101 : vector<8x8xf32>
    %cst_416 = arith.constant 0.000000e+00 : f32
    %1103 = vector.broadcast %cst_416 : f32 to vector<8x8xf32>
    %1104 = arith.maximumf %1102, %1103 : vector<8x8xf32>
    %c0_417 = arith.constant 0 : index
    %c6_418 = arith.constant 6 : index
    %1105 = memref.load %arg6[%c0_417, %c6_418] : memref<8x8xf32, #tpu.memory_space<smem>>
    %1106 = vector.broadcast %1105 : f32 to vector<8x8xf32>
    %1107 = arith.mulf %846, %1106 : vector<8x8xf32>
    %c1_419 = arith.constant 1 : index
    %c6_420 = arith.constant 6 : index
    %1108 = memref.load %arg6[%c1_419, %c6_420] : memref<8x8xf32, #tpu.memory_space<smem>>
    %1109 = vector.broadcast %1108 : f32 to vector<8x8xf32>
    %1110 = arith.mulf %852, %1109 : vector<8x8xf32>
    %1111 = arith.addf %1107, %1110 : vector<8x8xf32>
    %c2_421 = arith.constant 2 : index
    %c6_422 = arith.constant 6 : index
    %1112 = memref.load %arg6[%c2_421, %c6_422] : memref<8x8xf32, #tpu.memory_space<smem>>
    %1113 = vector.broadcast %1112 : f32 to vector<8x8xf32>
    %1114 = arith.mulf %858, %1113 : vector<8x8xf32>
    %1115 = arith.addf %1111, %1114 : vector<8x8xf32>
    %c3_423 = arith.constant 3 : index
    %c6_424 = arith.constant 6 : index
    %1116 = memref.load %arg6[%c3_423, %c6_424] : memref<8x8xf32, #tpu.memory_space<smem>>
    %1117 = vector.broadcast %1116 : f32 to vector<8x8xf32>
    %1118 = arith.mulf %864, %1117 : vector<8x8xf32>
    %1119 = arith.addf %1115, %1118 : vector<8x8xf32>
    %c4_425 = arith.constant 4 : index
    %c6_426 = arith.constant 6 : index
    %1120 = memref.load %arg6[%c4_425, %c6_426] : memref<8x8xf32, #tpu.memory_space<smem>>
    %1121 = vector.broadcast %1120 : f32 to vector<8x8xf32>
    %1122 = arith.mulf %870, %1121 : vector<8x8xf32>
    %1123 = arith.addf %1119, %1122 : vector<8x8xf32>
    %c5_427 = arith.constant 5 : index
    %c6_428 = arith.constant 6 : index
    %1124 = memref.load %arg6[%c5_427, %c6_428] : memref<8x8xf32, #tpu.memory_space<smem>>
    %1125 = vector.broadcast %1124 : f32 to vector<8x8xf32>
    %1126 = arith.mulf %876, %1125 : vector<8x8xf32>
    %1127 = arith.addf %1123, %1126 : vector<8x8xf32>
    %c6_429 = arith.constant 6 : index
    %c6_430 = arith.constant 6 : index
    %1128 = memref.load %arg6[%c6_429, %c6_430] : memref<8x8xf32, #tpu.memory_space<smem>>
    %1129 = vector.broadcast %1128 : f32 to vector<8x8xf32>
    %1130 = arith.mulf %882, %1129 : vector<8x8xf32>
    %1131 = arith.addf %1127, %1130 : vector<8x8xf32>
    %c7_431 = arith.constant 7 : index
    %c6_432 = arith.constant 6 : index
    %1132 = memref.load %arg6[%c7_431, %c6_432] : memref<8x8xf32, #tpu.memory_space<smem>>
    %1133 = vector.broadcast %1132 : f32 to vector<8x8xf32>
    %1134 = arith.mulf %888, %1133 : vector<8x8xf32>
    %1135 = arith.addf %1131, %1134 : vector<8x8xf32>
    %c6_433 = arith.constant 6 : index
    %1136 = memref.load %arg7[%c6_433] : memref<8xf32, #tpu.memory_space<smem>>
    %1137 = vector.broadcast %1136 : f32 to vector<8x8xf32>
    %1138 = arith.addf %1135, %1137 : vector<8x8xf32>
    %cst_434 = arith.constant 0.000000e+00 : f32
    %1139 = vector.broadcast %cst_434 : f32 to vector<8x8xf32>
    %1140 = arith.maximumf %1138, %1139 : vector<8x8xf32>
    %c0_435 = arith.constant 0 : index
    %c7_436 = arith.constant 7 : index
    %1141 = memref.load %arg6[%c0_435, %c7_436] : memref<8x8xf32, #tpu.memory_space<smem>>
    %1142 = vector.broadcast %1141 : f32 to vector<8x8xf32>
    %1143 = arith.mulf %846, %1142 : vector<8x8xf32>
    %c1_437 = arith.constant 1 : index
    %c7_438 = arith.constant 7 : index
    %1144 = memref.load %arg6[%c1_437, %c7_438] : memref<8x8xf32, #tpu.memory_space<smem>>
    %1145 = vector.broadcast %1144 : f32 to vector<8x8xf32>
    %1146 = arith.mulf %852, %1145 : vector<8x8xf32>
    %1147 = arith.addf %1143, %1146 : vector<8x8xf32>
    %c2_439 = arith.constant 2 : index
    %c7_440 = arith.constant 7 : index
    %1148 = memref.load %arg6[%c2_439, %c7_440] : memref<8x8xf32, #tpu.memory_space<smem>>
    %1149 = vector.broadcast %1148 : f32 to vector<8x8xf32>
    %1150 = arith.mulf %858, %1149 : vector<8x8xf32>
    %1151 = arith.addf %1147, %1150 : vector<8x8xf32>
    %c3_441 = arith.constant 3 : index
    %c7_442 = arith.constant 7 : index
    %1152 = memref.load %arg6[%c3_441, %c7_442] : memref<8x8xf32, #tpu.memory_space<smem>>
    %1153 = vector.broadcast %1152 : f32 to vector<8x8xf32>
    %1154 = arith.mulf %864, %1153 : vector<8x8xf32>
    %1155 = arith.addf %1151, %1154 : vector<8x8xf32>
    %c4_443 = arith.constant 4 : index
    %c7_444 = arith.constant 7 : index
    %1156 = memref.load %arg6[%c4_443, %c7_444] : memref<8x8xf32, #tpu.memory_space<smem>>
    %1157 = vector.broadcast %1156 : f32 to vector<8x8xf32>
    %1158 = arith.mulf %870, %1157 : vector<8x8xf32>
    %1159 = arith.addf %1155, %1158 : vector<8x8xf32>
    %c5_445 = arith.constant 5 : index
    %c7_446 = arith.constant 7 : index
    %1160 = memref.load %arg6[%c5_445, %c7_446] : memref<8x8xf32, #tpu.memory_space<smem>>
    %1161 = vector.broadcast %1160 : f32 to vector<8x8xf32>
    %1162 = arith.mulf %876, %1161 : vector<8x8xf32>
    %1163 = arith.addf %1159, %1162 : vector<8x8xf32>
    %c6_447 = arith.constant 6 : index
    %c7_448 = arith.constant 7 : index
    %1164 = memref.load %arg6[%c6_447, %c7_448] : memref<8x8xf32, #tpu.memory_space<smem>>
    %1165 = vector.broadcast %1164 : f32 to vector<8x8xf32>
    %1166 = arith.mulf %882, %1165 : vector<8x8xf32>
    %1167 = arith.addf %1163, %1166 : vector<8x8xf32>
    %c7_449 = arith.constant 7 : index
    %c7_450 = arith.constant 7 : index
    %1168 = memref.load %arg6[%c7_449, %c7_450] : memref<8x8xf32, #tpu.memory_space<smem>>
    %1169 = vector.broadcast %1168 : f32 to vector<8x8xf32>
    %1170 = arith.mulf %888, %1169 : vector<8x8xf32>
    %1171 = arith.addf %1167, %1170 : vector<8x8xf32>
    %c7_451 = arith.constant 7 : index
    %1172 = memref.load %arg7[%c7_451] : memref<8xf32, #tpu.memory_space<smem>>
    %1173 = vector.broadcast %1172 : f32 to vector<8x8xf32>
    %1174 = arith.addf %1171, %1173 : vector<8x8xf32>
    %cst_452 = arith.constant 0.000000e+00 : f32
    %1175 = vector.broadcast %cst_452 : f32 to vector<8x8xf32>
    %1176 = arith.maximumf %1174, %1175 : vector<8x8xf32>
    %1177 = vector.shape_cast %924 : vector<8x8xf32> to vector<1x8x8xf32>
    %1178 = vector.shape_cast %960 : vector<8x8xf32> to vector<1x8x8xf32>
    %1179 = vector.shape_cast %996 : vector<8x8xf32> to vector<1x8x8xf32>
    %1180 = vector.shape_cast %1032 : vector<8x8xf32> to vector<1x8x8xf32>
    %1181 = vector.shape_cast %1068 : vector<8x8xf32> to vector<1x8x8xf32>
    %1182 = vector.shape_cast %1104 : vector<8x8xf32> to vector<1x8x8xf32>
    %1183 = vector.shape_cast %1140 : vector<8x8xf32> to vector<1x8x8xf32>
    %1184 = vector.shape_cast %1176 : vector<8x8xf32> to vector<1x8x8xf32>
    %1185 = tpu.concatenate %1177, %1178, %1179, %1180, %1181, %1182, %1183, %1184 in 0 : vector<1x8x8xf32>, vector<1x8x8xf32>, vector<1x8x8xf32>, vector<1x8x8xf32>, vector<1x8x8xf32>, vector<1x8x8xf32>, vector<1x8x8xf32>, vector<1x8x8xf32> -> vector<8x8x8xf32>
    %1186 = vector.extract_strided_slice %1185 {offsets = [0, 0, 0], sizes = [8, 1, 8], strides = [1, 1, 1]} : vector<8x8x8xf32> to vector<8x1x8xf32>
    %1187 = vector.shape_cast %1186 : vector<8x1x8xf32> to vector<8x8xf32>
    %c0_453 = arith.constant 0 : index
    %c0_454 = arith.constant 0 : index
    %c0_455 = arith.constant 0 : index
    %1188 = vector.load %arg8[%c0_453, %c0_454, %c0_455] : memref<1x8x64xf32, #tpu.memory_space<vmem>>, vector<1x8x8xf32>
    %1189 = vector.shape_cast %1188 : vector<1x8x8xf32> to vector<8x8xf32>
    %1190 = vector.shape_cast %1187 : vector<8x8xf32> to vector<1x8x8xf32>
    tpu.vector_store %arg8[%c0_453, %c0_454, %c0_455], %1190 {strides = array<i32>} : memref<1x8x64xf32, #tpu.memory_space<vmem>>, vector<1x8x8xf32>,
    %1191 = vector.extract_strided_slice %1185 {offsets = [0, 1, 0], sizes = [8, 1, 8], strides = [1, 1, 1]} : vector<8x8x8xf32> to vector<8x1x8xf32>
    %1192 = vector.shape_cast %1191 : vector<8x1x8xf32> to vector<8x8xf32>
    %c0_456 = arith.constant 0 : index
    %c0_457 = arith.constant 0 : index
    %c8_458 = arith.constant 8 : index
    %1193 = vector.load %arg8[%c0_456, %c0_457, %c8_458] : memref<1x8x64xf32, #tpu.memory_space<vmem>>, vector<1x8x8xf32>
    %1194 = vector.shape_cast %1193 : vector<1x8x8xf32> to vector<8x8xf32>
    %1195 = vector.shape_cast %1192 : vector<8x8xf32> to vector<1x8x8xf32>
    tpu.vector_store %arg8[%c0_456, %c0_457, %c8_458], %1195 {strides = array<i32>} : memref<1x8x64xf32, #tpu.memory_space<vmem>>, vector<1x8x8xf32>,
    %1196 = vector.extract_strided_slice %1185 {offsets = [0, 2, 0], sizes = [8, 1, 8], strides = [1, 1, 1]} : vector<8x8x8xf32> to vector<8x1x8xf32>
    %1197 = vector.shape_cast %1196 : vector<8x1x8xf32> to vector<8x8xf32>
    %c0_459 = arith.constant 0 : index
    %c0_460 = arith.constant 0 : index
    %c16 = arith.constant 16 : index
    %1198 = vector.load %arg8[%c0_459, %c0_460, %c16] : memref<1x8x64xf32, #tpu.memory_space<vmem>>, vector<1x8x8xf32>
    %1199 = vector.shape_cast %1198 : vector<1x8x8xf32> to vector<8x8xf32>
    %1200 = vector.shape_cast %1197 : vector<8x8xf32> to vector<1x8x8xf32>
    tpu.vector_store %arg8[%c0_459, %c0_460, %c16], %1200 {strides = array<i32>} : memref<1x8x64xf32, #tpu.memory_space<vmem>>, vector<1x8x8xf32>,
    %1201 = vector.extract_strided_slice %1185 {offsets = [0, 3, 0], sizes = [8, 1, 8], strides = [1, 1, 1]} : vector<8x8x8xf32> to vector<8x1x8xf32>
    %1202 = vector.shape_cast %1201 : vector<8x1x8xf32> to vector<8x8xf32>
    %c0_461 = arith.constant 0 : index
    %c0_462 = arith.constant 0 : index
    %c24 = arith.constant 24 : index
    %1203 = vector.load %arg8[%c0_461, %c0_462, %c24] : memref<1x8x64xf32, #tpu.memory_space<vmem>>, vector<1x8x8xf32>
    %1204 = vector.shape_cast %1203 : vector<1x8x8xf32> to vector<8x8xf32>
    %1205 = vector.shape_cast %1202 : vector<8x8xf32> to vector<1x8x8xf32>
    tpu.vector_store %arg8[%c0_461, %c0_462, %c24], %1205 {strides = array<i32>} : memref<1x8x64xf32, #tpu.memory_space<vmem>>, vector<1x8x8xf32>,
    %1206 = vector.extract_strided_slice %1185 {offsets = [0, 4, 0], sizes = [8, 1, 8], strides = [1, 1, 1]} : vector<8x8x8xf32> to vector<8x1x8xf32>
    %1207 = vector.shape_cast %1206 : vector<8x1x8xf32> to vector<8x8xf32>
    %c0_463 = arith.constant 0 : index
    %c0_464 = arith.constant 0 : index
    %c32 = arith.constant 32 : index
    %1208 = vector.load %arg8[%c0_463, %c0_464, %c32] : memref<1x8x64xf32, #tpu.memory_space<vmem>>, vector<1x8x8xf32>
    %1209 = vector.shape_cast %1208 : vector<1x8x8xf32> to vector<8x8xf32>
    %1210 = vector.shape_cast %1207 : vector<8x8xf32> to vector<1x8x8xf32>
    tpu.vector_store %arg8[%c0_463, %c0_464, %c32], %1210 {strides = array<i32>} : memref<1x8x64xf32, #tpu.memory_space<vmem>>, vector<1x8x8xf32>,
    %1211 = vector.extract_strided_slice %1185 {offsets = [0, 5, 0], sizes = [8, 1, 8], strides = [1, 1, 1]} : vector<8x8x8xf32> to vector<8x1x8xf32>
    %1212 = vector.shape_cast %1211 : vector<8x1x8xf32> to vector<8x8xf32>
    %c0_465 = arith.constant 0 : index
    %c0_466 = arith.constant 0 : index
    %c40 = arith.constant 40 : index
    %1213 = vector.load %arg8[%c0_465, %c0_466, %c40] : memref<1x8x64xf32, #tpu.memory_space<vmem>>, vector<1x8x8xf32>
    %1214 = vector.shape_cast %1213 : vector<1x8x8xf32> to vector<8x8xf32>
    %1215 = vector.shape_cast %1212 : vector<8x8xf32> to vector<1x8x8xf32>
    tpu.vector_store %arg8[%c0_465, %c0_466, %c40], %1215 {strides = array<i32>} : memref<1x8x64xf32, #tpu.memory_space<vmem>>, vector<1x8x8xf32>,
    %1216 = vector.extract_strided_slice %1185 {offsets = [0, 6, 0], sizes = [8, 1, 8], strides = [1, 1, 1]} : vector<8x8x8xf32> to vector<8x1x8xf32>
    %1217 = vector.shape_cast %1216 : vector<8x1x8xf32> to vector<8x8xf32>
    %c0_467 = arith.constant 0 : index
    %c0_468 = arith.constant 0 : index
    %c48 = arith.constant 48 : index
    %1218 = vector.load %arg8[%c0_467, %c0_468, %c48] : memref<1x8x64xf32, #tpu.memory_space<vmem>>, vector<1x8x8xf32>
    %1219 = vector.shape_cast %1218 : vector<1x8x8xf32> to vector<8x8xf32>
    %1220 = vector.shape_cast %1217 : vector<8x8xf32> to vector<1x8x8xf32>
    tpu.vector_store %arg8[%c0_467, %c0_468, %c48], %1220 {strides = array<i32>} : memref<1x8x64xf32, #tpu.memory_space<vmem>>, vector<1x8x8xf32>,
    %1221 = vector.extract_strided_slice %1185 {offsets = [0, 7, 0], sizes = [8, 1, 8], strides = [1, 1, 1]} : vector<8x8x8xf32> to vector<8x1x8xf32>
    %1222 = vector.shape_cast %1221 : vector<8x1x8xf32> to vector<8x8xf32>
    %c0_469 = arith.constant 0 : index
    %c0_470 = arith.constant 0 : index
    %c56 = arith.constant 56 : index
    %1223 = vector.load %arg8[%c0_469, %c0_470, %c56] : memref<1x8x64xf32, #tpu.memory_space<vmem>>, vector<1x8x8xf32>
    %1224 = vector.shape_cast %1223 : vector<1x8x8xf32> to vector<8x8xf32>
    %1225 = vector.shape_cast %1222 : vector<8x8xf32> to vector<1x8x8xf32>
    tpu.vector_store %arg8[%c0_469, %c0_470, %c56], %1225 {strides = array<i32>} : memref<1x8x64xf32, #tpu.memory_space<vmem>>, vector<1x8x8xf32>,
    return
  }
  func.func @transform_0(%arg0: i32) -> (i32, i32, i32, i32) {
    %c0_i32 = arith.constant 0 : i32
    %c0_i32_0 = arith.constant 0 : i32
    %c0_i32_1 = arith.constant 0 : i32
    %c0_i32_2 = arith.constant 0 : i32
    return %arg0, %c0_i32, %c0_i32_0, %c0_i32_1 : i32, i32, i32, i32
  }
  func.func @transform_1(%arg0: i32) -> (i32, i32) {
    %c0_i32 = arith.constant 0 : i32
    %c0_i32_0 = arith.constant 0 : i32
    %c0_i32_1 = arith.constant 0 : i32
    return %c0_i32, %c0_i32_0 : i32, i32
  }
  func.func @transform_2(%arg0: i32) -> (i32, i32) {
    %c0_i32 = arith.constant 0 : i32
    %c0_i32_0 = arith.constant 0 : i32
    %c0_i32_1 = arith.constant 0 : i32
    return %c0_i32, %c0_i32_0 : i32, i32
  }
  func.func @transform_3(%arg0: i32) -> i32 {
    %c0_i32 = arith.constant 0 : i32
    %c0_i32_0 = arith.constant 0 : i32
    return %c0_i32 : i32
  }
  func.func @transform_4(%arg0: i32) -> (i32, i32) {
    %c0_i32 = arith.constant 0 : i32
    %c0_i32_0 = arith.constant 0 : i32
    %c0_i32_1 = arith.constant 0 : i32
    return %c0_i32, %c0_i32_0 : i32, i32
  }
  func.func @transform_5(%arg0: i32) -> (i32, i32) {
    %c0_i32 = arith.constant 0 : i32
    %c0_i32_0 = arith.constant 0 : i32
    %c0_i32_1 = arith.constant 0 : i32
    return %c0_i32, %c0_i32_0 : i32, i32
  }
  func.func @transform_6(%arg0: i32) -> i32 {
    %c0_i32 = arith.constant 0 : i32
    %c0_i32_0 = arith.constant 0 : i32
    return %c0_i32 : i32
  }
  func.func @transform_7(%arg0: i32) -> (i32, i32, i32) {
    %c0_i32 = arith.constant 0 : i32
    %c0_i32_0 = arith.constant 0 : i32
    %c0_i32_1 = arith.constant 0 : i32
    return %arg0, %c0_i32, %c0_i32_0 : i32, i32, i32
  }
}

</mosaic_0001>

<bundles_post_ra>
// kernel: tpu_custom_call.1
= control target key start
LH: loop header
LB: loop body
LE: loop exit
PB: predicated region body
PF: predicated region fallthrough
CT: control target
= control target key end

     0   :  { %s4464_s0 = inlined_call_operand.hbm [shape: f32[2,4,8,32], index: 0, kind: input, shape index: {}]   ;;  %s4465_s1 = inlined_call_operand.vmem [shape: f32[9,4], index: 1, kind: input, shape index: {}]   ;;  %s4466_s2 = inlined_call_operand.vmem [shape: f32[4,8], index: 2, kind: input, shape index: {}]   ;;  %s4467_s3 = inlined_call_operand.vmem [shape: f32[8], index: 3, kind: input, shape index: {}]   ;;  %s4468_s4 = inlined_call_operand.vmem [shape: f32[9,8], index: 4, kind: input, shape index: {}]   ;;  %s4469_s5 = inlined_call_operand.vmem [shape: f32[8,8], index: 5, kind: input, shape index: {}]   ;;  %s4470_s6 = inlined_call_operand.vmem [shape: f32[8], index: 6, kind: input, shape index: {}]   ;;  %s4471_s7 = inlined_call_operand.hbm [shape: f32[2,8,64], index: 7, kind: output, shape index: {}]  }
   0x1   :  { %4503 = sst [smem:[#allocation39_spill]] %s4464_s0 }
   0x2   :  { %4504 = sst [smem:[#allocation40_spill]] %s4465_s1 }
   0x3   :  { %4505 = sst [smem:[#allocation41_spill]] %s4466_s2 }
   0x4   :  { %4506 = sst [smem:[#allocation42_spill]] %s4467_s3 }
   0x5   :  { %4507 = sst [smem:[#allocation43_spill]] %s4468_s4 }
   0x6   :  { %4508 = sst [smem:[#allocation44_spill]] %s4469_s5 }
   0x7   :  { %4509 = sst [smem:[#allocation45_spill]] %s4470_s6 }
   0x8   :  { %4510 = sst [smem:[#allocation46_spill]] %s4471_s7 }
   0x9   :  { %12 = vsyncpa [#allocation3], 0 }
   0xa   :  { %14 = vsyncpa [#allocation3 + $0x1], 0 }
   0xb   :  { %15 = vsyncpa [#allocation5], 0 }
   0xc   :  { %16 = vsyncpa [#allocation8], 0 }
   0xd   :  { %17 = vsyncpa [#allocation11], 0 }
   0xe   :  { %18 = vsyncpa [#allocation14], 0 }
   0xf   :  { %19 = vsyncpa [#allocation4], 0 }
  0x10   :  { %21 = vsyncpa [#allocation4 + $0x1], 0  ;;  %s3072_s24 = smov 0   ;;  %s3074_s25 = smov 0  }
  0x11   :  { %s3076_s26 = smov 0   ;;  %s3078_s27 = smov 0  }
  0x12 LB: > { %4511 = sst [smem:[#allocation22_spill]] %s2996_s24  ;;  %s4515_s2 = sld [smem:[#allocation41_spill]]  ;;  %s3008_s27 = sphi %s3078_s27, %s4576_s27   ;;  %s3004_s26 = sphi %s3076_s26, %s4579_s26   ;;  %s3000_s25 = sphi %s3074_s25, %s4578_s25   ;;  %s2996_s24 = sphi %s3072_s24, %s4577_s24  }
  0x13   : > { %4512 = sst [smem:[#allocation23_spill]] %s3000_s25  ;;  %s3096_s8 = sadd.s32 4294967295, %s3008_s27  }
  0x14   : > { %4513 = sst [smem:[#allocation24_spill]] %s3004_s26  ;;  %p2390_p0 = scmp.ge.s32.totalorder %s3008_s27, 1 }
  0x15   : > { %4514 = sst [smem:[#allocation25_spill]] %s3008_s27  ;;  %p4472_p1 = scmp.eq.s32.totalorder %s3096_s8, 0 }
  0x16   : > { %4516 = sst [smem:[#allocation26_spill]] %s3096_s8  ;;  %p210_p2 = scmp.lt.s32.totalorder %s3008_s27, 3 }
  0x17   : > { %s4518_s4 = sld [smem:[#allocation43_spill]]  ;;  %s4520_s1 = sld [smem:[#allocation40_spill]] }
  0x18   : > { %s236_s30 = sshll.u32 %s4515_s2, 4  ;;  %p3101_p3 = pnand %p2390_p0, %p210_p2  ;;  %s237_s30 = int_to_ptr.vmem [resolvable:$true] %s236_s30 }
  0x19   : > { %s4521_s3 = sld [smem:[#allocation42_spill]]  ;;  %s2806_s20 = scalar_lea.vmem %s237_s30, 64 }
  0x1a   : > { %s4517_s9 = scalar_select %p3101_p3, 1, 0 }
  0x1b   : > { %p2713_p5 = pneg %p3101_p3  ;;  %p2807_p7 = scmp.ne.s32.totalorder %s237_s30, %s2806_s20 }
  0x1c   : > { %p2814_p11 = scmp.lt.s32.totalorder %s237_s30, %s237_s30  ;;  %p2815_p12 = scmp.lt.s32.totalorder %s2806_s20, %s2806_s20 }
  0x1d   : > { %s257_s12 = sshll.u32 %s4518_s4, 4  ;;  %p3115_p6 = pnand %p2713_p5, %p4472_p1  ;;  %s3111_s12 = int_to_ptr.vmem [resolvable:$true] %s257_s12 }
  0x1e   : > { %s222_s16 = sshll.u32 %s4520_s1, 4  ;;  %p2816_p13 = por %p2815_p12, %p2814_p11  ;;  %s3122_s16 = int_to_ptr.vmem [resolvable:$true] %s222_s16 }
  0x1f   : > { %s247_s19 = sshll.u32 %s4521_s3, 4  ;;  %p3129_p8 = pneg %p3115_p6  ;;  %s248_s19 = int_to_ptr.vmem [resolvable:$true] %s247_s19 }
  0x21   : > { %p2809_p9 = pnand %p3129_p8, %p2807_p7 }
  0x23   : > { %p2810_p10 = pneg %p2809_p9 }
  0x25   : > { %p2817_p0 = pnand %p2816_p13, %p2810_p10 }
  0x27   : > { %2820 = shalt.err (!%p2817_p0)
}
  0x28   : > { %s3010_s22 = smov [#allocation7]   ;;  %s2821_s23 = scalar_lea.vmem %s3111_s12, 256 }
  0x29   : > { %2719 = dma.vmem_to_smem (!%p3115_p6), %s237_s30, 64, %s3010_s22, [#allocation8]  }
  0x2a   : > { %p2822_p2 = scmp.ne.s32.totalorder %s3111_s12, %s2821_s23  ;;  %p2829_p7 = scmp.lt.s32.totalorder %s3111_s12, %s3111_s12 }
  0x2b   : > { %p2830_p9 = scmp.lt.s32.totalorder %s2821_s23, %s2821_s23 }
  0x2c   : > { %p2824_p5 = pnand %p2822_p2, %p3129_p8 }
  0x2d   : > { %p2831_p1 = por %p2830_p9, %p2829_p7 }
  0x2e   : > { %p2825_p4 = pneg %p2824_p5 }
  0x30   : > { %p2832_p11 = pnand %p2831_p1, %p2825_p4 }
  0x32   : > { %2835 = shalt.err (!%p2832_p11)
}
  0x33   : > { %s3011_s28 = smov [#allocation10]   ;;  %s4474_s29 = smov 128  }
  0x34   : > { %s3013_s30 = smov 8   ;;  %s2836_s10 = scalar_lea.vmem %s3122_s16, 256 }
  0x35   : > { %2725 = dma.vmem_to_smem (!%p3115_p6), %s3111_s12, 256, %s3011_s28, [#allocation11], %s4474_s29, %s4474_s29, %s3013_s30  }
  0x36   : > { %p2837_p10 = scmp.ne.s32.totalorder %s3122_s16, %s2836_s10  ;;  %p2844_p4 = scmp.lt.s32.totalorder %s3122_s16, %s3122_s16 }
  0x37   : > { %p2845_p13 = scmp.lt.s32.totalorder %s2836_s10, %s2836_s10 }
  0x38   : > { %p2839_p12 = pnand %p2837_p10, %p3129_p8 }
  0x39   : > { %p2846_p0 = por %p2845_p13, %p2844_p4 }
  0x3a   : > { %p2840_p1 = pneg %p2839_p12 }
  0x3c   : > { %p2847_p2 = pnand %p2846_p0, %p2840_p1 }
  0x3e   : > { %2850 = shalt.err (!%p2847_p2)
}
  0x3f   : > { %s3014_s11 = smov [#allocation6]   ;;  %s2851_s15 = scalar_lea.vmem %s248_s19, 16 }
  0x40   : > { %2716 = dma.vmem_to_smem (!%p3115_p6), %s3122_s16, 256, %s3014_s11, [#allocation5], %s4474_s29, %s4474_s29, %s3013_s30  }
  0x41   : > { %p2852_p5 = scmp.ne.s32.totalorder %s248_s19, %s2851_s15  ;;  %p2859_p11 = scmp.lt.s32.totalorder %s248_s19, %s248_s19 }
  0x42   : > { %p2860_p10 = scmp.lt.s32.totalorder %s2851_s15, %s2851_s15 }
  0x43   : > { %p2854_p7 = pnand %p2852_p5, %p3129_p8 }
  0x44   : > { %p2861_p12 = por %p2860_p10, %p2859_p11 }
  0x45   : > { %p2855_p9 = pneg %p2854_p7 }
  0x47   : > { %p2862_p1 = pnand %p2861_p12, %p2855_p9 }
  0x49   : > { %2865 = shalt.err (!%p2862_p1)
}
  0x4a   : > { %s3015_s17 = smov [#allocation9]   ;;  %s4523_s5 = sld [smem:[#allocation44_spill]] }
  0x4b   : > { %2722 = dma.vmem_to_smem (!%p3115_p6), %s248_s19, 16, %s3015_s17, [#allocation8]  }
  0x4c   : > { %s4524_s6 = sld [smem:[#allocation45_spill]] }
  0x50   : > { %s271_s20 = sshll.u32 %s4523_s5, 4  ;;  %s272_s20 = int_to_ptr.vmem [resolvable:$true] %s271_s20 }
  0x51   : > { %s2866_s10 = scalar_lea.vmem %s272_s20, 128  ;;  %p2874_p2 = scmp.lt.s32.totalorder %s272_s20, %s272_s20 }
  0x52   : > { %s282_s28 = sshll.u32 %s4524_s6, 4  ;;  %p2867_p4 = scmp.ne.s32.totalorder %s272_s20, %s2866_s10  ;;  %s283_s28 = int_to_ptr.vmem [resolvable:$true] %s282_s28 }
  0x53   : > { %p2875_p5 = scmp.lt.s32.totalorder %s2866_s10, %s2866_s10 }
  0x54   : > { %p2869_p13 = pnand %p2867_p4, %p3129_p8 }
  0x55   : > { %p2876_p7 = por %p2875_p5, %p2874_p2 }
  0x56   : > { %p2870_p0 = pneg %p2869_p13 }
  0x58   : > { %p2877_p9 = pnand %p2876_p7, %p2870_p0 }
  0x5a   : > { %2880 = shalt.err (!%p2877_p9)
}
  0x5b   : > { %s3016_s19 = smov [#allocation12]   ;;  %s2881_s11 = scalar_lea.vmem %s283_s28, 16 }
  0x5c   : > { %2728 = dma.vmem_to_smem (!%p3115_p6), %s272_s20, 128, %s3016_s19, [#allocation11]  }
  0x5d   : > { %p2882_p11 = scmp.ne.s32.totalorder %s283_s28, %s2881_s11  ;;  %p2889_p1 = scmp.lt.s32.totalorder %s283_s28, %s283_s28 }
  0x5e   : > { %p2890_p3 = scmp.lt.s32.totalorder %s2881_s11, %s2881_s11 }
  0x5f   : > { %p2884_p10 = pnand %p2882_p11, %p3129_p8 }
  0x60   : > { %p2891_p4 = por %p2890_p3, %p2889_p1 }
  0x61   : > { %p2885_p12 = pneg %p2884_p10 }
  0x63   : > { %p2892_p13 = pnand %p2891_p4, %p2885_p12 }
  0x65   : > { %2895 = shalt.err (!%p2892_p13)
}
  0x66   : > { %s3017_s12 = smov [#allocation13]   ;;  %s2389_s21 = sadd.s32 4294967294, %s3008_s27  }
  0x67   : > { %2731 = dma.vmem_to_smem (!%p3115_p6), %s283_s28, 16, %s3017_s12, [#allocation14]  }
  0x68   : > { %s3185_s14 = sadd.s32 1, %s3008_s27   ;;  %s34_s15 = sadd.s32 1, %s3004_s26 }
  0x69   : > { %4525 = sst [smem:[#allocation27_spill]] %s3185_s14  ;;  %s31_s13 = ssub.s32 %s3008_s27, %s3185_s14 }
  0x6a   : > { %p32_p3 = scmp.eq.s32.totalorder %s31_s13, 0  ;;  %p41_p8 = scmp.ne.s32.totalorder %s3004_s26, %s3000_s25 }
  0x6b   : > { %p42_p0 = scmp.eq.s32.totalorder %s3008_s27, 0  ;;  %p47_p2 = scmp.ne.s32.totalorder %s3000_s25, %s2996_s24 }
  0x6c   : > { %s3196_s17 = scalar_select %p32_p3, %s3004_s26, %s34_s15  }
  0x6d   : > { %p3198_p5 = por %p42_p0, %p41_p8  ;;  %p4528_p7 = scmp.eq.s32.totalorder %s3096_s8, 0 }
  0x6e   : > { %4526 = sst [smem:[#allocation28_spill]] %s3196_s17  ;;  %p197_p9 = scmp.eq.s32.totalorder %s3096_s8, 1 }
  0x6f   : > { %p3204_p6 = por %p4528_p7, %p47_p2  ;;  %p203_p11 = scmp.eq.s32.totalorder %s2389_s21, 1 }
  0x70   : > { %p2746_p10 = scmp.lt.s32.totalorder %s3008_s27, 2  ;;  %s293_s20 = sand.u32 1, %s3004_s26  }
  0x71   : > { %p3211_p12 = por %p197_p9, %p41_p8  ;;  %p3215_p1 = por %p203_p11, %p47_p2 }
  0x72   : > { %s2398_s28 = sshll.u32 %s293_s20, 5  ;;  %s2644_s10 = sshll.u32 %s3008_s27, 9 }
  0x73   : > { %s4530_s22 = scalar_select %p3211_p12, 1, 0 }
  0x74   : > { %s4532_s23 = scalar_select %p3215_p1, 1, 0 }
  0x75   : > { %4531 = sst [smem:[#allocation29_spill]] %s4530_s22  ;;  %s4534_s0 = sld [smem:[#allocation39_spill]] }
  0x76   : > { %4533 = sst [smem:[#allocation30_spill]] %s4532_s23  ;;  %s297_s21 = scalar_lea.vmem [#allocation2], %s2398_s28 }
  0x77   : > { %s304_s13 = sshll.u32 %s297_s21, 4  ;;  %p3229_p4 = pnand %p2746_p10, %p3198_p5  ;;  %s3225_s13 = int_to_ptr.vmem [resolvable:$true] %s304_s13 }
  0x78   : > { %s3233_s29 = scalar_lea.sflag [#allocation3], %s293_s20 }
  0x79   : > { %p2898_p3 = pneg %p3229_p4 }
  0x7b   : > { %s3223_s12 = scalar_lea.hbm %s4534_s0, %s2644_s10  ;;  %s2901_s16 = scalar_lea.hbm %s4534_s0, 1024 }
  0x7c   : > { %s2896_s19 = scalar_lea.hbm %s3223_s12, 512  ;;  %p2902_p2 = scmp.lt.u32.totalorder %s3223_s12, %s4534_s0 }
  0x7d   : > { %p2897_p13 = scmp.ne.s32.totalorder %s3223_s12, %s2896_s19  ;;  %p2903_p5 = scmp.lt.u32.totalorder %s2901_s16, %s2896_s19 }
  0x7e   : > { %p2905_p9 = scmp.lt.u32.totalorder %s2896_s19, %s3223_s12 }
  0x7f   : > { %p2899_p8 = pnand %p2898_p3, %p2897_p13  ;;  %p2904_p7 = por %p2903_p5, %p2902_p2 }
  0x81   : > { %p2900_p0 = pneg %p2899_p8  ;;  %p2906_p11 = por %p2905_p9, %p2904_p7 }
  0x83   : > { %p2907_p10 = pnand %p2906_p11, %p2900_p0 }
  0x85   : > { %2910 = shalt.err (!%p2907_p10)
}
  0x86   : > { %s2911_s20 = scalar_lea.vmem %s3225_s13, 512  ;;  %s3018_s28 = smov [#allocation2]  }
  0x87   : > { %p2912_p13 = scmp.ne.s32.totalorder %s3225_s13, %s2911_s20  ;;  %s2916_s10 = sshll.u32 %s3018_s28, 4  ;;  %s2917_s10 = int_to_ptr.vmem [resolvable:$false] %s2916_s10 }
  0x88   : > { %s2918_s11 = scalar_lea.vmem %s2917_s10, 1024  ;;  %p2919_p12 = scmp.lt.s32.totalorder %s3225_s13, %s2917_s10 }
  0x89   : > { %p2914_p8 = pnand %p2912_p13, %p2898_p3  ;;  %p2920_p2 = scmp.lt.s32.totalorder %s2918_s11, %s2911_s20 }
  0x8b   : > { %p2915_p1 = pneg %p2914_p8  ;;  %p2921_p5 = por %p2920_p2, %p2919_p12 }
  0x8d   : > { %p2922_p7 = pnand %p2921_p5, %p2915_p1 }
  0x8f   : > { %2925 = shalt.err (!%p2922_p7)
}
  0x90   : > { %s4536_s19 = smov 128   ;;  %p4537_p3 = scmp.ne.s32.totalorder %s4517_s9, 0 }
  0x91   : > { %2735 = dma.hbm_to_vmem [thread:$0]  (!%p3229_p4), %s3223_s12, 512, %s3225_s13, %s3233_s29, %s4536_s19, %s4536_s19, %s3013_s30  }
  0x92   : > { %316 = sbr.rel (%p4537_p3) target bundleno = 1313 (0x521), region = 48 }
  0x99   : > { %s3267_s16 = sand.u32 1, %s3000_s25  }
  0x9a   : > { %4538 = sst [smem:[#allocation31_spill]] %s3267_s16  ;;  %s2402_s21 = sshll.u32 %s3267_s16, 5 }
  0x9b   : > { %s319_s20 = scalar_lea.sflag [#allocation3], %s3267_s16  ;;  %s322_s28 = scalar_lea.vmem [#allocation2], %s2402_s21 }
  0x9c   : > { %2971 = dma.done.wait (%p3204_p6), %s319_s20, 512  }
  0x9d   : > { %2973 = vsyncadd (%p3204_p6), %s319_s20, 4294966784  ;;  %p4539_p12 = scmp.eq.s32.totalorder %s3096_s8, 0 }
  0x9f   : > { %2975 = dma.done.wait (%p4539_p12), [#allocation5], 256   ;;  %p4540_p1 = pmov %p4539_p12 }
  0xa1   : > { %2977 = vsyncadd (%p4540_p1), [#allocation5], 4294967040  ;;  %p4541_p4 = pmov %p4540_p1 }
  0xa2   : > { %p4542_p0 = pmov %p4540_p1 }
  0xa3   : > { %2979 = dma.done.wait (%p4541_p4), [#allocation8], 80  }
  0xa4   : > { %2981 = vsyncadd (%p4542_p0), [#allocation8], 4294967216  ;;  %p4543_p9 = pmov %p4542_p0 }
  0xa5   : > { %p4544_p11 = pmov %p4542_p0 }
  0xa6   : > { %2983 = dma.done.wait (%p4543_p9), [#allocation11], 384  }
  0xa7   : > { %2985 = vsyncadd (%p4544_p11), [#allocation11], 4294966912  ;;  %p4545_p6 = pmov %p4542_p0 }
  0xa8   : > { %p4546_p10 = pmov %p4542_p0 }
  0xa9   : > { %2987 = dma.done.wait (%p4545_p6), [#allocation14], 16  }
  0xaa   : > { %2989 = vsyncadd (%p4546_p10), [#allocation14], 4294967280 }
  0xab   : > { %351 = sfence }
  0xac   : > { %v378_v0 = vld [vmem:[%s322_s28] sm:$0xff]  ;;  %v380_v1 = vld [vmem:[%s322_s28 + $0x10] sm:$0xff]  ;;  %v402_v2 = vlaneseq  ;;  %s3019_s9 = smov 112   ;;  %v379_v3 = vld [vmem:[%s322_s28 + $0x8] sm:$0xff]  ;;  %v3020_v10 = vmov 1.0|1.0  }
  0xad   : > { %386 = vrot.lane.b32.xlu0 %v378_v0, %s3019_s9  ;;  %390 = vrot.lane.b32.xlu1 %v380_v1, %s3019_s9  ;;  %v381_v4 = vld [vmem:[%s322_s28 + $0x18] sm:$0xff]  ;;  %vm421_vm6 = vcmask 130048   ;;  %vm620_vm7 = vcmask 1040384   ;;  %s4480_s29 = smov 1   ;;  %vm739_vm8 = vcmask 1046528   ;;  %vm852_vm9 = vcmask 1045504  }
  0xae   : > { %v403_v5 = vshrl.u32 %v402_v2, 7  ;;  %v406_v6 = vand.u32 127, %v402_v2  ;;  %s2430_s30 = sld [smem:[#allocation6 + $0x81]]  ;;  %s2433_s12 = sld [smem:[#allocation6 + $0x100]]  ;;  %vm645_vm10 = vcmask 7168   ;;  %vm650_vm11 = vcmask 72704  }
  0xaf   : > { %s2434_s18 = sld [smem:[#allocation6 + $0x101]]  ;;  %s2429_s13 = sld [smem:[#allocation6 + $0x80]]  ;;  %vm2125_vm12 = vcmask 1046534   ;;  %vm2122_vm13 = vcmask 1045509   ;;  %vm2119_vm14 = vcmask 1044484   ;;  %vm2128_vm15 = vcmask 1047559  }
  0xb0   : > { %v404_v7 = vadd.s32 8, %v403_v5  ;;  %v407_v8 = vmul.u32 2, %v406_v6  ;;  %s2442_s15 = sld [smem:[#allocation6 + $0x201]]  ;;  %s4478_s11 = smov 127  }
  0xb1   : > { %388 = vrot.lane.b32.xlu0 %v379_v3, %s3019_s9  ;;  %392 = vrot.lane.b32.xlu1 %v381_v4, %s3019_s9  ;;  %s2446_s10 = sld [smem:[#allocation6 + $0x281]]  ;;  %s4476_s19 = smov 126  }
  0xb2   : > { %vm408_vm0 = vcmp.eq.s32.totalorder %v403_v5, %v407_v8  ;;  %vm409_vm1 = vcmp.eq.s32.totalorder %v404_v7, %v407_v8  ;;  %v414_v9 = vadd.s32 1, %v407_v8  ;;  %s2454_s21 = sld [smem:[#allocation6 + $0x381]]  ;;  %s2432_s28 = sld [smem:[#allocation6 + $0x83]] }
  0xb3   : > { %vm2677_vm2 = vmpackc.low %vm409_vm1, %vm408_vm0  ;;  %s2458_s20 = sld [smem:[#allocation6 + $0x401]]  ;;  %s2441_s9 = sld [smem:[#allocation6 + $0x200]]  ;;  %vm2110_vm0 = vcmask 1041409   ;;  %vm2113_vm1 = vcmask 1042434  }
  0xb4   : > { %2678 = vmatprep.subr.msk.bf16.mxu0 %vm2677_vm2, %v3020_v10  ;;  %vm415_vm3 = vcmp.eq.s32.totalorder %v403_v5, %v414_v9  ;;  %vm416_vm4 = vcmp.eq.s32.totalorder %v404_v7, %v414_v9  ;;  %s3445_s0 = sld [smem:[#allocation7 + $0x87]]  ;;  %s3447_s1 = sld [smem:[#allocation7 + $0x1]] }
  0xb5   : > { %vm2681_vm5 = vmpackc.low %vm416_vm4, %vm415_vm3  ;;  %2680 = vmatpush3.bf16.msk.msra.mxu0 %vm2677_vm2, %v3020_v10  ;;  %v712_v5 = vstv %s2434_s18  ;;  %s2453_s18 = sld [smem:[#allocation6 + $0x380]]  ;;  %s3452_s3 = sld [smem:[#allocation7 + $0x3]]  ;;  %vm2116_vm2 = vcmask 1043459   ;;  %vm2131_vm3 = vcmask 64512   ;;  %vm2147_vm4 = vcmask 122944  }
  0xb6   : > { %2682 = vmatprep.subr.msk.bf16.mxu1 %vm2681_vm5, %v3020_v10  ;;  %s3449_s2 = sld [smem:[#allocation7]]  ;;  %s3454_s4 = sld [smem:[#allocation7 + $0x2]] }
  0xb7   : > { %2684 = vmatpush3.bf16.msk.msra.mxu1 %vm2681_vm5, %v3020_v10  ;;  %s3459_s5 = sld [smem:[#allocation7 + $0x4]]  ;;  %s3466_s6 = sld [smem:[#allocation7 + $0x7]]  ;;  %vm2145_vm5 = vcmask 130113  }
  0xb8   : > { %s3542_s17 = sld [smem:[#allocation9 + $0x6]]  ;;  %s3544_s26 = sld [smem:[#allocation7 + $0x107]] }
  0xb9   : > { %s3994_s25 = sld [smem:[#allocation12 + $0x101]]  ;;  %s3996_s14 = sld [smem:[#allocation12 + $0x102]] }
  0xba   : > { %s4001_s27 = sld [smem:[#allocation12 + $0x104]]  ;;  %s4007_s23 = sld [smem:[#allocation12 + $0x105]] }
  0xbb   : > { %s4009_s24 = sld [smem:[#allocation12 + $0x106]]  ;;  %s4013_s7 = sld [smem:[#allocation12 + $0x107]] }
  0xbc   : > { %s4015_s22 = sld [smem:[#allocation12 + $0x180]]  ;;  %s4039_s8 = sld [smem:[#allocation12 + $0x185]] }
  0xbd   : > { %s4041_s16 = sld [smem:[#allocation12 + $0x186]] }
 0x11f   : > { %v387_v11 = vpop.permute.xlu0 %386  ;;  %v391_v12 = vpop.permute.xlu1 %390 }
 0x120   : > { %v398_v13 = vmax.f32 %v378_v0, %v387_v11  ;;  %v400_v15 = vmax.f32 %v380_v1, %v391_v12 }
 0x122   : > { %2661 = vmatprep.mubr.msk.f32.mxu0 %vm421_vm6, %v398_v13  ;;  %2671 = vmatprep.mubr.msk.f32.mxu1 %vm421_vm6, %v398_v13 }
 0x123   : > { %v389_v14 = vpop.permute.xlu0 %388  ;;  %v393_v16 = vpop.permute.xlu1 %392 }
 0x124   : > { %v399_v17 = vmax.f32 %v379_v3, %v389_v14  ;;  %v401_v18 = vmax.f32 %v381_v4, %v393_v16  ;;  %v680_v4 = vstv %s2430_s30  ;;  %v704_v14 = vstv %s2433_s12  ;;  %s2436_s30 = sld [smem:[#allocation6 + $0x103]]  ;;  %s2445_s12 = sld [smem:[#allocation6 + $0x280]] }
 0x126   : > { %2662 = vmatmul.mubr.msk.f32.vlgmr.msra.gmra.mrb[0].mxu0 %vm421_vm6, %v399_v17  ;;  %2672 = vmatmul.mubr.msk.f32.vlgmr.msra.gmra.mrb[0].mxu1 %vm421_vm6, %v399_v17 }
 0x127   : > { %2664 = vmatprep.mubr.msk.f32.mxu0 %vm421_vm6, %v400_v15  ;;  %2674 = vmatprep.mubr.msk.f32.mxu1 %vm421_vm6, %v400_v15  ;;  %v672_v15 = vstv %s2429_s13  ;;  %s2431_s13 = sld [smem:[#allocation6 + $0x82]] }
 0x12a   : > { %2665 = vmatmul.mubr.msk.f32.gmra.mrb[2].mxu0 %vm421_vm6, %v401_v18  ;;  %2675 = vmatmul.mubr.msk.f32.gmra.mrb[2].mxu1 %vm421_vm6, %v401_v18  ;;  %vm2161_vm6 = vcmask 195714  }
 0x1f9   : > { %v2663_v19 = vpop.f32.mrb[0].mxu0  ;;  %v2673_v20 = vpop.f32.mrb[0].mxu1 }
 0x1fa   : > { %v605_v21 = vmax.f32 %v2663_v19, %v2673_v20  ;;  %v500_v22 = vpop.f32.mrb[1].mxu0  ;;  %v585_v23 = vpop.f32.mrb[1].mxu1 }
 0x1fb   : > { %v604_v24 = vmax.f32 %v500_v22, %v585_v23  ;;  %v797_v22 = vstv %s2442_s15  ;;  %v829_v23 = vstv %s2446_s10  ;;  %s2457_s15 = sld [smem:[#allocation6 + $0x400]]  ;;  %s2435_s10 = sld [smem:[#allocation6 + $0x102]] }
 0x1fc   : > { %v613_v25 = vrot.slane %v605_v21, 7 }
 0x1fd   : > { %v612_v26 = vrot.slane %v604_v24, 7  ;;  %v2676_v27 = vpop.f32.mrb[2].mxu1  ;;  %v2666_v28 = vpop.f32.mrb[2].mxu0 }
 0x1fe   : > { %v626_v29 = vsel %vm620_vm7, %v613_v25, 0.0  ;;  %v622_v30 = vsel %vm620_vm7, 0.0, %v613_v25  ;;  %v607_v31 = vmax.f32 %v2666_v28, %v2676_v27  ;;  %v510_v32 = vpop.f32.mrb[3].mxu0  ;;  %v595_v33 = vpop.f32.mrb[3].mxu1 }
 0x1ff   : > { %v744_v34 = vrot.slane %v626_v29, 1  ;;  %v625_v35 = vsel %vm620_vm7, %v612_v26, 0.0  ;;  %635 = vrot.lane.b32.xlu1 %v622_v30, %s4480_s29  ;;  %v743_v36 = vrot.slane %v622_v30, 1  ;;  %v621_v38 = vsel %vm620_vm7, 0.0, %v612_v26 }
 0x200   : > { %v741_v37 = vrot.slane %v625_v35, 1  ;;  %633 = vrot.lane.b32.xlu0 %v621_v38, %s4480_s29  ;;  %v740_v39 = vrot.slane %v621_v38, 1  ;;  %v615_v40 = vrot.slane %v607_v31, 7  ;;  %v606_v41 = vmax.f32 %v510_v32, %v595_v33 }
 0x201   : > { %v745_v42 = vsel %vm739_vm8, %v743_v36, %v744_v34  ;;  %v857_v54 = vrot.slane %v626_v29, 2  ;;  %v856_v55 = vrot.slane %v622_v30, 2  ;;  %v854_v56 = vrot.slane %v625_v35, 2 }
 0x202   : > { %v628_v43 = vsel %vm620_vm7, %v615_v40, 0.0  ;;  %v614_v44 = vrot.slane %v606_v41, 7  ;;  %v742_v45 = vsel %vm739_vm8, %v740_v39, %v741_v37  ;;  %v624_v46 = vsel %vm620_vm7, 0.0, %v615_v40 }
 0x203   : > { %754 = vrot.lane.b32.xlu1 %v745_v42, %s4480_s29  ;;  %v750_v47 = vrot.slane %v628_v43, 1  ;;  %v749_v48 = vrot.slane %v624_v46, 1  ;;  %v853_v57 = vrot.slane %v621_v38, 2  ;;  %v863_v59 = vrot.slane %v628_v43, 2 }
 0x204   : > { %v627_v49 = vsel %vm620_vm7, %v614_v44, 0.0  ;;  %752 = vrot.lane.b32.xlu0 %v742_v45, %s4480_s29  ;;  %v623_v50 = vsel %vm620_vm7, 0.0, %v614_v44  ;;  %v862_v60 = vrot.slane %v624_v46, 2  ;;  %v858_v61 = vsel %vm852_vm9, %v856_v55, %v857_v54 }
 0x205   : > { %v747_v51 = vrot.slane %v627_v49, 1  ;;  %v746_v52 = vrot.slane %v623_v50, 1  ;;  %v751_v53 = vsel %vm739_vm8, %v749_v48, %v750_v47  ;;  %v860_v62 = vrot.slane %v627_v49, 2 }
 0x206   : > { %v859_v63 = vrot.slane %v623_v50, 2  ;;  %v855_v0 = vsel %vm852_vm9, %v853_v57, %v854_v56  ;;  %v864_v1 = vsel %vm852_vm9, %v862_v60, %v863_v59  ;;  %v910_v30 = vstv %s2454_s21  ;;  %s2444_s21 = sld [smem:[#allocation6 + $0x203]] }
 0x207   : > { %639 = vrot.lane.b32.xlu1 %v624_v46, %s4480_s29  ;;  %v748_v58 = vsel %vm739_vm8, %v746_v52, %v747_v51  ;;  %v942_v31 = vstv %s2458_s20  ;;  %v696_v41 = vstv %s2432_s28  ;;  %v789_v42 = vstv %s2441_s9  ;;  %s2443_s20 = sld [smem:[#allocation6 + $0x202]]  ;;  %s2448_s28 = sld [smem:[#allocation6 + $0x283]] }
 0x208   : > { %637 = vrot.lane.b32.xlu0 %v623_v50, %s4480_s29  ;;  %v861_v2 = vsel %vm852_vm9, %v859_v63, %v860_v62  ;;  %v728_v47 = vstv %s2436_s30  ;;  %v902_v48 = vstv %s2453_s18  ;;  %v688_v54 = vstv %s2431_s13  ;;  %s2447_s9 = sld [smem:[#allocation6 + $0x282]]  ;;  %s2456_s30 = sld [smem:[#allocation6 + $0x383]] }
 0x209   : > { %v934_v57 = vstv %s2457_s15  ;;  %s2455_s18 = sld [smem:[#allocation6 + $0x382]]  ;;  %s2426_s15 = sld [smem:[#allocation6 + $0x1]] }
 0x20a   : > { %s2459_s13 = sld [smem:[#allocation6 + $0x402]] }
 0x20b   : > { %758 = vrot.lane.b32.xlu1 %v751_v53, %s4480_s29  ;;  %v821_v53 = vstv %s2445_s12  ;;  %s2460_s12 = sld [smem:[#allocation6 + $0x403]] }
 0x20c   : > { %756 = vrot.lane.b32.xlu0 %v748_v58, %s4480_s29  ;;  %v720_v58 = vstv %s2435_s10  ;;  %s2438_s10 = sld [smem:[#allocation6 + $0x181]] }
 0x20f   : > { %867 = vrot.lane.b32.xlu1 %v858_v61, %s4480_s29 }
 0x210   : > { %865 = vrot.lane.b32.xlu0 %v855_v0, %s4480_s29 }
 0x213   : > { %871 = vrot.lane.b32.xlu1 %v864_v1, %s4480_s29  ;;  %v813_v1 = vstv %s2444_s21  ;;  %s655_s21 = sld [smem:[#allocation6]] }
 0x214   : > { %869 = vrot.lane.b32.xlu0 %v861_v2, %s4480_s29  ;;  %v805_v2 = vstv %s2443_s20  ;;  %s2437_s20 = sld [smem:[#allocation6 + $0x180]]  ;;  %s3443_s29 = sld [smem:[#allocation7 + $0x86]] }
 0x271   : > { %v636_v3 = vpop.permute.xlu1 %635 }
 0x272   : > { %v647_v6 = vsel %vm645_vm10, 0.0, %v636_v3  ;;  %v634_v8 = vpop.permute.xlu0 %633 }
 0x273   : > { %v3321_v7 = vsel %vm650_vm11, %v647_v6, 0.0  ;;  %v646_v9 = vsel %vm645_vm10, 0.0, %v634_v8  ;;  %v845_v8 = vstv %s2448_s28  ;;  %s2450_s28 = sld [smem:[#allocation6 + $0x301]] }
 0x274   : > { %v681_v10 = vmul.f32 %v680_v4, %v3321_v7  ;;  %v713_v11 = vmul.f32 %v712_v5, %v3321_v7  ;;  %v3327_v12 = vsel %vm650_vm11, %v646_v9, 0.0  ;;  %v837_v9 = vstv %s2447_s9  ;;  %s2428_s9 = sld [smem:[#allocation6 + $0x3]] }
 0x275   : > { %v755_v13 = vpop.permute.xlu1 %754  ;;  %v705_v18 = vmul.f32 %v704_v14, %v3327_v12  ;;  %v673_v19 = vmul.f32 %v672_v15, %v3327_v12 }
 0x276   : > { %v765_v16 = vsel %vm645_vm10, 0.0, %v755_v13  ;;  %683 = vrot.lane.b32.xlu1 %v681_v10, %s4478_s11  ;;  %715 = vrot.lane.b32.xlu0 %v713_v11, %s4476_s19  ;;  %v753_v17 = vpop.permute.xlu0 %752 }
 0x277   : > { %v3335_v20 = vsel %vm650_vm11, %v765_v16, 0.0  ;;  %v764_v32 = vsel %vm645_vm10, 0.0, %v753_v17  ;;  %v926_v17 = vstv %s2456_s30  ;;  %s2440_s30 = sld [smem:[#allocation6 + $0x183]] }
 0x278   : > { %v798_v25 = vmul.f32 %v797_v22, %v3335_v20  ;;  %v830_v26 = vmul.f32 %v829_v23, %v3335_v20  ;;  %v3352_v39 = vsel %vm650_vm11, %v764_v32, 0.0  ;;  %v958_v22 = vstv %s2460_s12  ;;  %s3422_s12 = sld [smem:[#allocation6 + $0x300]] }
 0x279   : > { %v640_v21 = vpop.permute.xlu1 %639  ;;  %v790_v45 = vmul.f32 %v789_v42, %v3352_v39  ;;  %v822_v55 = vmul.f32 %v821_v53, %v3352_v39  ;;  %v950_v23 = vstv %s2459_s13  ;;  %s3424_s13 = sld [smem:[#allocation6 + $0x182]] }
 0x27a   : > { %707 = vrot.lane.b32.xlu1 %v705_v18, %s4476_s19  ;;  %675 = vrot.lane.b32.xlu0 %v673_v19, %s4478_s11  ;;  %v638_v24 = vpop.permute.xlu0 %637  ;;  %v649_v33 = vsel %vm645_vm10, 0.0, %v640_v21  ;;  %v918_v18 = vstv %s2455_s18  ;;  %s3420_s18 = sld [smem:[#allocation6 + $0x2]] }
 0x27b   : > { %v3355_v40 = vsel %vm650_vm11, %v649_v33, 0.0  ;;  %v648_v49 = vsel %vm645_vm10, 0.0, %v638_v24 }
 0x27c   : > { %v697_v44 = vmul.f32 %v696_v41, %v3355_v40  ;;  %v729_v50 = vmul.f32 %v728_v47, %v3355_v40  ;;  %v3371_v52 = vsel %vm650_vm11, %v648_v49, 0.0 }
 0x27d   : > { %v759_v27 = vpop.permute.xlu1 %758  ;;  %v689_v56 = vmul.f32 %v688_v54, %v3371_v52  ;;  %v721_v62 = vmul.f32 %v720_v58, %v3371_v52 }
 0x27e   : > { %800 = vrot.lane.b32.xlu1 %v798_v25, %s4478_s11  ;;  %832 = vrot.lane.b32.xlu0 %v830_v26, %s4476_s19  ;;  %v757_v28 = vpop.permute.xlu0 %756  ;;  %v767_v59 = vsel %vm645_vm10, 0.0, %v759_v27  ;;  %v660_v26 = vstv %s2426_s15  ;;  %s3426_s15 = sld [smem:[#allocation6 + $0x303]] }
 0x27f   : > { %v766_v60 = vsel %vm645_vm10, 0.0, %v757_v28  ;;  %v3384_v63 = vsel %vm650_vm11, %v767_v59, 0.0  ;;  %v661_v27 = vmul.f32 %v660_v26, %v3321_v7  ;;  %v777_v28 = vstv %s2438_s10  ;;  %s3428_s10 = sld [smem:[#allocation6 + $0x302]] }
 0x280   : > { %v3387_v0 = vsel %vm650_vm11, %v766_v60, 0.0  ;;  %v814_v5 = vmul.f32 %v813_v1, %v3384_v63  ;;  %v846_v13 = vmul.f32 %v845_v8, %v3384_v63  ;;  %v778_v33 = vmul.f32 %v777_v28, %v3335_v20 }
 0x281   : > { %v868_v29 = vpop.permute.xlu1 %867  ;;  %v806_v6 = vmul.f32 %v805_v2, %v3387_v0  ;;  %v838_v14 = vmul.f32 %v837_v9, %v3387_v0  ;;  %v890_v7 = vstv %s2450_s28  ;;  %s3434_s28 = sld [smem:[#allocation7 + $0x83]]  ;;  %v886_v2 = vstv %s3422_s12 }
 0x282   : > { %v878_v34 = vsel %vm645_vm10, 0.0, %v868_v29  ;;  %v866_v36 = vpop.permute.xlu0 %865  ;;  %s3502_s12 = sld [smem:[#allocation7 + $0x183]] }
 0x283   : > { %v3347_v35 = vsel %vm650_vm11, %v878_v34, 0.0  ;;  %v877_v43 = vsel %vm645_vm10, 0.0, %v866_v36 }
 0x284   : > { %v911_v37 = vmul.f32 %v910_v30, %v3347_v35  ;;  %v943_v38 = vmul.f32 %v942_v31, %v3347_v35  ;;  %v3363_v46 = vsel %vm650_vm11, %v877_v43, 0.0  ;;  %v656_v31 = vstv %s655_s21  ;;  %s3430_s21 = sld [smem:[#allocation7 + $0x81]] }
 0x285   : > { %v903_v51 = vmul.f32 %v902_v48, %v3363_v46  ;;  %v935_v61 = vmul.f32 %v934_v57, %v3363_v46  ;;  %v872_v3 = vpop.permute.xlu1 %871  ;;  %v657_v36 = vmul.f32 %v656_v31, %v3327_v12  ;;  %v785_v57 = vstv %s2440_s30  ;;  %s3457_s30 = sld [smem:[#allocation7 + $0x5]] }
 0x286   : > { %913 = vrot.lane.b32.xlu1 %v911_v37, %s4478_s11  ;;  %945 = vrot.lane.b32.xlu0 %v943_v38, %s4476_s19  ;;  %v870_v4 = vpop.permute.xlu0 %869  ;;  %v880_v10 = vsel %vm645_vm10, 0.0, %v872_v3  ;;  %v773_v37 = vstv %s2437_s20  ;;  %s3432_s20 = sld [smem:[#allocation7 + $0x80]]  ;;  %v781_v3 = vstv %s3424_s13  ;;  %s3516_s13 = sld [smem:[#allocation7 + $0x184]] }
 0x287   : > { %v879_v11 = vsel %vm645_vm10, 0.0, %v870_v4  ;;  %v3400_v15 = vsel %vm650_vm11, %v880_v10, 0.0  ;;  %v898_v4 = vstv %s3426_s15  ;;  %v894_v8 = vstv %s3428_s10  ;;  %s3518_s15 = sld [smem:[#allocation9 + $0x1]]  ;;  %s3520_s10 = sld [smem:[#allocation9]] }
 0x288   : > { %v3403_v16 = vsel %vm650_vm11, %v879_v11, 0.0  ;;  %v927_v19 = vmul.f32 %v926_v17, %v3400_v15  ;;  %v959_v24 = vmul.f32 %v958_v22, %v3400_v15  ;;  %v3481_v28 = vmul.f32 %v898_v4, %v3400_v15 }
 0x289   : > { %v919_v21 = vmul.f32 %v918_v18, %v3403_v16  ;;  %v951_v25 = vmul.f32 %v950_v23, %v3403_v16  ;;  %v966_v31 = vstv %s3449_s2  ;;  %s3506_s2 = sld [smem:[#allocation7 + $0x102]] }
 0x28a   : > { %699 = vrot.lane.b32.xlu1 %v697_v44, %s4478_s11  ;;  %792 = vrot.lane.b32.xlu0 %v790_v45, %s4478_s11  ;;  %v774_v44 = vmul.f32 %v773_v37, %v3352_v39  ;;  %v668_v39 = vstv %s2428_s9  ;;  %s3441_s9 = sld [smem:[#allocation7 + $0x84]]  ;;  %v988_v11 = vstv %s3430_s21  ;;  %s3522_s21 = sld [smem:[#allocation9 + $0x3]] }
 0x28b   : > { %v1061_v15 = vstv %s3457_s30  ;;  %s3534_s30 = sld [smem:[#allocation9 + $0x4]] }
 0x28e   : > { %731 = vrot.lane.b32.xlu1 %v729_v50, %s4476_s19  ;;  %905 = vrot.lane.b32.xlu0 %v903_v51, %s4478_s11  ;;  %v891_v51 = vmul.f32 %v890_v7, %v3347_v35 }
 0x290   : > { %v1045_v23 = vstv %s3441_s9  ;;  %s3532_s9 = sld [smem:[#allocation7 + $0x106]] }
 0x292   : > { %824 = vrot.lane.b32.xlu1 %v822_v55, %s4476_s19  ;;  %691 = vrot.lane.b32.xlu0 %v689_v56, %s4478_s11  ;;  %v669_v56 = vmul.f32 %v668_v39, %v3355_v40  ;;  %v664_v40 = vstv %s3420_s18  ;;  %s3464_s18 = sld [smem:[#allocation7 + $0x6]] }
 0x296   : > { %937 = vrot.lane.b32.xlu1 %v935_v61, %s4476_s19  ;;  %723 = vrot.lane.b32.xlu0 %v721_v62, %s4476_s19  ;;  %v786_v62 = vmul.f32 %v785_v57, %v3384_v63  ;;  %v665_v63 = vmul.f32 %v664_v40, %v3371_v52 }
 0x29a   : > { %816 = vrot.lane.b32.xlu1 %v814_v5, %s4478_s11  ;;  %808 = vrot.lane.b32.xlu0 %v806_v6, %s4478_s11 }
 0x29e   : > { %848 = vrot.lane.b32.xlu1 %v846_v13, %s4476_s19  ;;  %840 = vrot.lane.b32.xlu0 %v838_v14, %s4476_s19  ;;  %v969_v13 = vstv %s3432_s20  ;;  %v1026_v14 = vstv %s3434_s28  ;;  %s3524_s20 = sld [smem:[#allocation9 + $0x2]]  ;;  %s3528_s28 = sld [smem:[#allocation9 + $0x5]] }
 0x2a2   : > { %929 = vrot.lane.b32.xlu1 %v927_v19, %s4478_s11  ;;  %921 = vrot.lane.b32.xlu0 %v919_v21, %s4478_s11  ;;  %s3439_s11 = sld [smem:[#allocation7 + $0x85]]  ;;  %v887_v19 = vmul.f32 %v886_v2, %v3363_v46  ;;  %v782_v21 = vmul.f32 %v781_v3, %v3387_v0  ;;  %v985_v0 = vstv %s3447_s1  ;;  %s3500_s1 = sld [smem:[#allocation7 + $0x103]] }
 0x2a6   : > { %961 = vrot.lane.b32.xlu1 %v959_v24, %s4476_s19  ;;  %953 = vrot.lane.b32.xlu0 %v951_v25, %s4476_s19  ;;  %s3436_s19 = sld [smem:[#allocation7 + $0x82]]  ;;  %v1083_v24 = vstv %s3443_s29  ;;  %v1102_v25 = vstv %s3445_s0  ;;  %s3494_s0 = sld [smem:[#allocation7 + $0x100]] }
 0x2a7   : > { %s3496_s29 = sld [smem:[#allocation7 + $0x180]] }
 0x2a8   : > { %v1064_v22 = vstv %s3439_s11  ;;  %s3487_s11 = sld [smem:[#allocation7 + $0x101]] }
 0x2ac   : > { %v1007_v17 = vstv %s3436_s19  ;;  %s3489_s19 = sld [smem:[#allocation7 + $0x181]] }
 0x2e8   : > { %v684_v29 = vpop.permute.xlu1 %683  ;;  %v716_v30 = vpop.permute.xlu0 %715 }
 0x2e9   : > { %v686_v32 = vadd.f32 %v684_v29, %v661_v27  ;;  %v3484_v29 = vmul.f32 %v894_v8, %v3403_v16  ;;  %v1042_v16 = vstv %s3459_s5  ;;  %s3512_s5 = sld [smem:[#allocation7 + $0x185]] }
 0x2eb   : > { %v718_v34 = vadd.f32 %v716_v30, %v686_v32  ;;  %v1023_v32 = vstv %s3452_s3  ;;  %s3508_s3 = sld [smem:[#allocation7 + $0x182]] }
 0x2ec   : > { %v708_v38 = vpop.permute.xlu1 %707  ;;  %v676_v41 = vpop.permute.xlu0 %675 }
 0x2ed   : > { %v678_v42 = vadd.f32 %v676_v41, %v657_v36  ;;  %v779_v43 = vadd.f32 %v778_v33, %v718_v34  ;;  %v1004_v33 = vstv %s3454_s4  ;;  %v1080_v41 = vstv %s3464_s18  ;;  %s3510_s4 = sld [smem:[#allocation7 + $0x105]]  ;;  %s3538_s18 = sld [smem:[#allocation7 + $0x186]] }
 0x2ef   : > { %v710_v45 = vadd.f32 %v708_v38, %v678_v42  ;;  %v1099_v42 = vstv %s3466_s6  ;;  %s3514_s6 = sld [smem:[#allocation7 + $0x104]] }
 0x2f0   : > { %v801_v47 = vpop.permute.xlu1 %800  ;;  %v833_v50 = vpop.permute.xlu0 %832 }
 0x2f1   : > { %v803_v48 = vadd.f32 %v801_v47, %v779_v43  ;;  %v775_v49 = vadd.f32 %v774_v44, %v710_v45 }
 0x2f3   : > { %v835_v20 = vadd.f32 %v833_v50, %v803_v48 }
 0x2f5   : > { %v892_v53 = vadd.f32 %v891_v51, %v835_v20 }
 0x2f8   : > { %v914_v12 = vpop.permute.xlu1 %913  ;;  %v946_v54 = vpop.permute.xlu0 %945 }
 0x2f9   : > { %v916_v1 = vadd.f32 %v914_v12, %v892_v53 }
 0x2fb   : > { %v948_v52 = vadd.f32 %v946_v54, %v916_v1 }
 0x2fc   : > { %v700_v35 = vpop.permute.xlu1 %699  ;;  %v793_v55 = vpop.permute.xlu0 %792 }
 0x2fd   : > { %v702_v58 = vadd.f32 %v700_v35, %v669_v56  ;;  %v795_v5 = vadd.f32 %v793_v55, %v775_v49  ;;  %v989_v37 = vmul.f32 %v988_v11, %v948_v52  ;;  %v970_v38 = vmul.f32 %v969_v13, %v948_v52 }
 0x2fe   : > { %v1027_v45 = vmul.f32 %v1026_v14, %v948_v52  ;;  %v1008_v7 = vmul.f32 %v1007_v17, %v948_v52  ;;  %v1065_v49 = vmul.f32 %v1064_v22, %v948_v52  ;;  %v1046_v50 = vmul.f32 %v1045_v23, %v948_v52 }
 0x2ff   : > { %v1084_v51 = vmul.f32 %v1083_v24, %v948_v52  ;;  %v1103_v20 = vmul.f32 %v1102_v25, %v948_v52  ;;  %v992_v14 = vstv %s3487_s11  ;;  %v996_v17 = vstv %s3489_s19  ;;  %s4547_s11 = smov 1   ;;  %s2507_s19 = sld [smem:[#allocation10 + $0x81]] }
 0x300   : > { %v732_v59 = vpop.permute.xlu1 %731  ;;  %v906_v60 = vpop.permute.xlu0 %905  ;;  %v1034_v22 = vstv %s3502_s12  ;;  %v1011_v52 = vstv %s3506_s2  ;;  %v1015_v23 = vstv %s3508_s3  ;;  %v1068_v24 = vstv %s3510_s4  ;;  %s3673_s12 = sld [smem:[#allocation10 + $0x101]]  ;;  %s3675_s2 = sld [smem:[#allocation10 + $0x83]] }
 0x301   : > { %v734_v61 = vadd.f32 %v732_v59, %v702_v58  ;;  %v1072_v25 = vstv %s3512_s5  ;;  %s3687_s3 = sld [smem:[#allocation10 + $0x102]]  ;;  %s2510_s4 = sld [smem:[#allocation10 + $0x84]] }
 0x302   : > { %s4548_s5 = smov 127  }
 0x303   : > { %v787_v6 = vadd.f32 %v786_v62, %v734_v61 }
 0x304   : > { %v825_v9 = vpop.permute.xlu1 %824  ;;  %v692_v10 = vpop.permute.xlu0 %691 }
 0x305   : > { %v827_v18 = vadd.f32 %v825_v9, %v795_v5  ;;  %v694_v27 = vadd.f32 %v692_v10, %v665_v63 }
 0x307   : > { %v888_v26 = vadd.f32 %v887_v19, %v827_v18  ;;  %v973_v18 = vstv %s3494_s0  ;;  %v977_v19 = vstv %s3496_s29  ;;  %s2506_s0 = sld [smem:[#allocation10 + $0x80]] }
 0x308   : > { %v938_v46 = vpop.permute.xlu1 %937  ;;  %v724_v30 = vpop.permute.xlu0 %723  ;;  %s2514_s29 = sld [smem:[#allocation10 + $0x100]] }
 0x309   : > { %v908_v34 = vadd.f32 %v906_v60, %v888_v26  ;;  %v726_v36 = vadd.f32 %v724_v30, %v694_v27 }
 0x30b   : > { %v940_v43 = vadd.f32 %v938_v46, %v908_v34  ;;  %v783_v44 = vadd.f32 %v782_v21, %v726_v36  ;;  %v1030_v21 = vstv %s3500_s1  ;;  %s2508_s1 = sld [smem:[#allocation10 + $0x82]] }
 0x30c   : > { %v817_v47 = vpop.permute.xlu1 %816  ;;  %v809_v48 = vpop.permute.xlu0 %808 }
 0x30d   : > { %v819_v53 = vadd.f32 %v817_v47, %v787_v6  ;;  %v811_v12 = vadd.f32 %v809_v48, %v783_v44  ;;  %v986_v54 = vmul.f32 %v985_v0, %v940_v43  ;;  %v967_v39 = vmul.f32 %v966_v31, %v940_v43 }
 0x30e   : > { %v1024_v35 = vmul.f32 %v1023_v32, %v940_v43  ;;  %v1005_v55 = vmul.f32 %v1004_v33, %v940_v43  ;;  %v1062_v56 = vmul.f32 %v1061_v15, %v940_v43  ;;  %v1043_v57 = vmul.f32 %v1042_v16, %v940_v43 }
 0x30f   : > { %v990_v58 = vadd.f32 %v989_v37, %v986_v54  ;;  %v971_v59 = vadd.f32 %v970_v38, %v967_v39  ;;  %v1081_v60 = vmul.f32 %v1080_v41, %v940_v43  ;;  %v1100_v40 = vmul.f32 %v1099_v42, %v940_v43 }
 0x310   : > { %v849_v61 = vpop.permute.xlu1 %848  ;;  %v841_v62 = vpop.permute.xlu0 %840  ;;  %v1028_v1 = vadd.f32 %v1027_v45, %v1024_v35  ;;  %v1009_v2 = vadd.f32 %v1008_v7, %v1005_v55  ;;  %v3526_v3 = vadd.f32 %v1065_v49, %v1062_v56  ;;  %v3530_v4 = vadd.f32 %v1046_v50, %v1043_v57 }
 0x311   : > { %v851_v5 = vadd.f32 %v849_v61, %v819_v53  ;;  %v843_v63 = vadd.f32 %v841_v62, %v811_v12  ;;  %v3536_v6 = vadd.f32 %v1084_v51, %v1081_v60  ;;  %v3540_v8 = vadd.f32 %v1103_v20, %v1100_v40 }
 0x312   : > { %v1000_v0 = vstv %s3518_s15  ;;  %v981_v31 = vstv %s3520_s10  ;;  %v1038_v32 = vstv %s3522_s21  ;;  %v1019_v33 = vstv %s3524_s20  ;;  %s4549_s15 = smov 126   ;;  %s2519_s10 = sld [smem:[#allocation10 + $0x105]] }
 0x313   : > { %v900_v9 = vadd.f32 %v3481_v28, %v851_v5  ;;  %v896_v10 = vadd.f32 %v3484_v29, %v843_v63  ;;  %v1049_v28 = vstv %s3514_s6  ;;  %v1053_v29 = vstv %s3516_s13  ;;  %s2517_s6 = sld [smem:[#allocation10 + $0x103]]  ;;  %s2511_s13 = sld [smem:[#allocation10 + $0x85]] }
 0x314   : > { %v930_v11 = vpop.permute.xlu1 %929  ;;  %v922_v13 = vpop.permute.xlu0 %921  ;;  %v1076_v15 = vstv %s3528_s28  ;;  %v1087_v16 = vstv %s3532_s9  ;;  %v1057_v37 = vstv %s3534_s30  ;;  %v1091_v38 = vstv %s3538_s18  ;;  %s2518_s21 = sld [smem:[#allocation10 + $0x104]]  ;;  %s2512_s20 = sld [smem:[#allocation10 + $0x86]] }
 0x315   : > { %v932_v26 = vadd.f32 %v930_v11, %v900_v9  ;;  %v924_v27 = vadd.f32 %v922_v13, %v896_v10  ;;  %v1095_v41 = vstv %s3542_s17  ;;  %v1106_v42 = vstv %s3544_s26  ;;  %s3578_s26 = sld [smem:[#allocation7 + $0x187]]  ;;  %s2520_s28 = sld [smem:[#allocation10 + $0x106]] }
 0x316   : > { %s2498_s17 = sld [smem:[#allocation9 + $0x7]]  ;;  %s2530_s30 = sld [smem:[#allocation10 + $0x200]] }
 0x317   : > { %s2513_s9 = sld [smem:[#allocation10 + $0x87]] }
 0x318   : > { %v962_v46 = vpop.permute.xlu1 %961  ;;  %v954_v30 = vpop.permute.xlu0 %953  ;;  %s2521_s18 = sld [smem:[#allocation10 + $0x107]] }
 0x319   : > { %v3564_v34 = vadd.f32 %v962_v46, %v932_v26  ;;  %v956_v36 = vadd.f32 %v954_v30, %v924_v27 }
 0x31b   : > { %v993_v43 = vmul.f32 %v992_v14, %v956_v36  ;;  %v997_v44 = vmul.f32 %v996_v17, %v3564_v34  ;;  %v974_v45 = vmul.f32 %v973_v18, %v956_v36  ;;  %v978_v7 = vmul.f32 %v977_v19, %v3564_v34 }
 0x31c   : > { %v1031_v47 = vmul.f32 %v1030_v21, %v956_v36  ;;  %v1035_v48 = vmul.f32 %v1034_v22, %v3564_v34  ;;  %v1012_v49 = vmul.f32 %v1011_v52, %v956_v36  ;;  %v1016_v50 = vmul.f32 %v1015_v23, %v3564_v34 }
 0x31d   : > { %v994_v51 = vadd.f32 %v993_v43, %v990_v58  ;;  %v975_v20 = vadd.f32 %v974_v45, %v971_v59  ;;  %v1069_v53 = vmul.f32 %v1068_v24, %v956_v36  ;;  %v1073_v12 = vmul.f32 %v1072_v25, %v3564_v34 }
 0x31e   : > { %v1032_v54 = vadd.f32 %v1031_v47, %v1028_v1  ;;  %v1013_v39 = vadd.f32 %v1012_v49, %v1009_v2  ;;  %v1050_v35 = vmul.f32 %v1049_v28, %v956_v36  ;;  %v1054_v55 = vmul.f32 %v1053_v29, %v3564_v34 }
 0x31f   : > { %v998_v56 = vadd.f32 %v997_v44, %v994_v51  ;;  %v979_v57 = vadd.f32 %v978_v7, %v975_v20  ;;  %v1070_v60 = vadd.f32 %v1069_v53, %v3526_v3  ;;  %v1088_v40 = vmul.f32 %v1087_v16, %v956_v36 }
 0x320   : > { %v1036_v61 = vadd.f32 %v1035_v48, %v1032_v54  ;;  %v1017_v62 = vadd.f32 %v1016_v50, %v1013_v39  ;;  %v1051_v58 = vadd.f32 %v1050_v35, %v3530_v4  ;;  %v1092_v59 = vmul.f32 %v1091_v38, %v3564_v34 }
 0x321   : > { %v1001_v5 = vadd.f32 %v1000_v0, %v998_v56  ;;  %v982_v63 = vadd.f32 %v981_v31, %v979_v57  ;;  %v1074_v1 = vadd.f32 %v1073_v12, %v1070_v60  ;;  %v1089_v2 = vadd.f32 %v1088_v40, %v3536_v6 }
 0x322   : > { %v1039_v9 = vadd.f32 %v1038_v32, %v1036_v61  ;;  %v1020_v10 = vadd.f32 %v1019_v33, %v1017_v62  ;;  %v1055_v11 = vadd.f32 %v1054_v55, %v1051_v58  ;;  %v1107_v13 = vmul.f32 %v1106_v42, %v956_v36 }
 0x323   : > { %v1002_v14 = vmax.f32 %v1001_v5, 0.0  ;;  %v983_v17 = vmax.f32 %v982_v63, 0.0  ;;  %v1077_v3 = vadd.f32 %v1076_v15, %v1074_v1  ;;  %v1093_v18 = vadd.f32 %v1092_v59, %v1089_v2 }
 0x324   : > { %v1040_v19 = vmax.f32 %v1039_v9, 0.0  ;;  %v1021_v21 = vmax.f32 %v1020_v10, 0.0  ;;  %v1058_v22 = vadd.f32 %v1057_v37, %v1055_v11  ;;  %v1108_v4 = vadd.f32 %v1107_v13, %v3540_v8 }
 0x325   : > { %v1126_v52 = vrot.slane %v1002_v14, 7  ;;  %v1125_v23 = vrot.slane %v983_v17, 7  ;;  %v1078_v25 = vmax.f32 %v1077_v3, 0.0  ;;  %v1096_v6 = vadd.f32 %v1095_v41, %v1093_v18 }
 0x326   : > { %v1128_v24 = vrot.slane %v1040_v19, 7  ;;  %v1110_v26 = vstv %s3578_s26  ;;  %v1127_v29 = vrot.slane %v1021_v21, 7  ;;  %v1059_v46 = vmax.f32 %v1058_v22, 0.0  ;;  %s2532_s26 = sld [smem:[#allocation10 + $0x202]] }
 0x327   : > { %v3587_v27 = vsel %vm620_vm7, 0.0, %v1126_v52  ;;  %v1141_v28 = vsel %vm620_vm7, 0.0, %v1125_v23  ;;  %v1150_v8 = vsel %vm620_vm7, %v1126_v52, 0.0  ;;  %v1111_v0 = vmul.f32 %v1110_v26, %v3564_v34 }
 0x328   : > { %1167 = vrot.lane.b32.xlu1 %v3587_v27, %s4547_s11  ;;  %1165 = vrot.lane.b32.xlu0 %v1141_v28, %s4547_s11  ;;  %v3595_v30 = vsel %vm620_vm7, 0.0, %v1128_v24  ;;  %v3599_v31 = vsel %vm620_vm7, 0.0, %v1127_v29  ;;  %v1130_v32 = vrot.slane %v1078_v25, 7  ;;  %v1129_v33 = vrot.slane %v1059_v46, 7 }
 0x329   : > { %v1097_v36 = vmax.f32 %v1096_v6, 0.0  ;;  %v1112_v15 = vadd.f32 %v1111_v0, %v1108_v4  ;;  %v1114_v16 = vstv %s2498_s17  ;;  %v1376_v37 = vrot.slane %v3587_v27, 1  ;;  %s3738_s17 = sld [smem:[#allocation10 + $0x201]] }
 0x32a   : > { %v1377_v38 = vrot.slane %v1150_v8, 1  ;;  %v3607_v41 = vsel %vm620_vm7, 0.0, %v1130_v32  ;;  %v3610_v34 = vsel %vm620_vm7, 0.0, %v1129_v33  ;;  %v1151_v44 = vsel %vm620_vm7, %v1127_v29, 0.0 }
 0x32b   : > { %v1131_v42 = vrot.slane %v1097_v36, 7  ;;  %v1115_v43 = vadd.f32 %v1114_v16, %v1112_v15  ;;  %v1379_v7 = vrot.slane %v3599_v31, 1  ;;  %v1380_v50 = vrot.slane %v1151_v44, 1 }
 0x32c   : > { %1171 = vrot.lane.b32.xlu1 %v3595_v30, %s4547_s11  ;;  %1169 = vrot.lane.b32.xlu0 %v3599_v31, %s4547_s11  ;;  %v1378_v48 = vsel %vm739_vm8, %v1376_v37, %v1377_v38  ;;  %v1149_v51 = vsel %vm620_vm7, %v1125_v23, 0.0  ;;  %v1152_v20 = vsel %vm620_vm7, %v1128_v24, 0.0  ;;  %v1373_v53 = vrot.slane %v1141_v28, 1 }
 0x32d   : > { %v1116_v45 = vmax.f32 %v1115_v43, 0.0  ;;  %v3619_v47 = vsel %vm620_vm7, 0.0, %v1131_v42  ;;  %v1382_v12 = vrot.slane %v3595_v30, 1  ;;  %v1381_v39 = vsel %vm739_vm8, %v1379_v7, %v1380_v50 }
 0x32e   : > { %v1383_v35 = vrot.slane %v1152_v20, 1  ;;  %v1374_v55 = vrot.slane %v1149_v51, 1  ;;  %v1153_v56 = vsel %vm620_vm7, %v1129_v33, 0.0  ;;  %v1597_v57 = vrot.slane %v1141_v28, 2 }
 0x32f   : > { %v1132_v49 = vrot.slane %v1116_v45, 7  ;;  %v1385_v60 = vrot.slane %v3610_v34, 1  ;;  %v1386_v62 = vrot.slane %v1153_v56, 1  ;;  %v1598_v58 = vrot.slane %v1149_v51, 2 }
 0x330   : > { %1175 = vrot.lane.b32.xlu1 %v3607_v41, %s4547_s11  ;;  %1173 = vrot.lane.b32.xlu0 %v3610_v34, %s4547_s11  ;;  %v1384_v40 = vsel %vm739_vm8, %v1382_v12, %v1383_v35  ;;  %v1375_v61 = vsel %vm739_vm8, %v1373_v53, %v1374_v55  ;;  %v1154_v59 = vsel %vm620_vm7, %v1130_v32, 0.0  ;;  %v1600_v5 = vrot.slane %v3587_v27, 2 }
 0x331   : > { %v1148_v54 = vsel %vm620_vm7, 0.0, %v1132_v49  ;;  %v1388_v63 = vrot.slane %v3607_v41, 1  ;;  %v1387_v1 = vsel %vm739_vm8, %v1385_v60, %v1386_v62  ;;  %v1599_v2 = vsel %vm852_vm9, %v1597_v57, %v1598_v58 }
 0x332   : > { %v1601_v9 = vrot.slane %v1150_v8, 2  ;;  %v1389_v10 = vrot.slane %v1154_v59, 1  ;;  %v1155_v11 = vsel %vm620_vm7, %v1131_v42, 0.0  ;;  %v1603_v13 = vrot.slane %v3599_v31, 2 }
 0x333   : > { %v1391_v14 = vrot.slane %v3619_v47, 1  ;;  %v1604_v18 = vrot.slane %v1151_v44, 2  ;;  %v1392_v19 = vrot.slane %v1155_v11, 1  ;;  %v1156_v21 = vsel %vm620_vm7, %v1132_v49, 0.0 }
 0x334   : > { %1177 = vrot.lane.b32.xlu1 %v3619_v47, %s4547_s11  ;;  %1399 = vrot.lane.b32.xlu0 %v1378_v48, %s4547_s11  ;;  %v1602_v17 = vsel %vm852_vm9, %v1600_v5, %v1601_v9  ;;  %v1390_v3 = vsel %vm739_vm8, %v1388_v63, %v1389_v10  ;;  %v1606_v22 = vrot.slane %v3595_v30, 2  ;;  %v1607_v4 = vrot.slane %v1152_v20, 2 }
 0x335   : > { %v1394_v52 = vrot.slane %v1148_v54, 1  ;;  %v1605_v23 = vsel %vm852_vm9, %v1603_v13, %v1604_v18  ;;  %v1393_v24 = vsel %vm739_vm8, %v1391_v14, %v1392_v19  ;;  %v1395_v25 = vrot.slane %v1156_v21, 1 }
 0x336   : > { %v1612_v6 = vrot.slane %v3607_v41, 2  ;;  %v1609_v26 = vrot.slane %v3610_v34, 2  ;;  %v1608_v27 = vsel %vm852_vm9, %v1606_v22, %v1607_v4  ;;  %v1610_v29 = vrot.slane %v1153_v56, 2 }
 0x337   : > { %v1396_v28 = vsel %vm739_vm8, %v1394_v52, %v1395_v25  ;;  %v1613_v46 = vrot.slane %v1154_v59, 2  ;;  %v1615_v8 = vrot.slane %v3619_v47, 2  ;;  %v1618_v30 = vrot.slane %v1148_v54, 2 }
 0x338   : > { %1179 = vrot.lane.b32.xlu1 %v1148_v54, %s4547_s11  ;;  %1401 = vrot.lane.b32.xlu0 %v1381_v39, %s4547_s11  ;;  %v1611_v0 = vsel %vm852_vm9, %v1609_v26, %v1610_v29  ;;  %v1616_v32 = vrot.slane %v1155_v11, 2  ;;  %v1619_v33 = vrot.slane %v1156_v21, 2  ;;  %v1246_v16 = vstv %s2507_s19  ;;  %s2540_s19 = sld [smem:[#allocation10 + $0x282]] }
 0x339   : > { %v1614_v31 = vsel %vm852_vm9, %v1612_v6, %v1613_v46  ;;  %v1238_v38 = vstv %s2506_s0  ;;  %v1302_v47 = vstv %s2514_s29  ;;  %v1254_v49 = vstv %s2508_s1  ;;  %s2538_s0 = sld [smem:[#allocation10 + $0x280]]  ;;  %s2533_s29 = sld [smem:[#allocation10 + $0x203]] }
 0x33a   : > { %v1617_v36 = vsel %vm852_vm9, %v1615_v8, %v1616_v32  ;;  %v1620_v15 = vsel %vm852_vm9, %v1618_v30, %v1619_v33  ;;  %v1310_v39 = vstv %s3673_s12  ;;  %v1262_v35 = vstv %s3675_s2  ;;  %s2541_s1 = sld [smem:[#allocation10 + $0x283]]  ;;  %s3767_s12 = sld [smem:[#allocation10 + $0x204]] }
 0x33b   : > { %v1318_v62 = vstv %s3687_s3  ;;  %v1270_v58 = vstv %s2510_s4  ;;  %v1326_v9 = vstv %s2517_s6  ;;  %v1278_v10 = vstv %s2511_s13  ;;  %s3769_s2 = sld [smem:[#allocation10 + $0x381]]  ;;  %s3779_s3 = sld [smem:[#allocation10 + $0x380]] }
 0x33c   : > { %1403 = vrot.lane.b32.xlu0 %v1384_v40, %s4547_s11  ;;  %1397 = vrot.lane.b32.xlu1 %v1375_v61, %s4547_s11  ;;  %v1342_v18 = vstv %s2519_s10  ;;  %v1334_v19 = vstv %s2518_s21  ;;  %s3781_s4 = sld [smem:[#allocation10 + $0x205]]  ;;  %s3790_s6 = sld [smem:[#allocation10 + $0x284]]  ;;  %vm2163_vm7 = vcmask 189568   ;;  %vm2177_vm8 = vcmask 261315  }
 0x33d   : > { %v1294_v46 = vstv %s2513_s9  ;;  %v1470_v30 = vstv %s2530_s30  ;;  %s2556_s13 = sld [smem:[#allocation10 + $0x382]]  ;;  %s2562_s10 = sld [smem:[#allocation10 + $0x400]]  ;;  %vm2179_vm9 = vcmask 256192  }
 0x33e   : > { %s2563_s21 = sld [smem:[#allocation10 + $0x401]]  ;;  %s2564_s9 = sld [smem:[#allocation10 + $0x402]] }
 0x33f   : > { %s2557_s30 = sld [smem:[#allocation10 + $0x383]] }
 0x340   : > { %1405 = vrot.lane.b32.xlu0 %v1387_v1, %s4547_s11  ;;  %1621 = vrot.lane.b32.xlu1 %v1599_v2, %s4547_s11 }
 0x344   : > { %1623 = vrot.lane.b32.xlu0 %v1602_v17, %s4547_s11  ;;  %1407 = vrot.lane.b32.xlu1 %v1390_v3, %s4547_s11 }
 0x348   : > { %1625 = vrot.lane.b32.xlu0 %v1605_v23, %s4547_s11  ;;  %1409 = vrot.lane.b32.xlu1 %v1393_v24, %s4547_s11  ;;  %v1286_v23 = vstv %s2512_s20  ;;  %v1350_v24 = vstv %s2520_s28  ;;  %s2543_s20 = sld [smem:[#allocation10 + $0x285]]  ;;  %s2536_s28 = sld [smem:[#allocation10 + $0x206]] }
 0x34c   : > { %1627 = vrot.lane.b32.xlu0 %v1608_v27, %s4547_s11  ;;  %1411 = vrot.lane.b32.xlu1 %v1396_v28, %s4547_s11 }
 0x350   : > { %1629 = vrot.lane.b32.xlu0 %v1611_v0, %s4547_s11  ;;  %1631 = vrot.lane.b32.xlu1 %v1614_v31, %s4547_s11 }
 0x354   : > { %1633 = vrot.lane.b32.xlu0 %v1617_v36, %s4547_s11  ;;  %1635 = vrot.lane.b32.xlu1 %v1620_v15, %s4547_s11  ;;  %s2539_s11 = sld [smem:[#allocation10 + $0x281]]  ;;  %v1358_v15 = vstv %s2521_s18  ;;  %s2544_s18 = sld [smem:[#allocation10 + $0x286]] }
 0x39a   : > { %v1168_v37 = vpop.permute.xlu1 %1167  ;;  %v1166_v41 = vpop.permute.xlu0 %1165 }
 0x39b   : > { %v1190_v34 = vsel %vm645_vm10, 0.0, %v1168_v37  ;;  %v1189_v42 = vsel %vm645_vm10, 0.0, %v1166_v41 }
 0x39c   : > { %v3680_v43 = vsel %vm650_vm11, %v1190_v34, 0.0  ;;  %v3683_v44 = vsel %vm650_vm11, %v1189_v42, 0.0  ;;  %v1478_v42 = vstv %s3738_s17  ;;  %s2565_s17 = sld [smem:[#allocation10 + $0x403]] }
 0x39d   : > { %v1247_v45 = vmul.f32 %v1246_v16, %v3680_v43  ;;  %v1239_v7 = vmul.f32 %v1238_v38, %v3683_v44  ;;  %v1303_v12 = vmul.f32 %v1302_v47, %v3683_v44  ;;  %v1311_v40 = vmul.f32 %v1310_v39, %v3680_v43 }
 0x39e   : > { %v1172_v48 = vpop.permute.xlu1 %1171  ;;  %v1170_v50 = vpop.permute.xlu0 %1169  ;;  %v1486_v16 = vstv %s2532_s26  ;;  %s2537_s26 = sld [smem:[#allocation10 + $0x207]] }
 0x39f   : > { %v1192_v51 = vsel %vm645_vm10, 0.0, %v1172_v48  ;;  %v1191_v20 = vsel %vm645_vm10, 0.0, %v1170_v50  ;;  %1241 = vrot.lane.b32.xlu0 %v1239_v7, %s4548_s5  ;;  %1249 = vrot.lane.b32.xlu1 %v1247_v45, %s4548_s5  ;;  %v1542_v45 = vstv %s2539_s11  ;;  %v1550_v50 = vstv %s2540_s19  ;;  %s2558_s11 = sld [smem:[#allocation10 + $0x384]]  ;;  %s2545_s19 = sld [smem:[#allocation10 + $0x287]] }
 0x3a0   : > { %v3694_v53 = vsel %vm650_vm11, %v1191_v20, 0.0  ;;  %v3701_v55 = vsel %vm650_vm11, %v1192_v51, 0.0  ;;  %v1534_v51 = vstv %s2538_s0  ;;  %s2559_s0 = sld [smem:[#allocation10 + $0x385]] }
 0x3a1   : > { %v1255_v54 = vmul.f32 %v1254_v49, %v3694_v53  ;;  %v1263_v61 = vmul.f32 %v1262_v35, %v3701_v55  ;;  %v1319_v1 = vmul.f32 %v1318_v62, %v3694_v53  ;;  %v1327_v17 = vmul.f32 %v1326_v9, %v3701_v55 }
 0x3a2   : > { %v1176_v56 = vpop.permute.xlu1 %1175  ;;  %v1174_v57 = vpop.permute.xlu0 %1173 }
 0x3a3   : > { %v1193_v60 = vsel %vm645_vm10, 0.0, %v1174_v57  ;;  %1257 = vrot.lane.b32.xlu0 %v1255_v54, %s4548_s5  ;;  %1305 = vrot.lane.b32.xlu1 %v1303_v12, %s4549_s15  ;;  %v1194_v63 = vsel %vm645_vm10, 0.0, %v1176_v56  ;;  %v1494_v56 = vstv %s2533_s29  ;;  %v1558_v57 = vstv %s2541_s1  ;;  %s2566_s29 = sld [smem:[#allocation10 + $0x404]]  ;;  %s2560_s1 = sld [smem:[#allocation10 + $0x386]] }
 0x3a4   : > { %v3710_v59 = vsel %vm650_vm11, %v1193_v60, 0.0  ;;  %v3718_v11 = vsel %vm650_vm11, %v1194_v63, 0.0  ;;  %v1502_v63 = vstv %s3767_s12  ;;  %s2567_s12 = sld [smem:[#allocation10 + $0x405]] }
 0x3a5   : > { %v1271_v2 = vmul.f32 %v1270_v58, %v3710_v59  ;;  %v1279_v3 = vmul.f32 %v1278_v10, %v3718_v11  ;;  %v1343_v4 = vmul.f32 %v1342_v18, %v3718_v11  ;;  %v1335_v52 = vmul.f32 %v1334_v19, %v3710_v59 }
 0x3a6   : > { %v1178_v5 = vpop.permute.xlu1 %1177  ;;  %v1400_v14 = vpop.permute.xlu0 %1399  ;;  %v1694_v18 = vstv %s3779_s3  ;;  %s2568_s3 = sld [smem:[#allocation10 + $0x406]] }
 0x3a7   : > { %1313 = vrot.lane.b32.xlu0 %v1311_v40, %s4549_s15  ;;  %1265 = vrot.lane.b32.xlu1 %v1263_v61, %s4548_s5  ;;  %v1195_v21 = vsel %vm645_vm10, 0.0, %v1178_v5  ;;  %v1422_v38 = vsel %vm645_vm10, 0.0, %v1400_v14 }
 0x3a8   : > { %v3730_v25 = vsel %vm650_vm11, %v1195_v21, 0.0  ;;  %v3761_v7 = vsel %vm650_vm11, %v1422_v38, 0.0  ;;  %v1510_v21 = vstv %s3781_s4  ;;  %s2569_s4 = sld [smem:[#allocation10 + $0x407]] }
 0x3a9   : > { %v1287_v28 = vmul.f32 %v1286_v23, %v3730_v25  ;;  %v1351_v29 = vmul.f32 %v1350_v24, %v3730_v25  ;;  %v1479_v48 = vmul.f32 %v1478_v42, %v3761_v7  ;;  %v1543_v49 = vmul.f32 %v1542_v45, %v3761_v7 }
 0x3aa   : > { %v1180_v13 = vpop.permute.xlu1 %1179  ;;  %v1402_v6 = vpop.permute.xlu0 %1401  ;;  %v1566_v24 = vstv %s3790_s6  ;;  %s1205_s6 = sld [smem:[#allocation10]] }
 0x3ab   : > { %1321 = vrot.lane.b32.xlu0 %v1319_v1, %s4549_s15  ;;  %1273 = vrot.lane.b32.xlu1 %v1271_v2, %s4548_s5  ;;  %v1196_v26 = vsel %vm645_vm10, 0.0, %v1180_v13  ;;  %v1423_v31 = vsel %vm645_vm10, 0.0, %v1402_v6  ;;  %v1702_v2 = vstv %s3769_s2  ;;  %v1710_v6 = vstv %s2556_s13  ;;  %s2561_s2 = sld [smem:[#allocation10 + $0x387]]  ;;  %s2499_s13 = sld [smem:[#allocation10 + $0x1]] }
 0x3ac   : > { %v3741_v8 = vsel %vm650_vm11, %v1196_v26, 0.0  ;;  %v3752_v37 = vsel %vm650_vm11, %v1423_v31, 0.0 }
 0x3ad   : > { %v1295_v33 = vmul.f32 %v1294_v46, %v3741_v8  ;;  %v1359_v41 = vmul.f32 %v1358_v15, %v3741_v8  ;;  %v1487_v34 = vmul.f32 %v1486_v16, %v3752_v37  ;;  %v1551_v39 = vmul.f32 %v1550_v50, %v3752_v37 }
 0x3ae   : > { %v1398_v22 = vpop.permute.xlu1 %1397  ;;  %v1404_v32 = vpop.permute.xlu0 %1403  ;;  %v1758_v46 = vstv %s2562_s10  ;;  %v1574_v15 = vstv %s2543_s20  ;;  %v1518_v16 = vstv %s2536_s28  ;;  %s2500_s10 = sld [smem:[#allocation10 + $0x2]]  ;;  %s2523_s20 = sld [smem:[#allocation10 + $0x181]] }
 0x3af   : > { %1329 = vrot.lane.b32.xlu0 %v1327_v17, %s4549_s15  ;;  %1281 = vrot.lane.b32.xlu1 %v1279_v3, %s4548_s5  ;;  %v1421_v27 = vsel %vm645_vm10, 0.0, %v1398_v22  ;;  %v1424_v12 = vsel %vm645_vm10, 0.0, %v1404_v32  ;;  %s2501_s28 = sld [smem:[#allocation10 + $0x3]] }
 0x3b0   : > { %v3744_v0 = vsel %vm650_vm11, %v1421_v27, 0.0  ;;  %v3777_v60 = vsel %vm650_vm11, %v1424_v12, 0.0 }
 0x3b1   : > { %v1471_v36 = vmul.f32 %v1470_v30, %v3744_v0  ;;  %v1535_v35 = vmul.f32 %v1534_v51, %v3744_v0  ;;  %v1495_v58 = vmul.f32 %v1494_v56, %v3777_v60  ;;  %v1559_v5 = vmul.f32 %v1558_v57, %v3777_v60 }
 0x3b2   : > { %v1406_v47 = vpop.permute.xlu0 %1405  ;;  %v1622_v20 = vpop.permute.xlu1 %1621  ;;  %v1766_v30 = vstv %s2563_s21  ;;  %s2522_s21 = sld [smem:[#allocation10 + $0x180]] }
 0x3b3   : > { %1337 = vrot.lane.b32.xlu0 %v1335_v52, %s4549_s15  ;;  %1345 = vrot.lane.b32.xlu1 %v1343_v4, %s4549_s15  ;;  %v1425_v40 = vsel %vm645_vm10, 0.0, %v1406_v47  ;;  %v1645_v10 = vsel %vm645_vm10, 0.0, %v1622_v20  ;;  %v1774_v47 = vstv %s2564_s9  ;;  %s2502_s9 = sld [smem:[#allocation10 + $0x4]] }
 0x3b4   : > { %v3793_v1 = vsel %vm650_vm11, %v1425_v40, 0.0  ;;  %v3807_v19 = vsel %vm650_vm11, %v1645_v10, 0.0 }
 0x3b5   : > { %v1503_v17 = vmul.f32 %v1502_v63, %v3793_v1  ;;  %v1695_v52 = vmul.f32 %v1694_v18, %v3807_v19 }
 0x3b6   : > { %v1624_v54 = vpop.permute.xlu0 %1623  ;;  %v1408_v62 = vpop.permute.xlu1 %1407 }
 0x3b7   : > { %1289 = vrot.lane.b32.xlu0 %v1287_v28, %s4548_s5  ;;  %1353 = vrot.lane.b32.xlu1 %v1351_v29, %s4549_s15  ;;  %v1646_v61 = vsel %vm645_vm10, 0.0, %v1624_v54  ;;  %v1426_v13 = vsel %vm645_vm10, 0.0, %v1408_v62  ;;  %v1567_v28 = vmul.f32 %v1566_v24, %v3793_v1  ;;  %v1582_v54 = vstv %s2544_s18  ;;  %s3901_s18 = sld [smem:[#allocation10 + $0x184]] }
 0x3b8   : > { %v3797_v9 = vsel %vm650_vm11, %v1646_v61, 0.0  ;;  %v3811_v22 = vsel %vm650_vm11, %v1426_v13, 0.0  ;;  %v1782_v62 = vstv %s2565_s17  ;;  %v1742_v24 = vstv %s2560_s1  ;;  %s2504_s17 = sld [smem:[#allocation10 + $0x6]]  ;;  %s3925_s1 = sld [smem:[#allocation10 + $0x300]] }
 0x3b9   : > { %v1703_v3 = vmul.f32 %v1702_v2, %v3797_v9  ;;  %v1511_v23 = vmul.f32 %v1510_v21, %v3811_v22  ;;  %v1575_v42 = vmul.f32 %v1574_v15, %v3811_v22  ;;  %v1814_v15 = vstv %s2569_s4  ;;  %s3939_s4 = sld [smem:[#allocation10 + $0x305]] }
 0x3ba   : > { %v1626_v14 = vpop.permute.xlu0 %1625  ;;  %v1410_v27 = vpop.permute.xlu1 %1409 }
 0x3bb   : > { %1297 = vrot.lane.b32.xlu0 %v1295_v33, %s4548_s5  ;;  %1473 = vrot.lane.b32.xlu1 %v1471_v36, %s4548_s5  ;;  %v1647_v4 = vsel %vm645_vm10, 0.0, %v1626_v14  ;;  %v1427_v31 = vsel %vm645_vm10, 0.0, %v1410_v27  ;;  %v1759_v33 = vmul.f32 %v1758_v46, %v3807_v19  ;;  %v1767_v36 = vmul.f32 %v1766_v30, %v3797_v9 }
 0x3bc   : > { %v3820_v26 = vsel %vm650_vm11, %v1647_v4, 0.0  ;;  %v3832_v38 = vsel %vm650_vm11, %v1427_v31, 0.0  ;;  %v1590_v14 = vstv %s2545_s19  ;;  %v1798_v46 = vstv %s2567_s12  ;;  %s2505_s19 = sld [smem:[#allocation10 + $0x7]]  ;;  %s3930_s12 = sld [smem:[#allocation10 + $0x302]] }
 0x3bd   : > { %v1711_v29 = vmul.f32 %v1710_v6, %v3820_v26  ;;  %v1519_v45 = vmul.f32 %v1518_v16, %v3832_v38  ;;  %v1775_v20 = vmul.f32 %v1774_v47, %v3820_v26  ;;  %v1583_v40 = vmul.f32 %v1582_v54, %v3832_v38 }
 0x3be   : > { %v1628_v32 = vpop.permute.xlu0 %1627  ;;  %v1750_v30 = vstv %s2561_s2  ;;  %v1438_v54 = vstv %s2522_s21  ;;  %s3933_s2 = sld [smem:[#allocation10 + $0x303]]  ;;  %s3950_s21 = sld [smem:[#allocation12 + $0x1]] }
 0x3bf   : > { %1361 = vrot.lane.b32.xlu0 %v1359_v41, %s4549_s15  ;;  %1489 = vrot.lane.b32.xlu1 %v1487_v34, %s4548_s5  ;;  %v1648_v41 = vsel %vm645_vm10, 0.0, %v1628_v32  ;;  %v1412_v34 = vpop.permute.xlu1 %1411 }
 0x3c0   : > { %v1428_v50 = vsel %vm645_vm10, 0.0, %v1412_v34  ;;  %v1206_v34 = vstv %s1205_s6  ;;  %s3941_s6 = sld [smem:[#allocation10 + $0x306]] }
 0x3c2   : > { %v1630_v51 = vpop.permute.xlu0 %1629 }
 0x3c3   : > { %1481 = vrot.lane.b32.xlu0 %v1479_v48, %s4548_s5  ;;  %1545 = vrot.lane.b32.xlu1 %v1543_v49, %s4549_s15  ;;  %v1718_v48 = vstv %s2557_s30  ;;  %v3840_v49 = vsel %vm650_vm11, %v1648_v41, 0.0  ;;  %v1649_v56 = vsel %vm645_vm10, 0.0, %v1630_v51  ;;  %v1632_v57 = vpop.permute.xlu1 %1631  ;;  %v1214_v51 = vstv %s2500_s10  ;;  %s2503_s30 = sld [smem:[#allocation10 + $0x5]]  ;;  %s3947_s10 = sld [smem:[#allocation12]] }
 0x3c4   : > { %v1719_v12 = vmul.f32 %v1718_v48, %v3840_v49  ;;  %v1650_v63 = vsel %vm645_vm10, 0.0, %v1632_v57  ;;  %v1783_v10 = vmul.f32 %v1782_v62, %v3840_v49  ;;  %v1442_v62 = vstv %s2523_s20  ;;  %s3952_s20 = sld [smem:[#allocation12 + $0x2]] }
 0x3c6   : > { %v1634_v2 = vpop.permute.xlu0 %1633 }
 0x3c7   : > { %1537 = vrot.lane.b32.xlu0 %v1535_v35, %s4549_s15  ;;  %1553 = vrot.lane.b32.xlu1 %v1551_v39, %s4549_s15  ;;  %v1526_v39 = vstv %s2537_s26  ;;  %v3848_v35 = vsel %vm650_vm11, %v1428_v50, 0.0  ;;  %v1651_v18 = vsel %vm645_vm10, 0.0, %v1634_v2  ;;  %v1636_v21 = vpop.permute.xlu1 %1635  ;;  %v1443_v2 = vmul.f32 %v1442_v62, %v3761_v7  ;;  %s3903_s26 = sld [smem:[#allocation10 + $0x185]] }
 0x3c8   : > { %v1527_v61 = vmul.f32 %v1526_v39, %v3848_v35  ;;  %v1591_v4 = vmul.f32 %v1590_v14, %v3848_v35  ;;  %v3872_v6 = vsel %vm650_vm11, %v1651_v18, 0.0  ;;  %v1652_v27 = vsel %vm645_vm10, 0.0, %v1636_v21 }
 0x3c9   : > { %v3880_v31 = vsel %vm650_vm11, %v1652_v27, 0.0  ;;  %v1215_v39 = vmul.f32 %v1214_v51, %v3694_v53  ;;  %vm2193_vm10 = vcmask 326916  }
 0x3ca   : > { %v1815_v41 = vmul.f32 %v1814_v15, %v3880_v31 }
 0x3cb   : > { %1497 = vrot.lane.b32.xlu0 %v1495_v58, %s4548_s5  ;;  %1561 = vrot.lane.b32.xlu1 %v1559_v5, %s4549_s15  ;;  %v1726_v58 = vstv %s2558_s11  ;;  %v3856_v5 = vsel %vm650_vm11, %v1649_v56, 0.0  ;;  %s2528_s11 = sld [smem:[#allocation10 + $0x186]] }
 0x3cc   : > { %v1727_v13 = vmul.f32 %v1726_v58, %v3856_v5 }
 0x3cf   : > { %1505 = vrot.lane.b32.xlu0 %v1503_v17, %s4548_s5  ;;  %1705 = vrot.lane.b32.xlu1 %v1703_v3, %s4548_s5  ;;  %v1734_v17 = vstv %s2559_s0  ;;  %v3864_v3 = vsel %vm650_vm11, %v1650_v63, 0.0  ;;  %s2529_s0 = sld [smem:[#allocation10 + $0x187]]  ;;  %vm2195_vm11 = vcmask 322816  }
 0x3d0   : > { %v1799_v32 = vmul.f32 %v1798_v46, %v3864_v3 }
 0x3d1   : > { %v1462_v51 = vstv %s2528_s11  ;;  %s3980_s11 = sld [smem:[#allocation12 + $0x83]] }
 0x3d3   : > { %1697 = vrot.lane.b32.xlu0 %v1695_v52, %s4548_s5  ;;  %1513 = vrot.lane.b32.xlu1 %v1511_v23, %s4548_s5  ;;  %v1735_v52 = vmul.f32 %v1734_v17, %v3864_v3  ;;  %v1790_v23 = vstv %s2566_s29  ;;  %s2547_s29 = sld [smem:[#allocation10 + $0x301]] }
 0x3d7   : > { %1569 = vrot.lane.b32.xlu0 %v1567_v28, %s4549_s15  ;;  %1713 = vrot.lane.b32.xlu1 %v1711_v29, %s4548_s5  ;;  %v1791_v28 = vmul.f32 %v1790_v23, %v3856_v5  ;;  %v1743_v29 = vmul.f32 %v1742_v24, %v3872_v6  ;;  %v1226_v23 = vstv %s2503_s30  ;;  %s3968_s30 = sld [smem:[#allocation12 + $0x7]] }
 0x3db   : > { %1761 = vrot.lane.b32.xlu0 %v1759_v33, %s4549_s15  ;;  %1769 = vrot.lane.b32.xlu1 %v1767_v36, %s4549_s15  ;;  %v1751_v33 = vmul.f32 %v1750_v30, %v3880_v31  ;;  %v1806_v36 = vstv %s2568_s3  ;;  %s3935_s3 = sld [smem:[#allocation10 + $0x304]] }
 0x3dc   : > { %v1807_v16 = vmul.f32 %v1806_v36, %v3872_v6  ;;  %v1458_v36 = vstv %s3903_s26  ;;  %s3972_s26 = sld [smem:[#allocation12 + $0x81]] }
 0x3df   : > { %1577 = vrot.lane.b32.xlu1 %v1575_v42, %s4549_s15  ;;  %1521 = vrot.lane.b32.xlu0 %v1519_v45, %s4548_s5  ;;  %v1210_v42 = vstv %s2499_s13  ;;  %v1207_v45 = vmul.f32 %v1206_v34, %v3683_v44  ;;  %s3944_s13 = sld [smem:[#allocation10 + $0x307]] }
 0x3e0   : > { %v1211_v47 = vmul.f32 %v1210_v42, %v3680_v43  ;;  %v1230_v42 = vstv %s2504_s17  ;;  %s3974_s17 = sld [smem:[#allocation12 + $0x82]] }
 0x3e3   : > { %1777 = vrot.lane.b32.xlu1 %v1775_v20, %s4549_s15  ;;  %1721 = vrot.lane.b32.xlu0 %v1719_v12, %s4548_s5 }
 0x3e7   : > { %1585 = vrot.lane.b32.xlu1 %v1583_v40, %s4549_s15  ;;  %1529 = vrot.lane.b32.xlu0 %v1527_v61, %s4548_s5  ;;  %v1439_v40 = vmul.f32 %v1438_v54, %v3744_v0 }
 0x3eb   : > { %1785 = vrot.lane.b32.xlu1 %v1783_v10, %s4549_s15  ;;  %1729 = vrot.lane.b32.xlu0 %v1727_v13, %s4548_s5  ;;  %v1218_v13 = vstv %s2501_s28  ;;  %s3958_s28 = sld [smem:[#allocation12 + $0x4]] }
 0x3ec   : > { %v1219_v21 = vmul.f32 %v1218_v13, %v3701_v55  ;;  %v1662_v13 = vstv %s3925_s1  ;;  %s3990_s1 = sld [smem:[#allocation12 + $0x87]] }
 0x3ef   : > { %1593 = vrot.lane.b32.xlu0 %v1591_v4, %s4549_s15  ;;  %1737 = vrot.lane.b32.xlu1 %v1735_v52, %s4548_s5  ;;  %v1222_v52 = vstv %s2502_s9  ;;  %s3963_s9 = sld [smem:[#allocation12 + $0x6]] }
 0x3f0   : > { %v1223_v30 = vmul.f32 %v1222_v52, %v3710_v59  ;;  %v1231_v59 = vmul.f32 %v1230_v42, %v3730_v25 }
 0x3f3   : > { %1793 = vrot.lane.b32.xlu0 %v1791_v28, %s4549_s15  ;;  %1745 = vrot.lane.b32.xlu1 %v1743_v29, %s4548_s5 }
 0x3f7   : > { %1801 = vrot.lane.b32.xlu0 %v1799_v32, %s4549_s15  ;;  %1753 = vrot.lane.b32.xlu1 %v1751_v33, %s4548_s5  ;;  %s2524_s5 = sld [smem:[#allocation10 + $0x182]]  ;;  %v1227_v33 = vmul.f32 %v1226_v23, %v3718_v11 }
 0x3fb   : > { %1809 = vrot.lane.b32.xlu0 %v1807_v16, %s4549_s15  ;;  %1817 = vrot.lane.b32.xlu1 %v1815_v41, %s4549_s15  ;;  %s3895_s15 = sld [smem:[#allocation10 + $0x183]] }
 0x3fd   : > { %v1446_v53 = vstv %s2524_s5  ;;  %s3956_s5 = sld [smem:[#allocation12 + $0x3]] }
 0x3fe   : > { %v1447_v18 = vmul.f32 %v1446_v53, %v3752_v37  ;;  %v1454_v37 = vstv %s3901_s18  ;;  %s3970_s18 = sld [smem:[#allocation12 + $0x80]] }
 0x401   : > { %v1450_v7 = vstv %s3895_s15  ;;  %s3961_s15 = sld [smem:[#allocation12 + $0x5]] }
 0x402   : > { %v1451_v46 = vmul.f32 %v1450_v7, %v3777_v60  ;;  %v1663_v7 = vmul.f32 %v1662_v13, %v3807_v19  ;;  %v2039_v13 = vstv %s4009_s24  ;;  %s4143_s24 = sld [smem:[#allocation12 + $0x303]] }
 0x411   : > { %v1242_v48 = vpop.permute.xlu0 %1241  ;;  %v1250_v50 = vpop.permute.xlu1 %1249 }
 0x412   : > { %v1244_v20 = vadd.f32 %v1242_v48, %v1207_v45  ;;  %v1252_v12 = vadd.f32 %v1250_v50, %v1211_v47  ;;  %v1455_v45 = vmul.f32 %v1454_v37, %v3793_v1  ;;  %v1459_v47 = vmul.f32 %v1458_v36, %v3811_v22 }
 0x413   : > { %v1682_v37 = vstv %s3939_s4  ;;  %v1686_v36 = vstv %s3941_s6  ;;  %s4019_s4 = sld [smem:[#allocation12 + $0x182]]  ;;  %s4031_s6 = sld [smem:[#allocation12 + $0x183]] }
 0x414   : > { %v4026_v42 = vmul.f32 %v1686_v36, %v3872_v6  ;;  %v1962_v6 = vstv %s3958_s28  ;;  %s4083_s28 = sld [smem:[#allocation12 + $0x203]] }
 0x415   : > { %v1258_v56 = vpop.permute.xlu0 %1257  ;;  %v1306_v57 = vpop.permute.xlu1 %1305 }
 0x416   : > { %v1260_v61 = vadd.f32 %v1258_v56, %v1215_v39  ;;  %v1308_v44 = vadd.f32 %v1306_v57, %v1244_v20  ;;  %v1234_v39 = vstv %s2505_s19  ;;  %v1463_v56 = vmul.f32 %v1462_v51, %v3832_v38  ;;  %s3982_s19 = sld [smem:[#allocation12 + $0x84]] }
 0x417   : > { %v2032_v51 = vstv %s3963_s9  ;;  %s4089_s9 = sld [smem:[#allocation12 + $0x205]] }
 0x418   : > { %v3898_v43 = vadd.f32 %v1439_v40, %v1308_v44  ;;  %v1235_v40 = vmul.f32 %v1234_v39, %v3741_v8  ;;  %v1666_v8 = vstv %s2547_s29  ;;  %s3987_s29 = sld [smem:[#allocation12 + $0x86]]  ;;  %v1895_v39 = vstv %s3974_s17  ;;  %s4101_s17 = sld [smem:[#allocation12 + $0x281]] }
 0x419   : > { %v1314_v58 = vpop.permute.xlu0 %1313  ;;  %v1266_v63 = vpop.permute.xlu1 %1265 }
 0x41a   : > { %v1316_v10 = vadd.f32 %v1314_v58, %v1252_v12  ;;  %v1268_v24 = vadd.f32 %v1266_v63, %v1219_v21 }
 0x41c   : > { %v3905_v0 = vadd.f32 %v1443_v2, %v1316_v10 }
 0x41d   : > { %v1322_v14 = vpop.permute.xlu0 %1321  ;;  %v1274_v17 = vpop.permute.xlu1 %1273 }
 0x41e   : > { %v1324_v4 = vadd.f32 %v1322_v14, %v1260_v61  ;;  %v1276_v55 = vadd.f32 %v1274_v17, %v1223_v30  ;;  %v1466_v61 = vstv %s2529_s0  ;;  %v1667_v17 = vmul.f32 %v1666_v8, %v3797_v9  ;;  %s3985_s0 = sld [smem:[#allocation12 + $0x85]] }
 0x41f   : > { %v1467_v38 = vmul.f32 %v1466_v61, %v3848_v35  ;;  %v1670_v35 = vstv %s3930_s12  ;;  %s3992_s12 = sld [smem:[#allocation12 + $0x100]] }
 0x420   : > { %v1448_v27 = vadd.f32 %v1447_v18, %v1324_v4  ;;  %v1671_v23 = vmul.f32 %v1670_v35, %v3820_v26  ;;  %v1674_v26 = vstv %s3933_s2  ;;  %s3999_s2 = sld [smem:[#allocation12 + $0x103]]  ;;  %v1833_v35 = vstv %s4015_s22  ;;  %s4200_s22 = sld [smem:[#allocation12 + $0x384]] }
 0x421   : > { %v1330_v28 = vpop.permute.xlu0 %1329  ;;  %v1282_v29 = vpop.permute.xlu1 %1281  ;;  %v1675_v30 = vmul.f32 %v1674_v26, %v3840_v49  ;;  %v2043_v26 = vstv %s4041_s16  ;;  %s4202_s16 = sld [smem:[#allocation12 + $0x385]] }
 0x422   : > { %v1332_v32 = vadd.f32 %v1330_v28, %v1268_v24  ;;  %v1284_v15 = vadd.f32 %v1282_v29, %v1227_v33  ;;  %v1678_v33 = vstv %s3935_s3  ;;  %s4017_s3 = sld [smem:[#allocation12 + $0x181]] }
 0x423   : > { %v1679_v49 = vmul.f32 %v1678_v33, %v3856_v5 }
 0x424   : > { %v3915_v16 = vadd.f32 %v1451_v46, %v1332_v32 }
 0x425   : > { %v1338_v41 = vpop.permute.xlu0 %1337  ;;  %v1346_v34 = vpop.permute.xlu1 %1345 }
 0x426   : > { %v1340_v60 = vadd.f32 %v1338_v41, %v1276_v55  ;;  %v1348_v48 = vadd.f32 %v1346_v34, %v1284_v15  ;;  %v1690_v55 = vstv %s3944_s13  ;;  %v4023_v34 = vmul.f32 %v1682_v37, %v3864_v3  ;;  %s4033_s13 = sld [smem:[#allocation12 + $0x184]] }
 0x427   : > { %v1857_v3 = vstv %s3950_s21  ;;  %s4055_s21 = sld [smem:[#allocation12 + $0x201]] }
 0x428   : > { %v3920_v11 = vadd.f32 %v1455_v45, %v1340_v60  ;;  %v3922_v50 = vadd.f32 %v1459_v47, %v1348_v48  ;;  %v4029_v45 = vmul.f32 %v1690_v55, %v3880_v31  ;;  %v1822_v60 = vstv %s3947_s10  ;;  %s4049_s10 = sld [smem:[#allocation12 + $0x200]] }
 0x429   : > { %v1290_v20 = vpop.permute.xlu0 %1289  ;;  %v1354_v12 = vpop.permute.xlu1 %1353  ;;  %v1892_v48 = vstv %s3952_s20  ;;  %v1997_v31 = vstv %s3961_s15  ;;  %s4057_s20 = sld [smem:[#allocation12 + $0x202]]  ;;  %s4087_s15 = sld [smem:[#allocation12 + $0x204]] }
 0x42a   : > { %v1292_v54 = vadd.f32 %v1290_v20, %v1231_v59  ;;  %v1927_v59 = vstv %s3956_s5  ;;  %v2067_v20 = vstv %s3968_s30  ;;  %s4095_s30 = sld [smem:[#allocation12 + $0x206]] }
 0x42c   : > { %v1356_v57 = vadd.f32 %v1354_v12, %v1292_v54  ;;  %4550 = sst [smem:[#allocation32_spill]] %s4033_s13  ;;  %s4047_s13 = sld [smem:[#allocation12 + $0x187]]  ;;  %v1825_v12 = vstv %s3970_s18  ;;  %v1860_v54 = vstv %s3972_s26 }
 0x42d   : > { %v1298_v1 = vpop.permute.xlu0 %1297  ;;  %v1474_v22 = vpop.permute.xlu1 %1473  ;;  %4552 = sst [smem:[#allocation34_spill]] %s4055_s21  ;;  %s4554_s5 = sld [smem:[#allocation32_spill]] }
 0x42e   : > { %v3928_v25 = vadd.f32 %v1463_v56, %v1356_v57  ;;  %v1300_v44 = vadd.f32 %v1298_v1, %v1235_v40  ;;  %v1476_v18 = vadd.f32 %v1474_v22, %v3898_v43  ;;  %4551 = sst [smem:[#allocation33_spill]] %s4049_s10  ;;  %v1930_v56 = vstv %s3980_s11  ;;  %s4097_s18 = sld [smem:[#allocation12 + $0x207]] }
 0x42f   : > { %4553 = sst [smem:[#allocation35_spill]] %s4057_s20  ;;  %v1965_v1 = vstv %s3982_s19  ;;  %v2000_v22 = vstv %s3985_s0  ;;  %v2035_v40 = vstv %s3987_s29  ;;  %v1907_v33 = vstv %s4057_s20  ;;  %s4099_s26 = sld [smem:[#allocation12 + $0x280]] }
 0x430   : > { %s4103_s11 = sld [smem:[#allocation12 + $0x282]]  ;;  %s4105_s19 = sld [smem:[#allocation12 + $0x283]] }
 0x431   : > { %v1362_v62 = vpop.permute.xlu0 %1361  ;;  %v1490_v58 = vpop.permute.xlu1 %1489  ;;  %s4107_s0 = sld [smem:[#allocation12 + $0x284]]  ;;  %s4109_s29 = sld [smem:[#allocation12 + $0x285]] }
 0x432   : > { %v1364_v63 = vadd.f32 %v1362_v62, %v1300_v44  ;;  %v1492_v21 = vadd.f32 %v1490_v58, %v1448_v27  ;;  %v2070_v62 = vstv %s3990_s1  ;;  %v1829_v58 = vstv %s3992_s12  ;;  %s4114_s1 = sld [smem:[#allocation12 + $0x286]]  ;;  %s4116_s20 = sld [smem:[#allocation12 + $0x287]] }
 0x433   : > { %s4160_s12 = sld [smem:[#allocation12 + $0x380]] }
 0x434   : > { %v3937_v2 = vadd.f32 %v1467_v38, %v1364_v63  ;;  %v1864_v38 = vstv %s3994_s25  ;;  %v1899_v63 = vstv %s3996_s14  ;;  %s4141_s25 = sld [smem:[#allocation12 + $0x302]]  ;;  %s4152_s14 = sld [smem:[#allocation12 + $0x306]] }
 0x435   : > { %v1482_v10 = vpop.permute.xlu0 %1481  ;;  %v1546_v53 = vpop.permute.xlu1 %1545 }
 0x436   : > { %v1484_v14 = vadd.f32 %v1482_v10, %v3905_v0  ;;  %v1934_v10 = vstv %s3999_s2  ;;  %4555 = sst [smem:[#allocation32_spill]] %s4103_s11  ;;  %s4167_s2 = sld [smem:[#allocation13]] }
 0x437   : > { %4556 = sst [smem:[#allocation36_spill]] %s4105_s19 }
 0x438   : > { %v1548_v4 = vadd.f32 %v1546_v53, %v1484_v14  ;;  %v1969_v53 = vstv %s4001_s27  ;;  %v2074_v14 = vstv %s4013_s7  ;;  %4557 = sst [smem:[#allocation37_spill]] %s4107_s0  ;;  %s4145_s7 = sld [smem:[#allocation12 + $0x304]] }
 0x439   : > { %v1538_v0 = vpop.permute.xlu0 %1537  ;;  %v1554_v52 = vpop.permute.xlu1 %1553  ;;  %s4150_s27 = sld [smem:[#allocation12 + $0x305]] }
 0x43a   : > { %v1540_v9 = vadd.f32 %v1538_v0, %v1476_v18  ;;  %v1556_v24 = vadd.f32 %v1554_v52, %v1492_v21  ;;  %v3966_v43 = vadd.f32 %v1667_v17, %v1548_v4  ;;  %v1868_v17 = vstv %s4017_s3  ;;  %s4236_s3 = sld [smem:[#allocation13 + $0x7]] }
 0x43c   : > { %v3976_v19 = vadd.f32 %v1663_v7, %v1540_v9  ;;  %v3978_v27 = vadd.f32 %v1671_v23, %v1556_v24  ;;  %v1903_v7 = vstv %s4019_s4  ;;  %v1938_v23 = vstv %s4031_s6  ;;  %4558 = sst [smem:[#allocation38_spill]] %s4167_s2  ;;  %s4242_s4 = sld [smem:[#allocation13 + $0x3]] }
 0x43d   : > { %v1498_v28 = vpop.permute.xlu0 %1497  ;;  %v1562_v29 = vpop.permute.xlu1 %1561  ;;  %v1973_v9 = vstv %s4554_s5  ;;  %v2008_v24 = vstv %s4039_s8  ;;  %s4195_s8 = sld [smem:[#allocation12 + $0x383]]  ;;  %s4210_s5 = sld [smem:[#allocation12 + $0x386]] }
 0x43e   : > { %v1500_v46 = vadd.f32 %v1498_v28, %v3915_v16  ;;  %s4244_s6 = sld [smem:[#allocation13 + $0x4]] }
 0x440   : > { %v1564_v32 = vadd.f32 %v1562_v29, %v1500_v46  ;;  %v2078_v46 = vstv %s4047_s13  ;;  %s4208_s13 = sld [smem:[#allocation13 + $0x5]] }
 0x441   : > { %v1506_v15 = vpop.permute.xlu0 %1505  ;;  %v1706_v16 = vpop.permute.xlu1 %1705 }
 0x442   : > { %v4011_v41 = vadd.f32 %v1675_v30, %v1564_v32  ;;  %v1508_v57 = vadd.f32 %v1506_v15, %v3920_v11  ;;  %v2004_v11 = vstv %s4007_s23  ;;  %v1708_v18 = vadd.f32 %v1706_v16, %v3966_v43  ;;  %s4158_s23 = sld [smem:[#allocation12 + $0x307]] }
 0x443   : > { %v1837_v30 = vstv %s4049_s10  ;;  %v1872_v32 = vstv %s4055_s21  ;;  %s4121_s21 = sld [smem:[#allocation12 + $0x300]]  ;;  %s4123_s10 = sld [smem:[#allocation12 + $0x301]] }
 0x445   : > { %v1698_v47 = vpop.permute.xlu0 %1697  ;;  %v1514_v5 = vpop.permute.xlu1 %1513 }
 0x446   : > { %v1700_v21 = vadd.f32 %v1698_v47, %v3976_v19  ;;  %v1516_v43 = vadd.f32 %v1514_v5, %v3922_v50 }
 0x449   : > { %v1570_v61 = vpop.permute.xlu0 %1569  ;;  %v1714_v44 = vpop.permute.xlu1 %1713 }
 0x44a   : > { %v1572_v8 = vadd.f32 %v1570_v61, %v1508_v57  ;;  %v1716_v19 = vadd.f32 %v1714_v44, %v3978_v27 }
 0x44c   : > { %v4076_v4 = vadd.f32 %v1679_v49, %v1572_v8 }
 0x44d   : > { %v1762_v0 = vpop.permute.xlu0 %1761  ;;  %v1770_v52 = vpop.permute.xlu1 %1769 }
 0x44e   : > { %v1764_v28 = vadd.f32 %v1762_v0, %v1700_v21  ;;  %v1772_v29 = vadd.f32 %v1770_v52, %v1708_v18 }
 0x450   : > { %v1823_v37 = vmul.f32 %v1822_v60, %v1764_v28  ;;  %v1858_v36 = vmul.f32 %v1857_v3, %v1764_v28  ;;  %v1893_v55 = vmul.f32 %v1892_v48, %v1764_v28  ;;  %v1928_v15 = vmul.f32 %v1927_v59, %v1764_v28 }
 0x451   : > { %v1963_v16 = vmul.f32 %v1962_v6, %v1764_v28  ;;  %v1998_v49 = vmul.f32 %v1997_v31, %v1764_v28  ;;  %v2033_v47 = vmul.f32 %v2032_v51, %v1764_v28  ;;  %v2068_v57 = vmul.f32 %v2067_v20, %v1764_v28  ;;  %v1522_v61 = vpop.permute.xlu0 %1521  ;;  %v1578_v8 = vpop.permute.xlu1 %1577 }
 0x452   : > { %v1826_v18 = vmul.f32 %v1825_v12, %v1772_v29  ;;  %v1861_v50 = vmul.f32 %v1860_v54, %v1772_v29  ;;  %v1896_v5 = vmul.f32 %v1895_v39, %v1772_v29  ;;  %v1931_v27 = vmul.f32 %v1930_v56, %v1772_v29 }
 0x453   : > { %v1966_v44 = vmul.f32 %v1965_v1, %v1772_v29  ;;  %v2001_v21 = vmul.f32 %v2000_v22, %v1772_v29  ;;  %v2036_v0 = vmul.f32 %v2035_v40, %v1772_v29  ;;  %v2071_v52 = vmul.f32 %v2070_v62, %v1772_v29 }
 0x454   : > { %v1827_v60 = vadd.f32 %v1826_v18, %v1823_v37  ;;  %v1862_v3 = vadd.f32 %v1861_v50, %v1858_v36  ;;  %v1897_v48 = vadd.f32 %v1896_v5, %v1893_v55  ;;  %v1932_v59 = vadd.f32 %v1931_v27, %v1928_v15 }
 0x455   : > { %v1967_v6 = vadd.f32 %v1966_v44, %v1963_v16  ;;  %v2002_v31 = vadd.f32 %v2001_v21, %v1998_v49  ;;  %v2037_v51 = vadd.f32 %v2036_v0, %v2033_v47  ;;  %v2072_v20 = vadd.f32 %v2071_v52, %v2068_v57  ;;  %v1722_v12 = vpop.permute.xlu0 %1721  ;;  %v1778_v54 = vpop.permute.xlu1 %1777 }
 0x456   : > { %v1780_v39 = vadd.f32 %v1778_v54, %v1716_v19  ;;  %v1942_v56 = vstv %s4083_s28  ;;  %v1977_v1 = vstv %s4087_s15  ;;  %v2012_v22 = vstv %s4089_s9  ;;  %s4238_s28 = sld [smem:[#allocation13 + $0x2]]  ;;  %s4240_s15 = sld [smem:[#allocation13 + $0x6]] }
 0x457   : > { %v1524_v40 = vadd.f32 %v1522_v61, %v3928_v25  ;;  %v1580_v62 = vadd.f32 %v1578_v8, %v1516_v43  ;;  %v2047_v28 = vstv %s4095_s30  ;;  %v2082_v29 = vstv %s4097_s18 }
 0x458   : > { %v1830_v19 = vmul.f32 %v1829_v58, %v1780_v39  ;;  %v1865_v37 = vmul.f32 %v1864_v38, %v1780_v39  ;;  %v1900_v36 = vmul.f32 %v1899_v63, %v1780_v39  ;;  %v1935_v55 = vmul.f32 %v1934_v10, %v1780_v39 }
 0x459   : > { %v1970_v15 = vmul.f32 %v1969_v53, %v1780_v39  ;;  %v2005_v16 = vmul.f32 %v2004_v11, %v1780_v39  ;;  %v2040_v25 = vmul.f32 %v2039_v13, %v1780_v39  ;;  %v2075_v43 = vmul.f32 %v2074_v14, %v1780_v39  ;;  %v1530_v49 = vpop.permute.xlu0 %1529  ;;  %v1586_v47 = vpop.permute.xlu1 %1585 }
 0x45a   : > { %v1831_v57 = vadd.f32 %v1830_v19, %v1827_v60  ;;  %v1866_v61 = vadd.f32 %v1865_v37, %v1862_v3  ;;  %v1901_v58 = vadd.f32 %v1900_v36, %v1897_v48  ;;  %v1936_v8 = vadd.f32 %v1935_v55, %v1932_v59 }
 0x45b   : > { %v1971_v38 = vadd.f32 %v1970_v15, %v1967_v6  ;;  %v2006_v63 = vadd.f32 %v2005_v16, %v2002_v31  ;;  %v2041_v10 = vadd.f32 %v2040_v25, %v2037_v51  ;;  %v2076_v53 = vadd.f32 %v2075_v43, %v2072_v20 }
 0x45c   : > { %v1724_v11 = vadd.f32 %v1722_v12, %v4011_v41  ;;  %v1588_v13 = vadd.f32 %v1586_v47, %v1524_v40  ;;  %v1684_v14 = vadd.f32 %v4023_v34, %v1580_v62  ;;  %v1841_v18 = vstv %s4099_s26  ;;  %s3026_s26 = smov 16  }
 0x45d   : > { %v1730_v50 = vpop.permute.xlu0 %1729  ;;  %v1786_v5 = vpop.permute.xlu1 %1785  ;;  %v1876_v27 = vstv %s4101_s17  ;;  %v1911_v44 = vstv %s4103_s11  ;;  %v1946_v21 = vstv %s4105_s19  ;;  %v1981_v41 = vstv %s4107_s0  ;;  %s4169_s0 = sld [smem:[#allocation12 + $0x381]]  ;;  %s4177_s11 = sld [smem:[#allocation12 + $0x382]] }
 0x45e   : > { %v1788_v34 = vadd.f32 %v1786_v5, %v1724_v11  ;;  %v4163_v0 = vadd.f32 %v4026_v42, %v1588_v13  ;;  %v2016_v52 = vstv %s4109_s29  ;;  %v2051_v60 = vstv %s4114_s1  ;;  %s4175_s19 = sld [smem:[#allocation13 + $0x1]]  ;;  %s3027_s17 = smov 32  }
 0x45f   : > { %v1532_v3 = vadd.f32 %v1530_v49, %v3937_v2  ;;  %v2086_v48 = vstv %s4116_s20  ;;  %v1845_v59 = vstv %s4121_s21  ;;  %v1880_v6 = vstv %s4123_s10  ;;  %s3024_s21 = smov 8   ;;  %s3025_s20 = smov 40  }
 0x460   : > { %v1834_v42 = vmul.f32 %v1833_v35, %v1788_v34  ;;  %v1869_v31 = vmul.f32 %v1868_v17, %v1788_v34  ;;  %v1904_v51 = vmul.f32 %v1903_v7, %v1788_v34  ;;  %v1939_v20 = vmul.f32 %v1938_v23, %v1788_v34  ;;  %s3029_s1 = smov 48  }
 0x461   : > { %v1974_v12 = vmul.f32 %v1973_v9, %v1788_v34  ;;  %v2009_v54 = vmul.f32 %v2008_v24, %v1788_v34  ;;  %v2044_v2 = vmul.f32 %v2043_v26, %v1788_v34  ;;  %v2079_v39 = vmul.f32 %v2078_v46, %v1788_v34  ;;  %v1594_v40 = vpop.permute.xlu0 %1593  ;;  %v1738_v62 = vpop.permute.xlu1 %1737 }
 0x462   : > { %v1835_v19 = vadd.f32 %v1834_v42, %v1831_v57  ;;  %v1870_v35 = vadd.f32 %v1869_v31, %v1866_v61  ;;  %v1905_v17 = vadd.f32 %v1904_v51, %v1901_v58  ;;  %v1940_v7 = vadd.f32 %v1939_v20, %v1936_v8 }
 0x463   : > { %v1975_v23 = vadd.f32 %v1974_v12, %v1971_v38  ;;  %v2010_v9 = vadd.f32 %v2009_v54, %v2006_v63  ;;  %v2045_v37 = vadd.f32 %v2044_v2, %v2041_v10  ;;  %v2080_v24 = vadd.f32 %v2079_v39, %v2076_v53 }
 0x464   : > { %v1732_v26 = vadd.f32 %v1730_v50, %v4076_v4  ;;  %v1596_v46 = vadd.f32 %v1594_v40, %v1532_v3  ;;  %v1915_v36 = vstv %s4141_s25  ;;  %v1950_v55 = vstv %s4143_s24  ;;  %s3030_s25 = smov 56   ;;  %s4567_s24 = sld [smem:[#allocation26_spill]] }
 0x465   : > { %v1794_v15 = vpop.permute.xlu0 %1793  ;;  %v1746_v16 = vpop.permute.xlu1 %1745  ;;  %v1985_v25 = vstv %s4145_s7  ;;  %v2020_v43 = vstv %s4150_s27  ;;  %v2055_v4 = vstv %s4152_s14  ;;  %v2090_v49 = vstv %s4158_s23  ;;  %s4568_s14 = sld [smem:[#allocation29_spill]] }
 0x466   : > { %v1796_v47 = vadd.f32 %v1794_v15, %v1732_v26  ;;  %v1692_v57 = vadd.f32 %v4029_v45, %v1596_v46  ;;  %v1849_v61 = vstv %s4160_s12  ;;  %v1853_v58 = vstv %s4167_s2  ;;  %s4234_s2 = sld [smem:[#allocation12 + $0x387]] }
 0x467   : > { %v1740_v8 = vadd.f32 %v1738_v62, %v1684_v14  ;;  %v1884_v38 = vstv %s4169_s0  ;;  %v1888_v63 = vstv %s4175_s19  ;;  %v1919_v10 = vstv %s4177_s11  ;;  %s4566_s11 = sld [smem:[#allocation31_spill]]  ;;  %s3028_s19 = smov 24  }
 0x468   : > { %v1838_v53 = vmul.f32 %v1837_v30, %v1796_v47  ;;  %v1873_v11 = vmul.f32 %v1872_v32, %v1796_v47  ;;  %v1908_v13 = vmul.f32 %v1907_v33, %v1796_v47  ;;  %v1943_v50 = vmul.f32 %v1942_v56, %v1796_v47 }
 0x469   : > { %v1978_v5 = vmul.f32 %v1977_v1, %v1796_v47  ;;  %v2013_v34 = vmul.f32 %v2012_v22, %v1796_v47  ;;  %v2048_v45 = vmul.f32 %v2047_v28, %v1796_v47  ;;  %v2083_v3 = vmul.f32 %v2082_v29, %v1796_v47  ;;  %v1802_v14 = vpop.permute.xlu0 %1801  ;;  %v1754_v1 = vpop.permute.xlu1 %1753 }
 0x46a   : > { %v1839_v30 = vadd.f32 %v1838_v53, %v1835_v19  ;;  %v1874_v32 = vadd.f32 %v1873_v11, %v1870_v35  ;;  %v1909_v33 = vadd.f32 %v1908_v13, %v1905_v17  ;;  %v1944_v56 = vadd.f32 %v1943_v50, %v1940_v7  ;;  %s2641_s7 = sshll.u32 %s4567_s24, 7 }
 0x46b   : > { %v1979_v22 = vadd.f32 %v1978_v5, %v1975_v23  ;;  %v2014_v28 = vadd.f32 %v2013_v34, %v2010_v9  ;;  %v2049_v29 = vadd.f32 %v2048_v45, %v2045_v37  ;;  %v2084_v42 = vadd.f32 %v2083_v3, %v2080_v24  ;;  %p4570_p8 = scmp.ne.s32.totalorder %s4568_s14, 0 }
 0x46c   : > { %v1804_v31 = vadd.f32 %v1802_v14, %v1740_v8  ;;  %v1954_v51 = vstv %s4195_s8  ;;  %v1989_v20 = vstv %s4200_s22  ;;  %v2024_v12 = vstv %s4202_s16 }
 0x46d   : > { %v1748_v54 = vadd.f32 %v1746_v16, %v4163_v0  ;;  %v1756_v2 = vadd.f32 %v1754_v1, %v1692_v57  ;;  %v2028_v39 = vstv %s4208_s13  ;;  %v2059_v40 = vstv %s4210_s5  ;;  %v1810_v37 = vpop.permute.xlu0 %1809  ;;  %s2409_s0 = sshll.u32 %s4566_s11, 3  ;;  %s2246_s22 = scalar_lea.sflag [#allocation4], %s4566_s11 }
 0x46e   : > { %v1842_v62 = vmul.f32 %v1841_v18, %v1804_v31  ;;  %v1877_v19 = vmul.f32 %v1876_v27, %v1804_v31  ;;  %v1912_v35 = vmul.f32 %v1911_v44, %v1804_v31  ;;  %v1947_v17 = vmul.f32 %v1946_v21, %v1804_v31  ;;  %s4395_s29 = scalar_lea.vmem [#allocation15], %s2409_s0  ;;  %s3031_s13 = smov [#allocation15]  }
 0x46f   : > { %v1982_v7 = vmul.f32 %v1981_v41, %v1804_v31  ;;  %v2017_v23 = vmul.f32 %v2016_v52, %v1804_v31  ;;  %v2052_v0 = vmul.f32 %v2051_v60, %v1804_v31  ;;  %v2087_v9 = vmul.f32 %v2086_v48, %v1804_v31  ;;  %v1818_v41 = vpop.permute.xlu1 %1817  ;;  %s2259_s27 = sshll.u32 %s4395_s29, 4  ;;  %s2930_s5 = sshll.u32 %s3031_s13, 4  ;;  %s4420_s27 = int_to_ptr.vmem [resolvable:$true] %s2259_s27  ;;  %s2931_s5 = int_to_ptr.vmem [resolvable:$false] %s2930_s5 }
 0x470   : > { %v1843_v18 = vadd.f32 %v1842_v62, %v1839_v30  ;;  %v1878_v27 = vadd.f32 %v1877_v19, %v1874_v32  ;;  %v1913_v44 = vadd.f32 %v1912_v35, %v1909_v33  ;;  %v1948_v21 = vadd.f32 %v1947_v17, %v1944_v56  ;;  %s2926_s16 = scalar_lea.vmem %s4420_s27, 128  ;;  %p2933_p7 = scmp.lt.s32.totalorder %s4420_s27, %s2931_s5 }
 0x471   : > { %v1983_v24 = vadd.f32 %v1982_v7, %v1979_v22  ;;  %v2018_v52 = vadd.f32 %v2017_v23, %v2014_v28  ;;  %v2053_v60 = vadd.f32 %v2052_v0, %v2049_v29  ;;  %v2088_v48 = vadd.f32 %v2087_v9, %v2084_v42  ;;  %p2927_p13 = scmp.ne.s32.totalorder %s4420_s27, %s2926_s16 }
 0x472   : > { %v1812_v26 = vadd.f32 %v1810_v37, %v1748_v54  ;;  %v2094_v46 = vstv %s4234_s2  ;;  %v2098_v15 = vstv %s4236_s3  ;;  %v1923_v16 = vstv %s4238_s28  ;;  %s4569_s2 = sld [smem:[#allocation46_spill]]  ;;  %s2932_s3 = scalar_lea.vmem %s2931_s5, 256 }
 0x473   : > { %v1820_v47 = vadd.f32 %v1818_v41, %v1756_v2  ;;  %v2063_v57 = vstv %s4240_s15  ;;  %v1958_v8 = vstv %s4242_s4  ;;  %v1993_v53 = vstv %s4244_s6  ;;  %p2928_p2 = pnand %p2927_p13, %p4570_p8  ;;  %p2934_p3 = scmp.lt.s32.totalorder %s2932_s3, %s2926_s16 }
 0x474   : > { %v1846_v11 = vmul.f32 %v1845_v59, %v1812_v26  ;;  %v1881_v13 = vmul.f32 %v1880_v6, %v1812_v26  ;;  %v1916_v50 = vmul.f32 %v1915_v36, %v1812_v26  ;;  %v1951_v5 = vmul.f32 %v1950_v55, %v1812_v26 }
 0x475   : > { %v1986_v34 = vmul.f32 %v1985_v25, %v1812_v26  ;;  %v2021_v45 = vmul.f32 %v2020_v43, %v1812_v26  ;;  %v2056_v3 = vmul.f32 %v2055_v4, %v1812_v26  ;;  %v2091_v14 = vmul.f32 %v2090_v49, %v1812_v26  ;;  %p2929_p5 = pneg %p2928_p2  ;;  %p2935_p12 = por %p2934_p3, %p2933_p7 }
 0x476   : > { %v1847_v30 = vadd.f32 %v1846_v11, %v1843_v18  ;;  %v1882_v32 = vadd.f32 %v1881_v13, %v1878_v27  ;;  %v1917_v59 = vadd.f32 %v1916_v50, %v1913_v44  ;;  %v1952_v33 = vadd.f32 %v1951_v5, %v1948_v21 }
 0x477   : > { %v1987_v6 = vadd.f32 %v1986_v34, %v1983_v24  ;;  %v2022_v56 = vadd.f32 %v2021_v45, %v2018_v52  ;;  %v2057_v36 = vadd.f32 %v2056_v3, %v2053_v60  ;;  %v2092_v1 = vadd.f32 %v2091_v14, %v2088_v48  ;;  %p2936_p1 = pnand %p2935_p12, %p2929_p5 }
 0x478   : > { %v1850_v55 = vmul.f32 %v1849_v61, %v1820_v47  ;;  %v1885_v25 = vmul.f32 %v1884_v38, %v1820_v47  ;;  %v1920_v43 = vmul.f32 %v1919_v10, %v1820_v47  ;;  %v1955_v4 = vmul.f32 %v1954_v51, %v1820_v47  ;;  %s4418_s8 = scalar_lea.hbm %s4569_s2, %s2641_s7 }
 0x479   : > { %v1990_v49 = vmul.f32 %v1989_v20, %v1820_v47  ;;  %v2025_v22 = vmul.f32 %v2024_v12, %v1820_v47  ;;  %v2060_v28 = vmul.f32 %v2059_v40, %v1820_v47  ;;  %v2095_v29 = vmul.f32 %v2094_v46, %v1820_v47 }
 0x47a   : > { %v1851_v42 = vadd.f32 %v1850_v55, %v1847_v30  ;;  %v1886_v31 = vadd.f32 %v1885_v25, %v1882_v32  ;;  %v1921_v54 = vadd.f32 %v1920_v43, %v1917_v59  ;;  %v1956_v2 = vadd.f32 %v1955_v4, %v1952_v33 }
 0x47b   : > { %v1991_v61 = vadd.f32 %v1990_v49, %v1987_v6  ;;  %v2026_v62 = vadd.f32 %v2025_v22, %v2022_v56  ;;  %v2061_v38 = vadd.f32 %v2060_v28, %v2057_v36  ;;  %v2096_v19 = vadd.f32 %v2095_v29, %v2092_v1 }
 0x47c   : > { %v1854_v10 = vadd.f32 %v1853_v58, %v1851_v42  ;;  %v1889_v51 = vadd.f32 %v1888_v63, %v1886_v31  ;;  %v1924_v35 = vadd.f32 %v1923_v16, %v1921_v54  ;;  %v1959_v17 = vadd.f32 %v1958_v8, %v1956_v2 }
 0x47d   : > { %v2029_v20 = vadd.f32 %v2028_v39, %v2026_v62  ;;  %v2099_v12 = vadd.f32 %v2098_v15, %v2096_v19  ;;  %v2064_v40 = vadd.f32 %v2063_v57, %v2061_v38  ;;  %v1994_v7 = vadd.f32 %v1993_v53, %v1991_v61 }
 0x47e   : > { %v1890_v23 = vmax.f32 %v1889_v51, 0.0  ;;  %v1925_v0 = vmax.f32 %v1924_v35, 0.0  ;;  %v1960_v9 = vmax.f32 %v1959_v17, 0.0  ;;  %v4302_v21 = vmax.f32 %v1854_v10, 0.0 }
 0x47f   : > { %v2030_v37 = vmax.f32 %v2029_v20, 0.0  ;;  %v2100_v18 = vmax.f32 %v2099_v12, 0.0  ;;  %v2065_v27 = vmax.f32 %v2064_v40, 0.0  ;;  %v1995_v44 = vmax.f32 %v1994_v7, 0.0 }
 0x480   : > { %v2109_v58 = vrot.slane %v1890_v23, 7  ;;  %v2112_v41 = vrot.slane %v1925_v0, 6  ;;  %v2115_v63 = vrot.slane %v1960_v9, 5 }
 0x481   : > { %v4304_v24 = vrot.slane %v2030_v37, 3  ;;  %v4306_v52 = vrot.slane %v2100_v18, 1  ;;  %v4308_v39 = vrot.slane %v2065_v27, 2  ;;  %v2118_v60 = vrot.slane %v1995_v44, 4 }
 0x482   : > { %v2197_v48 = vsel %vm2125_vm12, %v2109_v58, %v4302_v21  ;;  %v2181_v26 = vsel %vm2122_vm13, %v2109_v58, %v4302_v21  ;;  %v2165_v46 = vsel %vm2119_vm14, %v2109_v58, %v4302_v21  ;;  %v2149_v15 = vsel %vm2116_vm2, %v2109_v58, %v4302_v21 }
 0x483   : > { %2141 = vrot.lane.b32.xlu1 %v4306_v52, %s3024_s21  ;;  %v2198_v16 = vsel %vm2128_vm15, %v2112_v41, %v2197_v48  ;;  %v2154_v47 = vsel %vm2110_vm0, %v4306_v52, %v4308_v39  ;;  %v2182_v57 = vsel %vm2125_vm12, %v2112_v41, %v2181_v26  ;;  %v2169_v8 = vsel %vm2110_vm0, %v4308_v39, %v4304_v24 }
 0x484   : > { %2203 = vrot.lane.b32.xlu0 %v2198_v16, %s3025_s20  ;;  %v2183_v53 = vsel %vm2128_vm15, %v2115_v63, %v2182_v57  ;;  %v2170_v11 = vsel %vm2113_vm1, %v4306_v52, %v2169_v8  ;;  %v2166_v13 = vsel %vm2122_vm13, %v2112_v41, %v2165_v46  ;;  %v2184_v50 = vsel %vm2110_vm0, %v4304_v24, %v2118_v60 }
 0x485   : > { %v2167_v5 = vsel %vm2125_vm12, %v2115_v63, %v2166_v13  ;;  %v2185_v34 = vsel %vm2113_vm1, %v4308_v39, %v2184_v50  ;;  %v2150_v45 = vsel %vm2119_vm14, %v2112_v41, %v2149_v15  ;;  %v2199_v3 = vsel %vm2110_vm0, %v2118_v60, %v2115_v63 }
 0x486   : > { %v2168_v14 = vsel %vm2128_vm15, %v2118_v60, %v2167_v5  ;;  %v2186_v30 = vsel %vm2116_vm2, %v4306_v52, %v2185_v34  ;;  %v2151_v32 = vsel %vm2122_vm13, %v2115_v63, %v2150_v45  ;;  %v2200_v59 = vsel %vm2113_vm1, %v4304_v24, %v2199_v3 }
 0x487   : > { %2157 = vrot.lane.b32.xlu1 %v2154_v47, %s3026_s26  ;;  %v2152_v33 = vsel %vm2125_vm12, %v2118_v60, %v2151_v32  ;;  %v2201_v6 = vsel %vm2116_vm2, %v4308_v39, %v2200_v59  ;;  %v2133_v56 = vsel %vm2113_vm1, %v2109_v58, %v4302_v21  ;;  %v2214_v36 = vsel %vm2110_vm0, %v2115_v63, %v2112_v41 }
 0x488   : > { %2187 = vrot.lane.b32.xlu0 %v2183_v53, %s3027_s17  ;;  %v2153_v1 = vsel %vm2128_vm15, %v4304_v24, %v2152_v33  ;;  %v2202_v55 = vsel %vm2119_vm14, %v4306_v52, %v2201_v6  ;;  %v2134_v25 = vsel %vm2116_vm2, %v2112_v41, %v2133_v56  ;;  %v2215_v43 = vsel %vm2113_vm1, %v2118_v60, %v2214_v36 }
 0x489   : > { %v2135_v4 = vsel %vm2119_vm14, %v2115_v63, %v2134_v25  ;;  %v2216_v49 = vsel %vm2116_vm2, %v4304_v24, %v2215_v43  ;;  %v2213_v22 = vsel %vm2128_vm15, %v2109_v58, %v4302_v21  ;;  %v2229_v28 = vsel %vm2110_vm0, %v2112_v41, %v2109_v58 }
 0x48a   : > { %v2136_v29 = vsel %vm2122_vm13, %v2118_v60, %v2135_v4  ;;  %v2217_v42 = vsel %vm2119_vm14, %v4308_v39, %v2216_v49  ;;  %v2230_v31 = vsel %vm2113_vm1, %v2115_v63, %v2229_v28  ;;  %v2111_v54 = vsel %vm2110_vm0, %v2109_v58, %v4302_v21 }
 0x48b   : > { %2173 = vrot.lane.b32.xlu1 %v2170_v11, %s3028_s19  ;;  %v2137_v2 = vsel %vm2125_vm12, %v4304_v24, %v2136_v29  ;;  %v2218_v61 = vsel %vm2122_vm13, %v4306_v52, %v2217_v42  ;;  %v2231_v62 = vsel %vm2116_vm2, %v2118_v60, %v2230_v31  ;;  %v2114_v38 = vsel %vm2113_vm1, %v2112_v41, %v2111_v54 }
 0x48c   : > { %2171 = vrot.lane.b32.xlu0 %v2168_v14, %s3028_s19  ;;  %v2138_v19 = vsel %vm2128_vm15, %v4308_v39, %v2137_v2  ;;  %v2232_v10 = vsel %vm2119_vm14, %v4304_v24, %v2231_v62  ;;  %v2117_v51 = vsel %vm2116_vm2, %v2115_v63, %v2114_v38  ;;  %vm2243_vm0 = vcmask 522688  }
 0x48d   : > { %v2233_v35 = vsel %vm2122_vm13, %v4308_v39, %v2232_v10  ;;  %v2120_v17 = vsel %vm2119_vm14, %v2118_v60, %v2117_v51  ;;  %vm2227_vm14 = vcmask 456064   ;;  %vm2241_vm1 = vcmask 523719  }
 0x48e   : > { %v2234_v20 = vsel %vm2125_vm12, %v4306_v52, %v2233_v35  ;;  %v2123_v12 = vsel %vm2122_vm13, %v4304_v24, %v2120_v17  ;;  %vm2211_vm13 = vcmask 389440  }
 0x48f   : > { %2189 = vrot.lane.b32.xlu1 %v2186_v30, %s3027_s17  ;;  %v2126_v40 = vsel %vm2125_vm12, %v4308_v39, %v2123_v12  ;;  %vm2209_vm12 = vcmask 392517  }
 0x490   : > { %2155 = vrot.lane.b32.xlu0 %v2153_v1, %s3026_s26  ;;  %v2129_v7 = vsel %vm2128_vm15, %v4306_v52, %v2126_v40  ;;  %vm2225_vm15 = vcmask 458118  }
 0x491   : > { %2132 = vst.msk [vmem:[%s4395_s29] sm:$0xff] %vm2131_vm3, %v2129_v7 }
 0x493   : > { %2205 = vrot.lane.b32.xlu1 %v2202_v55, %s3025_s20 }
 0x494   : > { %2139 = vrot.lane.b32.xlu0 %v2138_v19, %s3024_s21 }
 0x497   : > { %2221 = vrot.lane.b32.xlu1 %v2218_v61, %s3029_s1 }
 0x498   : > { %2219 = vrot.lane.b32.xlu0 %v2213_v22, %s3029_s1 }
 0x49b   : > { %2237 = vrot.lane.b32.xlu1 %v2234_v20, %s3030_s25 }
 0x49c   : > { %2235 = vrot.lane.b32.xlu0 %v4302_v21, %s3030_s25 }
 0x4f5   : > { %v2142_v23 = vpop.permute.xlu1 %2141 }
 0x4f6   : > { %2148 = vst.msk [vmem:[%s4395_s29 + $0x7] sm:$0x1] %vm2147_vm4, %v2142_v23  ;;  %v2204_v0 = vpop.permute.xlu0 %2203 }
 0x4f9   : > { %v2158_v9 = vpop.permute.xlu1 %2157 }
 0x4fa   : > { %v2188_v37 = vpop.permute.xlu0 %2187 }
 0x4fd   : > { %v2174_v18 = vpop.permute.xlu1 %2173 }
 0x4fe   : > { %v2172_v27 = vpop.permute.xlu0 %2171 }
 0x501   : > { %v2190_v44 = vpop.permute.xlu1 %2189 }
 0x502   : > { %v2156_v58 = vpop.permute.xlu0 %2155 }
 0x505   : > { %v2206_v41 = vpop.permute.xlu1 %2205 }
 0x506   : > { %v2140_v21 = vpop.permute.xlu0 %2139 }
 0x507   : > { %2146 = vst.msk [vmem:[%s4395_s29 - $0x1] sm:$0xfe] %vm2145_vm5, %v2140_v21 }
 0x508   : > { %2162 = vst.msk [vmem:[%s4395_s29 - $0x2] sm:$0xfc] %vm2161_vm6, %v2156_v58 }
 0x509   : > { %2164 = vst.msk [vmem:[%s4395_s29 + $0x6] sm:$0x3] %vm2163_vm7, %v2158_v9  ;;  %v2222_v63 = vpop.permute.xlu1 %2221 }
 0x50a   : > { %2178 = vst.msk [vmem:[%s4395_s29 - $0x3] sm:$0xf8] %vm2177_vm8, %v2172_v27  ;;  %v2220_v24 = vpop.permute.xlu0 %2219 }
 0x50b   : > { %2180 = vst.msk [vmem:[%s4395_s29 + $0x5] sm:$0x7] %vm2179_vm9, %v2174_v18 }
 0x50c   : > { %2194 = vst.msk [vmem:[%s4395_s29 - $0x4] sm:$0xf0] %vm2193_vm10, %v2188_v37 }
 0x50d   : > { %2196 = vst.msk [vmem:[%s4395_s29 + $0x4] sm:$0xf] %vm2195_vm11, %v2190_v44  ;;  %v2238_v52 = vpop.permute.xlu1 %2237 }
 0x50e   : > { %2210 = vst.msk [vmem:[%s4395_s29 - $0x5] sm:$0xe0] %vm2209_vm12, %v2204_v0  ;;  %v2236_v39 = vpop.permute.xlu0 %2235 }
 0x50f   : > { %2212 = vst.msk [vmem:[%s4395_s29 + $0x3] sm:$0x1f] %vm2211_vm13, %v2206_v41 }
 0x510   : > { %2228 = vst.msk [vmem:[%s4395_s29 + $0x2] sm:$0x3f] %vm2227_vm14, %v2222_v63 }
 0x511   : > { %2226 = vst.msk [vmem:[%s4395_s29 - $0x6] sm:$0xc0] %vm2225_vm15, %v2220_v24 }
 0x512   : > { %2244 = vst.msk [vmem:[%s4395_s29 + $0x1] sm:$0x7f] %vm2243_vm0, %v2238_v52 }
 0x513   : > { %2242 = vst.msk [vmem:[%s4395_s29 - $0x7] sm:$0x80] %vm2241_vm1, %v2236_v39 }
 0x514   : > { %2939 = shalt.err (!%p2936_p1)
}
 0x515   : > { %s2940_s28 = scalar_lea.hbm %s4418_s8, 128  ;;  %s2944_s30 = scalar_lea.hbm %s4569_s2, 256 }
 0x516   : > { %p2941_p4 = scmp.ne.s32.totalorder %s4418_s8, %s2940_s28  ;;  %p2945_p11 = scmp.lt.u32.totalorder %s4418_s8, %s4569_s2 }
 0x517   : > { %p2946_p6 = scmp.lt.u32.totalorder %s2944_s30, %s2940_s28  ;;  %p2948_p13 = scmp.lt.u32.totalorder %s2940_s28, %s4418_s8 }
 0x518   : > { %p2942_p0 = pnand %p2941_p4, %p4570_p8 }
 0x519   : > { %p2947_p10 = por %p2946_p6, %p2945_p11 }
 0x51a   : > { %p2943_p9 = pneg %p2942_p0 }
 0x51b   : > { %p2949_p2 = por %p2948_p13, %p2947_p10 }
 0x51d   : > { %p2950_p5 = pnand %p2949_p2, %p2943_p9 }
 0x51f   : > { %2953 = shalt.err (!%p2950_p5)
}
 0x520   : > { %2711 = dma.vmem_to_hbm [thread:$0]  (%p4570_p8), %s4420_s27, 128, %s4418_s8, %s2246_s22  }
 0x521 PF: > { %s4571_s6 = sld [smem:[#allocation22_spill]]  ;;  %s4572_s10 = sld [smem:[#allocation30_spill]] }
 0x522   : > { %s4573_s21 = sld [smem:[#allocation25_spill]] }
 0x527   : > { %s2271_s20 = sand.u32 1, %s4571_s6   ;;  %p4574_p7 = scmp.ne.s32.totalorder %s4572_s10, 0 }
 0x528   : > { %p4575_p3 = scmp.ge.s32.totalorder %s4573_s21, 2  ;;  %s2272_s26 = scalar_lea.sflag [#allocation4], %s2271_s20 }
 0x52a   : > { %p2737_p12 = pnand %p4575_p3, %p4574_p7 }
 0x52c   : > { %2991 = dma.done.wait (!%p2737_p12), %s2272_s26, 128  }
 0x52d   : > { %2993 = vsyncadd (!%p2737_p12), %s2272_s26, 4294967168  ;;  %s4576_s27 = sld [smem:[#allocation27_spill]]  ;;  %s4577_s24 = sld [smem:[#allocation23_spill]] }
 0x52e   : > { %s4578_s25 = sld [smem:[#allocation24_spill]]  ;;  %s4579_s26 = sld [smem:[#allocation28_spill]] }
 0x533   : > { %p24_p1 = scmp.ge.s32.totalorder %s4576_s27, 4  }
 0x535   :  { %26 = sbr.rel (!%p24_p1) target bundleno = 18 (0x12), region = 118 }
 0x53c   :  { %2277 = vsyncpa [#allocation3], 1 }
 0x53d   :  { %2279 = vsyncpa [#allocation3 + $0x1], 1 }
 0x53e   :  { %2280 = vsyncpa [#allocation4], 1 }
 0x53f   :  { %2282 = vsyncpa [#allocation4 + $0x1], 1 }
 0x540   :  { %2283 = vsyncpa [#allocation5], 1 }
 0x541   :  { %2285 = vsyncpa [#allocation5 + $0x1], 1 }
 0x542   :  { %2286 = vsyncpa [#allocation8], 1 }
 0x543   :  { %2287 = vsyncpa [#allocation11], 1 }
 0x544   :  { %2288 = vsyncpa [#allocation14], 1 }

</bundles_post_ra>
